<compile_context>
chip_gen: v7x
topology: tpu7x:2x2x1
jax: 0.10.0
libtpu: 0.0.40
codegen_flags: <defaults>
</compile_context>

<pallas_src>
import functools
import math

import numpy as np
import jax
import jax.numpy as jnp
from jax import lax
from jax.experimental import pallas as pl
from jax.experimental.pallas import tpu as pltpu

# ----- small, module-consistent configuration -----
DIM = 32                 # dim
DIM_HEAD = 16            # dim_head
HEADS = 4                # heads (must be divisible by 4: left/right/top/down groups)
INNER = DIM_HEAD * HEADS
N2 = 16                  # latent tokens
N1 = 273 - N2            # image tokens (1 class token + 16*16 grid), forced by the module
NX = 256                 # grid-token segment length (16*16)
NT = N2 + 1              # valid tail tokens: latents + class token
NT_PAD = 32              # tail padded to 32 rows (bf16 sublane-aligned per-batch slices)
EPS = 1e-5               # nn.LayerNorm default
NEG = -1e30              # additive logit mask for tail padding


def _attention_kernel(xg_ref, tail_ref, wkv_ref, wtail_ref, wout_ref,
                      gm_ref, bm_ref, gt_ref, bt_ref, posg_ref, mask_ref,
                      o_ref, kv_scr, tp_scr, *, block_b):
    def layer_norm(v, g, b):
        mu = jnp.mean(v, axis=-1, keepdims=True)
        c = v - mu
        var = jnp.mean(c * c, axis=-1, keepdims=True)
        return c * lax.rsqrt(var + EPS) * g + b

    # ---- fused projections: the whole batch block streams through the MXU once ----
    xg_n = layer_norm(xg_ref[...], gm_ref[...], bm_ref[...]).astype(jnp.bfloat16)
    kv_scr[...] = jnp.dot(xg_n, wkv_ref[...],
                          preferred_element_type=jnp.float32).astype(jnp.bfloat16)
    tl_n = layer_norm(tail_ref[...], gt_ref[...], bt_ref[...]).astype(jnp.bfloat16)
    tp_scr[...] = jnp.dot(tl_n, wtail_ref[...],
                          preferred_element_type=jnp.float32).astype(jnp.bfloat16)

    pos_all = posg_ref[...]          # (4, 256)   f32, loaded once (2 vregs)
    tmask = mask_ref[...]            # (1, 32)    f32, loaded once
    wout = wout_ref[...]             # (64, 32)   bf16, loaded once
    dn_t = (((1,), (1,)), ((), ()))  # contract last dims (A @ B^T, MXU-native)
    gsz = HEADS // 4

    @pl.loop(0, block_b)
    def _(b):                        # batch-outer / head-inner (single output write)
        rg = pl.multiple_of(b * NX, NX)
        rt = pl.multiple_of(b * NT_PAD, NT_PAD)
        ro = pl.multiple_of(b * N2, N2)
        kvb = kv_scr[pl.ds(rg, NX), :]            # (256, 128) bf16, aligned slice
        tpb = tp_scr[pl.ds(rt, NT_PAD), :]        # (32, 192)  bf16, aligned slice
        qb = tpb[:N2, 0:INNER]                    # (16, 64)  scaled queries
        ktb = tpb[:, INNER:2 * INNER]             # (32, 64)  tail keys
        vtb = tpb[:, 2 * INNER:3 * INNER]         # (32, 64)  tail values

        ohs = []
        for h in range(HEADS):                    # static unroll over the 4 heads
            sl = slice(h * DIM_HEAD, (h + 1) * DIM_HEAD)
            qh, kh = qb[:, sl], kvb[:, sl]
            vh = kvb[:, INNER + h * DIM_HEAD:INNER + (h + 1) * DIM_HEAD]
            kth, vth = ktb[:, sl], vtb[:, sl]

            # Logits over the two kv segments (bf16 operands, f32 accumulation).
            wa = lax.dot_general(qh, kh, dn_t,
                                 preferred_element_type=jnp.float32)          # (16, 256)
            g = h // gsz              # 0: left, 1: right, 2: top, 3: down
            wa = wa * pos_all[g:g + 1, :]
            wt = lax.dot_general(qh, kth, dn_t,
                                 preferred_element_type=jnp.float32) + tmask  # (16, 32)
            # Tail positional weights are identically 1 (class token + latents).

            # Softmax fused over the union of both segments (all f32).
            m = jnp.maximum(jnp.max(wa, axis=-1, keepdims=True),
                            jnp.max(wt, axis=-1, keepdims=True))
            ea = jnp.exp(wa - m)
            et = jnp.exp(wt - m)
            denom = (jnp.sum(ea, axis=-1, keepdims=True)
                     + jnp.sum(et, axis=-1, keepdims=True))
            oh = (jnp.dot(ea.astype(jnp.bfloat16), vh,
                          preferred_element_type=jnp.float32)
                  + jnp.dot(et.astype(jnp.bfloat16), vth,
                            preferred_element_type=jnp.float32))              # (16, 16)
            ohs.append(oh * pl.reciprocal(denom, approx=True))                # EUP recip

        # One output projection per batch element; the (16, 32) row group is written once.
        o_heads = jnp.concatenate(ohs, axis=-1).astype(jnp.bfloat16)          # (16, 64)
        o_ref[pl.ds(ro, N2), :] = jnp.dot(o_heads, wout,
                                          preferred_element_type=jnp.float32)


def _position_grid():
    # Exactly the module's left/right/top/down matrices, flattened (grid tokens only;
    # the class token and the 16 latent tokens have weight 1 for every group).
    coeff = np.linspace(1, 0, 16)
    inv = np.linspace(0, 1, 16)
    left = np.zeros((16, 16)); right = np.zeros((16, 16))
    top = np.zeros((16, 16)); down = np.zeros((16, 16))
    for i in range(16):
        left[:, i] = coeff[i]
        right[:, i] = inv[i]
        top[i, :] = coeff[i]
        down[i, :] = inv[i]
    grid = np.stack([left.flatten(), right.flatten(), top.flatten(), down.flatten()])
    return jnp.asarray(grid, dtype=jnp.float32)          # (4, 256)


def _pick_block_b(batch, cap=8):
    # Largest batch block <= cap, preferring (1) an even number of grid steps so both
    # v7x TensorCores stay busy, then (2) minimal batch padding.  The extra grid step
    # this may create on single-TC parts costs only ~0.35us.
    best = None
    for bb in range(1, min(cap, batch) + 1):
        nb = -(-batch // bb)
        key = (nb % 2 != 0, nb * bb - batch, -bb)
        if best is None or key < best[0]:
            best = (key, bb)
    return best[1]


def position_perceiver_attention(x, latents, params):
    batch, n1, d = x.shape
    assert (n1, d) == (N1, DIM) and latents.shape == (batch, N2, DIM)
    wq, wkv, wout, g1, b1, g2, b2 = params

    # Fused projection weights (bf16 MXU operands); softmax scale folded into Wq.
    scale = 1.0 / math.sqrt(DIM_HEAD)                     # == (dim_head ** -0.25) ** 2
    wkv_b = wkv.astype(jnp.bfloat16)                                          # (D, 128): [k | v]
    wtail_b = jnp.concatenate([wq * scale, wkv], axis=1).astype(jnp.bfloat16)  # (D, 192): [q | k | v]
    wout_b = wout.astype(jnp.bfloat16)                                        # (64, D)

    g_main = g1.reshape(1, DIM)
    b_main = b1.reshape(1, DIM)

    block_b = _pick_block_b(batch)
    n_blocks = pl.cdiv(batch, block_b)
    padded = n_blocks * block_b

    # Row-wise LayerNorm params for one tail group (latents -> norm2, class token ->
    # norm1, pad rows -> identity), tiled over the batch block.
    g_row = jnp.concatenate([jnp.broadcast_to(g2, (N2, DIM)), g1.reshape(1, DIM),
                             jnp.ones((NT_PAD - NT, DIM), jnp.float32)], axis=0)
    b_row = jnp.concatenate([jnp.broadcast_to(b2, (N2, DIM)), b1.reshape(1, DIM),
                             jnp.zeros((NT_PAD - NT, DIM), jnp.float32)], axis=0)
    g_tail = jnp.tile(g_row, (block_b, 1))
    b_tail = jnp.tile(b_row, (block_b, 1))

    # Repartition the kv sequence: 256 grid tokens | (16 latents + class token + pad).
    x_grid = x[:, 1:, :]                                                      # (B, 256, D)
    tail = jnp.concatenate([latents, x[:, :1, :],
                            jnp.zeros((batch, NT_PAD - NT, DIM), x.dtype)], axis=1)
    if padded != batch:                                   # zero-pad to a whole batch block
        x_grid = jnp.concatenate(
            [x_grid, jnp.zeros((padded - batch, NX, DIM), x.dtype)], axis=0)
        tail = jnp.concatenate(
            [tail, jnp.zeros((padded - batch, NT_PAD, DIM), tail.dtype)], axis=0)
    x_grid = x_grid.reshape(padded * NX, DIM)
    tail = tail.reshape(padded * NT_PAD, DIM)

    pos_grid = _position_grid()                                               # (4, 256)
    tail_mask = jnp.concatenate([jnp.zeros((1, NT), jnp.float32),
                                 jnp.full((1, NT_PAD - NT), NEG, jnp.float32)], axis=1)

    out = pl.pallas_call(
        functools.partial(_attention_kernel, block_b=block_b),
        out_shape=jax.ShapeDtypeStruct((padded * N2, DIM), jnp.float32),
        grid=(n_blocks,),
        in_specs=[
            pl.BlockSpec((block_b * NX, DIM), lambda i: (i, 0)),          # grid tokens
            pl.BlockSpec((block_b * NT_PAD, DIM), lambda i: (i, 0)),      # latents+cls (padded)
            pl.BlockSpec((DIM, 2 * INNER), lambda i: (0, 0)),             # fused [k|v] weights
            pl.BlockSpec((DIM, 3 * INNER), lambda i: (0, 0)),             # fused [q|k|v] tail weights
            pl.BlockSpec((INNER, DIM), lambda i: (0, 0)),                 # output projection
            pl.BlockSpec((1, DIM), lambda i: (0, 0)),                     # norm1 gamma
            pl.BlockSpec((1, DIM), lambda i: (0, 0)),                     # norm1 beta
            pl.BlockSpec((block_b * NT_PAD, DIM), lambda i: (0, 0)),      # tail row-wise gamma
            pl.BlockSpec((block_b * NT_PAD, DIM), lambda i: (0, 0)),      # tail row-wise beta
            pl.BlockSpec((4, NX), lambda i: (0, 0)),                      # positional weights (grid)
            pl.BlockSpec((1, NT_PAD), lambda i: (0, 0)),                  # tail pad logit mask
        ],
        out_specs=pl.BlockSpec((block_b * N2, DIM), lambda i: (i, 0)),
        scratch_shapes=[
            pltpu.VMEM((block_b * NX, 2 * INNER), jnp.bfloat16),          # fused k|v projection
            pltpu.VMEM((block_b * NT_PAD, 3 * INNER), jnp.bfloat16),      # fused q|k|v tail projection
        ],
        compiler_params=pltpu.CompilerParams(dimension_semantics=("parallel",)),
    )(x_grid, tail, wkv_b, wtail_b, wout_b, g_main, b_main, g_tail, b_tail,
      pos_grid, tail_mask)

    return out[:batch * N2].reshape(batch, N2, DIM)


def _init_params(key):
    k1, k2, k3 = jax.random.split(key, 3)
    # Weights stored as (in, out); equivalent to torch Linear's x @ W.T semantics.
    wq = 0.1 * jax.random.normal(k1, (DIM, INNER), jnp.float32)
    wkv = 0.1 * jax.random.normal(k2, (DIM, 2 * INNER), jnp.float32)
    wout = 0.1 * jax.random.normal(k3, (INNER, DIM), jnp.float32)
    g1 = jnp.ones((DIM,), jnp.float32); b1 = jnp.zeros((DIM,), jnp.float32)
    g2 = jnp.ones((DIM,), jnp.float32); b2 = jnp.zeros((DIM,), jnp.float32)
    return (wq, wkv, wout, g1, b1, g2, b2)


def _reference(x, latents, params):
    """Plain-JAX mirror of the PyTorch forward (fp32)."""
    wq, wkv, wout, g1, b1, g2, b2 = params

    def ln(v, g, b):
        mu = jnp.mean(v, -1, keepdims=True)
        var = jnp.mean((v - mu) ** 2, -1, keepdims=True)
        return (v - mu) / jnp.sqrt(var + EPS) * g + b

    xn = ln(x, g1, b1)
    latn = ln(latents, g2, b2)
    q = latn @ wq
    kv = jnp.concatenate([xn, latn], axis=1) @ wkv
    k, v = kv[..., :INNER], kv[..., INNER:]

    def rshp(t):
        bb, ll, _ = t.shape
        return t.reshape(bb, ll, HEADS, DIM_HEAD).transpose(0, 2, 1, 3)

    qh, kh, vh = rshp(q), rshp(k), rshp(v)
    s = 1.0 / math.sqrt(math.sqrt(DIM_HEAD))
    w = jnp.einsum('bhqd,bhkd->bhqk', qh * s, kh * s)
    pos = jnp.concatenate([jnp.ones((4, 1), jnp.float32), _position_grid(),
                           jnp.ones((4, N2), jnp.float32)], axis=-1)       # (4, 273)
    gid = np.arange(HEADS) // (HEADS // 4)
    w = w * pos[gid][None, :, None, :]
    w = jax.nn.softmax(w, axis=-1)
    out = jnp.einsum('bhqk,bhkd->bhqd', w, vh)
    out = out.transpose(0, 2, 1, 3).reshape(x.shape[0], N2, INNER)
    return out @ wout


if __name__ == "__main__":
    key = jax.random.PRNGKey(0)
    kx, kl, kp = jax.random.split(key, 3)
    batch = 4                                             # -> block_b=2, grid=(2,)
    x = jax.random.normal(kx, (batch, N1, DIM), jnp.float32)        # image features
    latents = jax.random.normal(kl, (batch, N2, DIM), jnp.float32)  # latent features
    params = _init_params(kp)

    out = jax.block_until_ready(position_perceiver_attention(x, latents, params))
    ref = _reference(x, latents, params)
    assert out.shape == (batch, N2, DIM)
    # bf16 MXU operands + approximate reciprocal vs an fp32 reference (the PyTorch
    # module itself runs in fp16 with an fp32 softmax).
    np.testing.assert_allclose(np.asarray(out), np.asarray(ref), rtol=5e-3, atol=2e-3)

    print("KERNEL_OK")
</pallas_src>

<mosaic_0001>
module attributes {stable_mosaic.version = 11 : i64} {
  func.func @_attention_kernel(%arg0: i32, %arg1: memref<512x32xf32, #tpu.memory_space<vmem>>, %arg2: memref<64x32xf32, #tpu.memory_space<vmem>>, %arg3: memref<32x128xbf16, #tpu.memory_space<vmem>>, %arg4: memref<32x192xbf16, #tpu.memory_space<vmem>>, %arg5: memref<64x32xbf16, #tpu.memory_space<vmem>>, %arg6: memref<1x32xf32, #tpu.memory_space<vmem>>, %arg7: memref<1x32xf32, #tpu.memory_space<vmem>>, %arg8: memref<64x32xf32, #tpu.memory_space<vmem>>, %arg9: memref<64x32xf32, #tpu.memory_space<vmem>>, %arg10: memref<4x256xf32, #tpu.memory_space<vmem>>, %arg11: memref<1x32xf32, #tpu.memory_space<vmem>>, %arg12: memref<32x32xf32, #tpu.memory_space<vmem>>, %arg13: memref<512x128xbf16, #tpu.memory_space<vmem>>, %arg14: memref<64x192xbf16, #tpu.memory_space<vmem>>) attributes {dimension_semantics = [#tpu.dimension_semantics<parallel>], iteration_bounds = array<i64: 2>, scalar_prefetch = 0 : i64, scratch_operands = 2 : i64, tpu.core_type = #tpu.core_type<tc>, window_params = [{transform_indices = @transform_0, window_bounds = array<i64: 512, 32>}, {transform_indices = @transform_1, window_bounds = array<i64: 64, 32>}, {pipeline_mode = #tpu.pipeline_mode<synchronous>, transform_indices = @transform_2, window_bounds = array<i64: 32, 128>}, {pipeline_mode = #tpu.pipeline_mode<synchronous>, transform_indices = @transform_3, window_bounds = array<i64: 32, 192>}, {pipeline_mode = #tpu.pipeline_mode<synchronous>, transform_indices = @transform_4, window_bounds = array<i64: 64, 32>}, {pipeline_mode = #tpu.pipeline_mode<synchronous>, transform_indices = @transform_5, window_bounds = array<i64: 1, 32>}, {pipeline_mode = #tpu.pipeline_mode<synchronous>, transform_indices = @transform_6, window_bounds = array<i64: 1, 32>}, {pipeline_mode = #tpu.pipeline_mode<synchronous>, transform_indices = @transform_7, window_bounds = array<i64: 64, 32>}, {pipeline_mode = #tpu.pipeline_mode<synchronous>, transform_indices = @transform_8, window_bounds = array<i64: 64, 32>}, {pipeline_mode = #tpu.pipeline_mode<synchronous>, transform_indices = @transform_9, window_bounds = array<i64: 4, 256>}, {pipeline_mode = #tpu.pipeline_mode<synchronous>, transform_indices = @transform_10, window_bounds = array<i64: 1, 32>}, {transform_indices = @transform_11, window_bounds = array<i64: 32, 32>}]} {
    %c0 = arith.constant 0 : index
    %c0_0 = arith.constant 0 : index
    %0 = vector.load %arg1[%c0, %c0_0] : memref<512x32xf32, #tpu.memory_space<vmem>>, vector<512x32xf32>
    %c0_1 = arith.constant 0 : index
    %c0_2 = arith.constant 0 : index
    %1 = vector.load %arg6[%c0_1, %c0_2] : memref<1x32xf32, #tpu.memory_space<vmem>>, vector<1x32xf32>
    %c0_3 = arith.constant 0 : index
    %c0_4 = arith.constant 0 : index
    %2 = vector.load %arg7[%c0_3, %c0_4] : memref<1x32xf32, #tpu.memory_space<vmem>>, vector<1x32xf32>
    %cst = arith.constant dense<0.000000e+00> : vector<512xf32>
    %3 = vector.multi_reduction <add>, %0, %cst [1] : vector<512x32xf32> to vector<512xf32>
    %4 = vector.shape_cast %3 : vector<512xf32> to vector<512x1xf32>
    %cst_5 = arith.constant 3.200000e+01 : f32
    %5 = vector.broadcast %cst_5 : f32 to vector<512x1xf32>
    %6 = arith.divf %4, %5 : vector<512x1xf32>
    %7 = vector.broadcast %6 : vector<512x1xf32> to vector<512x32xf32>
    %8 = arith.subf %0, %7 : vector<512x32xf32>
    %9 = arith.mulf %8, %8 : vector<512x32xf32>
    %cst_6 = arith.constant dense<0.000000e+00> : vector<512xf32>
    %10 = vector.multi_reduction <add>, %9, %cst_6 [1] : vector<512x32xf32> to vector<512xf32>
    %11 = vector.shape_cast %10 : vector<512xf32> to vector<512x1xf32>
    %cst_7 = arith.constant 3.200000e+01 : f32
    %12 = vector.broadcast %cst_7 : f32 to vector<512x1xf32>
    %13 = arith.divf %11, %12 : vector<512x1xf32>
    %cst_8 = arith.constant 9.99999974E-6 : f32
    %14 = vector.broadcast %cst_8 : f32 to vector<512x1xf32>
    %15 = arith.addf %13, %14 : vector<512x1xf32>
    %16 = math.rsqrt %15 : vector<512x1xf32>
    %17 = vector.broadcast %16 : vector<512x1xf32> to vector<512x32xf32>
    %18 = arith.mulf %8, %17 : vector<512x32xf32>
    %19 = vector.broadcast %1 : vector<1x32xf32> to vector<512x32xf32>
    %20 = arith.mulf %18, %19 : vector<512x32xf32>
    %21 = vector.broadcast %2 : vector<1x32xf32> to vector<512x32xf32>
    %22 = arith.addf %20, %21 : vector<512x32xf32>
    %23 = arith.truncf %22 : vector<512x32xf32> to vector<512x32xbf16>
    %c0_9 = arith.constant 0 : index
    %c0_10 = arith.constant 0 : index
    %24 = vector.load %arg3[%c0_9, %c0_10] : memref<32x128xbf16, #tpu.memory_space<vmem>>, vector<32x128xbf16>
    %cst_11 = arith.constant dense<0.000000e+00> : vector<512x128xf32>
    %25 = tpu.matmul %23, %24, %cst_11 {dimension_numbers = #tpu.dot_dimension_numbers<[1], [0], [0], [1], [0, 0, 1, 1], [], []>} : vector<512x32xbf16>, vector<32x128xbf16>, vector<512x128xf32> -> vector<512x128xf32>
    %26 = arith.truncf %25 : vector<512x128xf32> to vector<512x128xbf16>
    %c0_12 = arith.constant 0 : index
    %c0_13 = arith.constant 0 : index
    %27 = vector.load %arg13[%c0_12, %c0_13] : memref<512x128xbf16, #tpu.memory_space<vmem>>, vector<512x128xbf16>
    tpu.vector_store %arg13[%c0_12, %c0_13], %26 {strides = array<i32>} : memref<512x128xbf16, #tpu.memory_space<vmem>>, vector<512x128xbf16>,
    %c0_14 = arith.constant 0 : index
    %c0_15 = arith.constant 0 : index
    %28 = vector.load %arg2[%c0_14, %c0_15] : memref<64x32xf32, #tpu.memory_space<vmem>>, vector<64x32xf32>
    %c0_16 = arith.constant 0 : index
    %c0_17 = arith.constant 0 : index
    %29 = vector.load %arg8[%c0_16, %c0_17] : memref<64x32xf32, #tpu.memory_space<vmem>>, vector<64x32xf32>
    %c0_18 = arith.constant 0 : index
    %c0_19 = arith.constant 0 : index
    %30 = vector.load %arg9[%c0_18, %c0_19] : memref<64x32xf32, #tpu.memory_space<vmem>>, vector<64x32xf32>
    %cst_20 = arith.constant dense<0.000000e+00> : vector<64xf32>
    %31 = vector.multi_reduction <add>, %28, %cst_20 [1] : vector<64x32xf32> to vector<64xf32>
    %32 = vector.shape_cast %31 : vector<64xf32> to vector<64x1xf32>
    %cst_21 = arith.constant 3.200000e+01 : f32
    %33 = vector.broadcast %cst_21 : f32 to vector<64x1xf32>
    %34 = arith.divf %32, %33 : vector<64x1xf32>
    %35 = vector.broadcast %34 : vector<64x1xf32> to vector<64x32xf32>
    %36 = arith.subf %28, %35 : vector<64x32xf32>
    %37 = arith.mulf %36, %36 : vector<64x32xf32>
    %cst_22 = arith.constant dense<0.000000e+00> : vector<64xf32>
    %38 = vector.multi_reduction <add>, %37, %cst_22 [1] : vector<64x32xf32> to vector<64xf32>
    %39 = vector.shape_cast %38 : vector<64xf32> to vector<64x1xf32>
    %cst_23 = arith.constant 3.200000e+01 : f32
    %40 = vector.broadcast %cst_23 : f32 to vector<64x1xf32>
    %41 = arith.divf %39, %40 : vector<64x1xf32>
    %cst_24 = arith.constant 9.99999974E-6 : f32
    %42 = vector.broadcast %cst_24 : f32 to vector<64x1xf32>
    %43 = arith.addf %41, %42 : vector<64x1xf32>
    %44 = math.rsqrt %43 : vector<64x1xf32>
    %45 = vector.broadcast %44 : vector<64x1xf32> to vector<64x32xf32>
    %46 = arith.mulf %36, %45 : vector<64x32xf32>
    %47 = arith.mulf %46, %29 : vector<64x32xf32>
    %48 = arith.addf %47, %30 : vector<64x32xf32>
    %49 = arith.truncf %48 : vector<64x32xf32> to vector<64x32xbf16>
    %c0_25 = arith.constant 0 : index
    %c0_26 = arith.constant 0 : index
    %50 = vector.load %arg4[%c0_25, %c0_26] : memref<32x192xbf16, #tpu.memory_space<vmem>>, vector<32x192xbf16>
    %cst_27 = arith.constant dense<0.000000e+00> : vector<64x192xf32>
    %51 = tpu.matmul %49, %50, %cst_27 {dimension_numbers = #tpu.dot_dimension_numbers<[1], [0], [0], [1], [0, 0, 1, 1], [], []>} : vector<64x32xbf16>, vector<32x192xbf16>, vector<64x192xf32> -> vector<64x192xf32>
    %52 = arith.truncf %51 : vector<64x192xf32> to vector<64x192xbf16>
    %c0_28 = arith.constant 0 : index
    %c0_29 = arith.constant 0 : index
    %53 = vector.load %arg14[%c0_28, %c0_29] : memref<64x192xbf16, #tpu.memory_space<vmem>>, vector<64x192xbf16>
    tpu.vector_store %arg14[%c0_28, %c0_29], %52 {strides = array<i32>} : memref<64x192xbf16, #tpu.memory_space<vmem>>, vector<64x192xbf16>,
    %c0_30 = arith.constant 0 : index
    %c0_31 = arith.constant 0 : index
    %54 = vector.load %arg10[%c0_30, %c0_31] : memref<4x256xf32, #tpu.memory_space<vmem>>, vector<4x256xf32>
    %c0_32 = arith.constant 0 : index
    %c0_33 = arith.constant 0 : index
    %55 = vector.load %arg11[%c0_32, %c0_33] : memref<1x32xf32, #tpu.memory_space<vmem>>, vector<1x32xf32>
    %c0_34 = arith.constant 0 : index
    %c0_35 = arith.constant 0 : index
    %56 = vector.load %arg5[%c0_34, %c0_35] : memref<64x32xbf16, #tpu.memory_space<vmem>>, vector<64x32xbf16>
    %c0_i32 = arith.constant 0 : i32
    %c2_i32 = arith.constant 2 : i32
    %57 = arith.addi %c0_i32, %c2_i32 : i32
    %c1_i32 = arith.constant 1 : i32
    scf.for %arg15 = %c0_i32 to %57 step %c1_i32  : i32 {
      %c1_i32_37 = arith.constant 1 : i32
      %58 = arith.muli %arg15, %c1_i32_37 : i32
      %c0_i32_38 = arith.constant 0 : i32
      %59 = arith.addi %c0_i32_38, %58 : i32
      %c256_i32 = arith.constant 256 : i32
      %60 = arith.muli %59, %c256_i32 : i32
      %61 = tpu.assume_multiple %60, 256 : i32
      %c32_i32 = arith.constant 32 : i32
      %62 = arith.muli %59, %c32_i32 : i32
      %63 = tpu.assume_multiple %62, 32 : i32
      %c16_i32 = arith.constant 16 : i32
      %64 = arith.muli %59, %c16_i32 : i32
      %65 = tpu.assume_multiple %64, 16 : i32
      %66 = arith.index_cast %61 : i32 to index
      %c0_39 = arith.constant 0 : index
      %67 = vector.load %arg13[%66, %c0_39] : memref<512x128xbf16, #tpu.memory_space<vmem>>, vector<256x128xbf16>
      %68 = arith.index_cast %63 : i32 to index
      %c0_40 = arith.constant 0 : index
      %69 = vector.load %arg14[%68, %c0_40] : memref<64x192xbf16, #tpu.memory_space<vmem>>, vector<32x192xbf16>
      %70 = vector.extract_strided_slice %69 {offsets = [0, 0], sizes = [16, 64], strides = [1, 1]} : vector<32x192xbf16> to vector<16x64xbf16>
      %71 = vector.extract_strided_slice %69 {offsets = [0, 64], sizes = [32, 64], strides = [1, 1]} : vector<32x192xbf16> to vector<32x64xbf16>
      %72 = vector.extract_strided_slice %69 {offsets = [0, 128], sizes = [32, 64], strides = [1, 1]} : vector<32x192xbf16> to vector<32x64xbf16>
      %73 = vector.extract_strided_slice %70 {offsets = [0, 0], sizes = [16, 16], strides = [1, 1]} : vector<16x64xbf16> to vector<16x16xbf16>
      %74 = vector.extract_strided_slice %67 {offsets = [0, 0], sizes = [256, 16], strides = [1, 1]} : vector<256x128xbf16> to vector<256x16xbf16>
      %75 = vector.extract_strided_slice %67 {offsets = [0, 64], sizes = [256, 16], strides = [1, 1]} : vector<256x128xbf16> to vector<256x16xbf16>
      %76 = vector.extract_strided_slice %71 {offsets = [0, 0], sizes = [32, 16], strides = [1, 1]} : vector<32x64xbf16> to vector<32x16xbf16>
      %77 = vector.extract_strided_slice %72 {offsets = [0, 0], sizes = [32, 16], strides = [1, 1]} : vector<32x64xbf16> to vector<32x16xbf16>
      %cst_41 = arith.constant dense<0.000000e+00> : vector<16x256xf32>
      %78 = tpu.matmul %73, %74, %cst_41 {dimension_numbers = #tpu.dot_dimension_numbers<[1], [1], [0], [0], [0, 0, 1, 0], [], []>} : vector<16x16xbf16>, vector<256x16xbf16>, vector<16x256xf32> -> vector<16x256xf32>
      %79 = vector.extract_strided_slice %54 {offsets = [0, 0], sizes = [1, 256], strides = [1, 1]} : vector<4x256xf32> to vector<1x256xf32>
      %80 = vector.broadcast %79 : vector<1x256xf32> to vector<16x256xf32>
      %81 = arith.mulf %78, %80 : vector<16x256xf32>
      %cst_42 = arith.constant dense<0.000000e+00> : vector<16x32xf32>
      %82 = tpu.matmul %73, %76, %cst_42 {dimension_numbers = #tpu.dot_dimension_numbers<[1], [1], [0], [0], [0, 0, 1, 0], [], []>} : vector<16x16xbf16>, vector<32x16xbf16>, vector<16x32xf32> -> vector<16x32xf32>
      %83 = vector.broadcast %55 : vector<1x32xf32> to vector<16x32xf32>
      %84 = arith.addf %82, %83 : vector<16x32xf32>
      %cst_43 = arith.constant dense<0xFF800000> : vector<16xf32>
      %85 = vector.multi_reduction <maximumf>, %81, %cst_43 [1] : vector<16x256xf32> to vector<16xf32>
      %86 = vector.shape_cast %85 : vector<16xf32> to vector<16x1xf32>
      %cst_44 = arith.constant dense<0xFF800000> : vector<16xf32>
      %87 = vector.multi_reduction <maximumf>, %84, %cst_44 [1] : vector<16x32xf32> to vector<16xf32>
      %88 = vector.shape_cast %87 : vector<16xf32> to vector<16x1xf32>
      %89 = arith.maximumf %86, %88 : vector<16x1xf32>
      %90 = vector.broadcast %89 : vector<16x1xf32> to vector<16x256xf32>
      %91 = arith.subf %81, %90 : vector<16x256xf32>
      %92 = math.exp %91 : vector<16x256xf32>
      %93 = vector.broadcast %89 : vector<16x1xf32> to vector<16x32xf32>
      %94 = arith.subf %84, %93 : vector<16x32xf32>
      %95 = math.exp %94 : vector<16x32xf32>
      %cst_45 = arith.constant dense<0.000000e+00> : vector<16xf32>
      %96 = vector.multi_reduction <add>, %92, %cst_45 [1] : vector<16x256xf32> to vector<16xf32>
      %97 = vector.shape_cast %96 : vector<16xf32> to vector<16x1xf32>
      %cst_46 = arith.constant dense<0.000000e+00> : vector<16xf32>
      %98 = vector.multi_reduction <add>, %95, %cst_46 [1] : vector<16x32xf32> to vector<16xf32>
      %99 = vector.shape_cast %98 : vector<16xf32> to vector<16x1xf32>
      %100 = arith.addf %97, %99 : vector<16x1xf32>
      %101 = arith.truncf %92 : vector<16x256xf32> to vector<16x256xbf16>
      %cst_47 = arith.constant dense<0.000000e+00> : vector<16x16xf32>
      %102 = tpu.matmul %101, %75, %cst_47 {dimension_numbers = #tpu.dot_dimension_numbers<[1], [0], [0], [1], [0, 0, 1, 1], [], []>} : vector<16x256xbf16>, vector<256x16xbf16>, vector<16x16xf32> -> vector<16x16xf32>
      %103 = arith.truncf %95 : vector<16x32xf32> to vector<16x32xbf16>
      %cst_48 = arith.constant dense<0.000000e+00> : vector<16x16xf32>
      %104 = tpu.matmul %103, %77, %cst_48 {dimension_numbers = #tpu.dot_dimension_numbers<[1], [0], [0], [1], [0, 0, 1, 1], [], []>} : vector<16x32xbf16>, vector<32x16xbf16>, vector<16x16xf32> -> vector<16x16xf32>
      %105 = arith.addf %102, %104 : vector<16x16xf32>
      %106 = tpu.reciprocal %100 {approx = true} : vector<16x1xf32> -> vector<16x1xf32>
      %107 = vector.broadcast %106 : vector<16x1xf32> to vector<16x16xf32>
      %108 = arith.mulf %105, %107 : vector<16x16xf32>
      %109 = vector.extract_strided_slice %70 {offsets = [0, 16], sizes = [16, 16], strides = [1, 1]} : vector<16x64xbf16> to vector<16x16xbf16>
      %110 = vector.extract_strided_slice %67 {offsets = [0, 16], sizes = [256, 16], strides = [1, 1]} : vector<256x128xbf16> to vector<256x16xbf16>
      %111 = vector.extract_strided_slice %67 {offsets = [0, 80], sizes = [256, 16], strides = [1, 1]} : vector<256x128xbf16> to vector<256x16xbf16>
      %112 = vector.extract_strided_slice %71 {offsets = [0, 16], sizes = [32, 16], strides = [1, 1]} : vector<32x64xbf16> to vector<32x16xbf16>
      %113 = vector.extract_strided_slice %72 {offsets = [0, 16], sizes = [32, 16], strides = [1, 1]} : vector<32x64xbf16> to vector<32x16xbf16>
      %cst_49 = arith.constant dense<0.000000e+00> : vector<16x256xf32>
      %114 = tpu.matmul %109, %110, %cst_49 {dimension_numbers = #tpu.dot_dimension_numbers<[1], [1], [0], [0], [0, 0, 1, 0], [], []>} : vector<16x16xbf16>, vector<256x16xbf16>, vector<16x256xf32> -> vector<16x256xf32>
      %115 = vector.extract_strided_slice %54 {offsets = [1, 0], sizes = [1, 256], strides = [1, 1]} : vector<4x256xf32> to vector<1x256xf32>
      %116 = vector.broadcast %115 : vector<1x256xf32> to vector<16x256xf32>
      %117 = arith.mulf %114, %116 : vector<16x256xf32>
      %cst_50 = arith.constant dense<0.000000e+00> : vector<16x32xf32>
      %118 = tpu.matmul %109, %112, %cst_50 {dimension_numbers = #tpu.dot_dimension_numbers<[1], [1], [0], [0], [0, 0, 1, 0], [], []>} : vector<16x16xbf16>, vector<32x16xbf16>, vector<16x32xf32> -> vector<16x32xf32>
      %119 = vector.broadcast %55 : vector<1x32xf32> to vector<16x32xf32>
      %120 = arith.addf %118, %119 : vector<16x32xf32>
      %cst_51 = arith.constant dense<0xFF800000> : vector<16xf32>
      %121 = vector.multi_reduction <maximumf>, %117, %cst_51 [1] : vector<16x256xf32> to vector<16xf32>
      %122 = vector.shape_cast %121 : vector<16xf32> to vector<16x1xf32>
      %cst_52 = arith.constant dense<0xFF800000> : vector<16xf32>
      %123 = vector.multi_reduction <maximumf>, %120, %cst_52 [1] : vector<16x32xf32> to vector<16xf32>
      %124 = vector.shape_cast %123 : vector<16xf32> to vector<16x1xf32>
      %125 = arith.maximumf %122, %124 : vector<16x1xf32>
      %126 = vector.broadcast %125 : vector<16x1xf32> to vector<16x256xf32>
      %127 = arith.subf %117, %126 : vector<16x256xf32>
      %128 = math.exp %127 : vector<16x256xf32>
      %129 = vector.broadcast %125 : vector<16x1xf32> to vector<16x32xf32>
      %130 = arith.subf %120, %129 : vector<16x32xf32>
      %131 = math.exp %130 : vector<16x32xf32>
      %cst_53 = arith.constant dense<0.000000e+00> : vector<16xf32>
      %132 = vector.multi_reduction <add>, %128, %cst_53 [1] : vector<16x256xf32> to vector<16xf32>
      %133 = vector.shape_cast %132 : vector<16xf32> to vector<16x1xf32>
      %cst_54 = arith.constant dense<0.000000e+00> : vector<16xf32>
      %134 = vector.multi_reduction <add>, %131, %cst_54 [1] : vector<16x32xf32> to vector<16xf32>
      %135 = vector.shape_cast %134 : vector<16xf32> to vector<16x1xf32>
      %136 = arith.addf %133, %135 : vector<16x1xf32>
      %137 = arith.truncf %128 : vector<16x256xf32> to vector<16x256xbf16>
      %cst_55 = arith.constant dense<0.000000e+00> : vector<16x16xf32>
      %138 = tpu.matmul %137, %111, %cst_55 {dimension_numbers = #tpu.dot_dimension_numbers<[1], [0], [0], [1], [0, 0, 1, 1], [], []>} : vector<16x256xbf16>, vector<256x16xbf16>, vector<16x16xf32> -> vector<16x16xf32>
      %139 = arith.truncf %131 : vector<16x32xf32> to vector<16x32xbf16>
      %cst_56 = arith.constant dense<0.000000e+00> : vector<16x16xf32>
      %140 = tpu.matmul %139, %113, %cst_56 {dimension_numbers = #tpu.dot_dimension_numbers<[1], [0], [0], [1], [0, 0, 1, 1], [], []>} : vector<16x32xbf16>, vector<32x16xbf16>, vector<16x16xf32> -> vector<16x16xf32>
      %141 = arith.addf %138, %140 : vector<16x16xf32>
      %142 = tpu.reciprocal %136 {approx = true} : vector<16x1xf32> -> vector<16x1xf32>
      %143 = vector.broadcast %142 : vector<16x1xf32> to vector<16x16xf32>
      %144 = arith.mulf %141, %143 : vector<16x16xf32>
      %145 = vector.extract_strided_slice %70 {offsets = [0, 32], sizes = [16, 16], strides = [1, 1]} : vector<16x64xbf16> to vector<16x16xbf16>
      %146 = vector.extract_strided_slice %67 {offsets = [0, 32], sizes = [256, 16], strides = [1, 1]} : vector<256x128xbf16> to vector<256x16xbf16>
      %147 = vector.extract_strided_slice %67 {offsets = [0, 96], sizes = [256, 16], strides = [1, 1]} : vector<256x128xbf16> to vector<256x16xbf16>
      %148 = vector.extract_strided_slice %71 {offsets = [0, 32], sizes = [32, 16], strides = [1, 1]} : vector<32x64xbf16> to vector<32x16xbf16>
      %149 = vector.extract_strided_slice %72 {offsets = [0, 32], sizes = [32, 16], strides = [1, 1]} : vector<32x64xbf16> to vector<32x16xbf16>
      %cst_57 = arith.constant dense<0.000000e+00> : vector<16x256xf32>
      %150 = tpu.matmul %145, %146, %cst_57 {dimension_numbers = #tpu.dot_dimension_numbers<[1], [1], [0], [0], [0, 0, 1, 0], [], []>} : vector<16x16xbf16>, vector<256x16xbf16>, vector<16x256xf32> -> vector<16x256xf32>
      %151 = vector.extract_strided_slice %54 {offsets = [2, 0], sizes = [1, 256], strides = [1, 1]} : vector<4x256xf32> to vector<1x256xf32>
      %152 = vector.broadcast %151 : vector<1x256xf32> to vector<16x256xf32>
      %153 = arith.mulf %150, %152 : vector<16x256xf32>
      %cst_58 = arith.constant dense<0.000000e+00> : vector<16x32xf32>
      %154 = tpu.matmul %145, %148, %cst_58 {dimension_numbers = #tpu.dot_dimension_numbers<[1], [1], [0], [0], [0, 0, 1, 0], [], []>} : vector<16x16xbf16>, vector<32x16xbf16>, vector<16x32xf32> -> vector<16x32xf32>
      %155 = vector.broadcast %55 : vector<1x32xf32> to vector<16x32xf32>
      %156 = arith.addf %154, %155 : vector<16x32xf32>
      %cst_59 = arith.constant dense<0xFF800000> : vector<16xf32>
      %157 = vector.multi_reduction <maximumf>, %153, %cst_59 [1] : vector<16x256xf32> to vector<16xf32>
      %158 = vector.shape_cast %157 : vector<16xf32> to vector<16x1xf32>
      %cst_60 = arith.constant dense<0xFF800000> : vector<16xf32>
      %159 = vector.multi_reduction <maximumf>, %156, %cst_60 [1] : vector<16x32xf32> to vector<16xf32>
      %160 = vector.shape_cast %159 : vector<16xf32> to vector<16x1xf32>
      %161 = arith.maximumf %158, %160 : vector<16x1xf32>
      %162 = vector.broadcast %161 : vector<16x1xf32> to vector<16x256xf32>
      %163 = arith.subf %153, %162 : vector<16x256xf32>
      %164 = math.exp %163 : vector<16x256xf32>
      %165 = vector.broadcast %161 : vector<16x1xf32> to vector<16x32xf32>
      %166 = arith.subf %156, %165 : vector<16x32xf32>
      %167 = math.exp %166 : vector<16x32xf32>
      %cst_61 = arith.constant dense<0.000000e+00> : vector<16xf32>
      %168 = vector.multi_reduction <add>, %164, %cst_61 [1] : vector<16x256xf32> to vector<16xf32>
      %169 = vector.shape_cast %168 : vector<16xf32> to vector<16x1xf32>
      %cst_62 = arith.constant dense<0.000000e+00> : vector<16xf32>
      %170 = vector.multi_reduction <add>, %167, %cst_62 [1] : vector<16x32xf32> to vector<16xf32>
      %171 = vector.shape_cast %170 : vector<16xf32> to vector<16x1xf32>
      %172 = arith.addf %169, %171 : vector<16x1xf32>
      %173 = arith.truncf %164 : vector<16x256xf32> to vector<16x256xbf16>
      %cst_63 = arith.constant dense<0.000000e+00> : vector<16x16xf32>
      %174 = tpu.matmul %173, %147, %cst_63 {dimension_numbers = #tpu.dot_dimension_numbers<[1], [0], [0], [1], [0, 0, 1, 1], [], []>} : vector<16x256xbf16>, vector<256x16xbf16>, vector<16x16xf32> -> vector<16x16xf32>
      %175 = arith.truncf %167 : vector<16x32xf32> to vector<16x32xbf16>
      %cst_64 = arith.constant dense<0.000000e+00> : vector<16x16xf32>
      %176 = tpu.matmul %175, %149, %cst_64 {dimension_numbers = #tpu.dot_dimension_numbers<[1], [0], [0], [1], [0, 0, 1, 1], [], []>} : vector<16x32xbf16>, vector<32x16xbf16>, vector<16x16xf32> -> vector<16x16xf32>
      %177 = arith.addf %174, %176 : vector<16x16xf32>
      %178 = tpu.reciprocal %172 {approx = true} : vector<16x1xf32> -> vector<16x1xf32>
      %179 = vector.broadcast %178 : vector<16x1xf32> to vector<16x16xf32>
      %180 = arith.mulf %177, %179 : vector<16x16xf32>
      %181 = vector.extract_strided_slice %70 {offsets = [0, 48], sizes = [16, 16], strides = [1, 1]} : vector<16x64xbf16> to vector<16x16xbf16>
      %182 = vector.extract_strided_slice %67 {offsets = [0, 48], sizes = [256, 16], strides = [1, 1]} : vector<256x128xbf16> to vector<256x16xbf16>
      %183 = vector.extract_strided_slice %67 {offsets = [0, 112], sizes = [256, 16], strides = [1, 1]} : vector<256x128xbf16> to vector<256x16xbf16>
      %184 = vector.extract_strided_slice %71 {offsets = [0, 48], sizes = [32, 16], strides = [1, 1]} : vector<32x64xbf16> to vector<32x16xbf16>
      %185 = vector.extract_strided_slice %72 {offsets = [0, 48], sizes = [32, 16], strides = [1, 1]} : vector<32x64xbf16> to vector<32x16xbf16>
      %cst_65 = arith.constant dense<0.000000e+00> : vector<16x256xf32>
      %186 = tpu.matmul %181, %182, %cst_65 {dimension_numbers = #tpu.dot_dimension_numbers<[1], [1], [0], [0], [0, 0, 1, 0], [], []>} : vector<16x16xbf16>, vector<256x16xbf16>, vector<16x256xf32> -> vector<16x256xf32>
      %187 = vector.extract_strided_slice %54 {offsets = [3, 0], sizes = [1, 256], strides = [1, 1]} : vector<4x256xf32> to vector<1x256xf32>
      %188 = vector.broadcast %187 : vector<1x256xf32> to vector<16x256xf32>
      %189 = arith.mulf %186, %188 : vector<16x256xf32>
      %cst_66 = arith.constant dense<0.000000e+00> : vector<16x32xf32>
      %190 = tpu.matmul %181, %184, %cst_66 {dimension_numbers = #tpu.dot_dimension_numbers<[1], [1], [0], [0], [0, 0, 1, 0], [], []>} : vector<16x16xbf16>, vector<32x16xbf16>, vector<16x32xf32> -> vector<16x32xf32>
      %191 = vector.broadcast %55 : vector<1x32xf32> to vector<16x32xf32>
      %192 = arith.addf %190, %191 : vector<16x32xf32>
      %cst_67 = arith.constant dense<0xFF800000> : vector<16xf32>
      %193 = vector.multi_reduction <maximumf>, %189, %cst_67 [1] : vector<16x256xf32> to vector<16xf32>
      %194 = vector.shape_cast %193 : vector<16xf32> to vector<16x1xf32>
      %cst_68 = arith.constant dense<0xFF800000> : vector<16xf32>
      %195 = vector.multi_reduction <maximumf>, %192, %cst_68 [1] : vector<16x32xf32> to vector<16xf32>
      %196 = vector.shape_cast %195 : vector<16xf32> to vector<16x1xf32>
      %197 = arith.maximumf %194, %196 : vector<16x1xf32>
      %198 = vector.broadcast %197 : vector<16x1xf32> to vector<16x256xf32>
      %199 = arith.subf %189, %198 : vector<16x256xf32>
      %200 = math.exp %199 : vector<16x256xf32>
      %201 = vector.broadcast %197 : vector<16x1xf32> to vector<16x32xf32>
      %202 = arith.subf %192, %201 : vector<16x32xf32>
      %203 = math.exp %202 : vector<16x32xf32>
      %cst_69 = arith.constant dense<0.000000e+00> : vector<16xf32>
      %204 = vector.multi_reduction <add>, %200, %cst_69 [1] : vector<16x256xf32> to vector<16xf32>
      %205 = vector.shape_cast %204 : vector<16xf32> to vector<16x1xf32>
      %cst_70 = arith.constant dense<0.000000e+00> : vector<16xf32>
      %206 = vector.multi_reduction <add>, %203, %cst_70 [1] : vector<16x32xf32> to vector<16xf32>
      %207 = vector.shape_cast %206 : vector<16xf32> to vector<16x1xf32>
      %208 = arith.addf %205, %207 : vector<16x1xf32>
      %209 = arith.truncf %200 : vector<16x256xf32> to vector<16x256xbf16>
      %cst_71 = arith.constant dense<0.000000e+00> : vector<16x16xf32>
      %210 = tpu.matmul %209, %183, %cst_71 {dimension_numbers = #tpu.dot_dimension_numbers<[1], [0], [0], [1], [0, 0, 1, 1], [], []>} : vector<16x256xbf16>, vector<256x16xbf16>, vector<16x16xf32> -> vector<16x16xf32>
      %211 = arith.truncf %203 : vector<16x32xf32> to vector<16x32xbf16>
      %cst_72 = arith.constant dense<0.000000e+00> : vector<16x16xf32>
      %212 = tpu.matmul %211, %185, %cst_72 {dimension_numbers = #tpu.dot_dimension_numbers<[1], [0], [0], [1], [0, 0, 1, 1], [], []>} : vector<16x32xbf16>, vector<32x16xbf16>, vector<16x16xf32> -> vector<16x16xf32>
      %213 = arith.addf %210, %212 : vector<16x16xf32>
      %214 = tpu.reciprocal %208 {approx = true} : vector<16x1xf32> -> vector<16x1xf32>
      %215 = vector.broadcast %214 : vector<16x1xf32> to vector<16x16xf32>
      %216 = arith.mulf %213, %215 : vector<16x16xf32>
      %217 = tpu.concatenate %108, %144, %180, %216 in 1 : vector<16x16xf32>, vector<16x16xf32>, vector<16x16xf32>, vector<16x16xf32> -> vector<16x64xf32>
      %218 = arith.truncf %217 : vector<16x64xf32> to vector<16x64xbf16>
      %cst_73 = arith.constant dense<0.000000e+00> : vector<16x32xf32>
      %219 = tpu.matmul %218, %56, %cst_73 {dimension_numbers = #tpu.dot_dimension_numbers<[1], [0], [0], [1], [0, 0, 1, 1], [], []>} : vector<16x64xbf16>, vector<64x32xbf16>, vector<16x32xf32> -> vector<16x32xf32>
      %220 = arith.index_cast %65 : i32 to index
      %c0_74 = arith.constant 0 : index
      %221 = vector.load %arg12[%220, %c0_74] : memref<32x32xf32, #tpu.memory_space<vmem>>, vector<16x32xf32>
      tpu.vector_store %arg12[%220, %c0_74], %219 {strides = array<i32>} : memref<32x32xf32, #tpu.memory_space<vmem>>, vector<16x32xf32>,
    }
    %c2_i32_36 = arith.constant 2 : i32
    return
  }
  func.func @transform_0(%arg0: i32) -> (i32, i32) {
    %c0_i32 = arith.constant 0 : i32
    %c0_i32_0 = arith.constant 0 : i32
    return %arg0, %c0_i32 : i32, i32
  }
  func.func @transform_1(%arg0: i32) -> (i32, i32) {
    %c0_i32 = arith.constant 0 : i32
    %c0_i32_0 = arith.constant 0 : i32
    return %arg0, %c0_i32 : i32, i32
  }
  func.func @transform_2(%arg0: i32) -> (i32, i32) {
    %c0_i32 = arith.constant 0 : i32
    %c0_i32_0 = arith.constant 0 : i32
    %c0_i32_1 = arith.constant 0 : i32
    return %c0_i32, %c0_i32_0 : i32, i32
  }
  func.func @transform_3(%arg0: i32) -> (i32, i32) {
    %c0_i32 = arith.constant 0 : i32
    %c0_i32_0 = arith.constant 0 : i32
    %c0_i32_1 = arith.constant 0 : i32
    return %c0_i32, %c0_i32_0 : i32, i32
  }
  func.func @transform_4(%arg0: i32) -> (i32, i32) {
    %c0_i32 = arith.constant 0 : i32
    %c0_i32_0 = arith.constant 0 : i32
    %c0_i32_1 = arith.constant 0 : i32
    return %c0_i32, %c0_i32_0 : i32, i32
  }
  func.func @transform_5(%arg0: i32) -> (i32, i32) {
    %c0_i32 = arith.constant 0 : i32
    %c0_i32_0 = arith.constant 0 : i32
    %c0_i32_1 = arith.constant 0 : i32
    return %c0_i32, %c0_i32_0 : i32, i32
  }
  func.func @transform_6(%arg0: i32) -> (i32, i32) {
    %c0_i32 = arith.constant 0 : i32
    %c0_i32_0 = arith.constant 0 : i32
    %c0_i32_1 = arith.constant 0 : i32
    return %c0_i32, %c0_i32_0 : i32, i32
  }
  func.func @transform_7(%arg0: i32) -> (i32, i32) {
    %c0_i32 = arith.constant 0 : i32
    %c0_i32_0 = arith.constant 0 : i32
    %c0_i32_1 = arith.constant 0 : i32
    return %c0_i32, %c0_i32_0 : i32, i32
  }
  func.func @transform_8(%arg0: i32) -> (i32, i32) {
    %c0_i32 = arith.constant 0 : i32
    %c0_i32_0 = arith.constant 0 : i32
    %c0_i32_1 = arith.constant 0 : i32
    return %c0_i32, %c0_i32_0 : i32, i32
  }
  func.func @transform_9(%arg0: i32) -> (i32, i32) {
    %c0_i32 = arith.constant 0 : i32
    %c0_i32_0 = arith.constant 0 : i32
    %c0_i32_1 = arith.constant 0 : i32
    return %c0_i32, %c0_i32_0 : i32, i32
  }
  func.func @transform_10(%arg0: i32) -> (i32, i32) {
    %c0_i32 = arith.constant 0 : i32
    %c0_i32_0 = arith.constant 0 : i32
    %c0_i32_1 = arith.constant 0 : i32
    return %c0_i32, %c0_i32_0 : i32, i32
  }
  func.func @transform_11(%arg0: i32) -> (i32, i32) {
    %c0_i32 = arith.constant 0 : i32
    %c0_i32_0 = arith.constant 0 : i32
    return %arg0, %c0_i32 : i32, i32
  }
}

</mosaic_0001>

<bundles_post_ra>
// kernel: tpu_custom_call.1
= control target key start
LH: loop header
LB: loop body
LE: loop exit
PB: predicated region body
PF: predicated region fallthrough
CT: control target
= control target key end

     0   :  { %s4864_s17 = smov 0   ;;  %s6788_s0 = inlined_call_operand.vmem [shape: f32[1024,32], index: 0, kind: input, shape index: {}]   ;;  %s6789_s1 = inlined_call_operand.vmem [shape: f32[128,32], index: 1, kind: input, shape index: {}]   ;;  %s6790_s2 = inlined_call_operand.vmem [shape: bf16[32,128], index: 2, kind: input, shape index: {}]   ;;  %s6791_s3 = inlined_call_operand.vmem [shape: bf16[32,192], index: 3, kind: input, shape index: {}]   ;;  %s6792_s4 = inlined_call_operand.vmem [shape: bf16[64,32], index: 4, kind: input, shape index: {}]   ;;  %s6793_s5 = inlined_call_operand.vmem [shape: f32[1,32], index: 5, kind: input, shape index: {}]   ;;  %s6794_s6 = inlined_call_operand.vmem [shape: f32[1,32], index: 6, kind: input, shape index: {}]   ;;  %s6795_s7 = inlined_call_operand.vmem [shape: f32[64,32], index: 7, kind: input, shape index: {}]   ;;  %s6796_s8 = inlined_call_operand.vmem [shape: f32[64,32], index: 8, kind: input, shape index: {}]   ;;  %s6797_s9 = inlined_call_operand.vmem [shape: f32[4,256], index: 9, kind: input, shape index: {}]   ;;  %s6798_s10 = inlined_call_operand.vmem [shape: f32[1,32], index: 10, kind: input, shape index: {}]   ;;  %s6799_s11 = inlined_call_operand.vmem [shape: f32[64,32], index: 11, kind: output, shape index: {}]  }
   0x1 LB: > { %s4870_s18 = sadd.s32 4294967295, %s4788_s17   ;;  %p4018_p0 = scmp.ge.s32.totalorder %s4788_s17, 1  ;;  %s4788_s17 = sphi %s4864_s17, %s21_s17  }
   0x2   : > { %p349_p1 = scmp.lt.s32.totalorder %s4788_s17, 3 }
   0x4   : > { %p350_p2 = pnand %p4018_p0, %p349_p1 }
   0x6   : > { %353 = sbr.rel (%p350_p2) target bundleno = 3244 (0xcac), region = 64 }
   0xd   : > { %s4019_s19 = sshll.u32 %s4870_s18, 6  ;;  %vm479_vm0 = vcmask 261120   ;;  %s4021_s24 = sshll.u32 %s4870_s18, 3  ;;  %vm2216_vm1 = vcmask 523264  }
   0xe   : > { %p395_p3 = scmp.lt.s32.totalorder %s4019_s19, 127  ;;  %p401_p4 = scmp.lt.s32.totalorder %s4021_s24, 15 }
   0xf   : > { %s4023_s14 = sshll.u32 %s4870_s18, 2 }
  0x10   : > { %s6954_s19 = smov (!%p395_p3, %s4019_s19), 127  ;;  %s6956_s24 = smov (!%p401_p4, %s4021_s24), 15 }
  0x11   : > { %s4020_s20 = sshll.u32 %s6954_s19, 3  ;;  %s4022_s25 = sshll.u32 %s6956_s24, 3 }
  0x12   : > { %s4878_s23 = scalar_lea.vmem %s6788_s0, %s4020_s20  ;;  %s5140_s28 = scalar_lea.vmem %s6789_s1, %s4022_s25 }
  0x13   : > { %v4881_v0 = vld [vmem:[%s4878_s23] sm:$0xff]  ;;  %v4887_v2 = vld [vmem:[%s4878_s23 + $0x8] sm:$0xff]  ;;  %v4901_v8 = vld [vmem:[%s4878_s23 + $0x10] sm:$0xff]  ;;  %p407_p5 = scmp.lt.s32.totalorder %s4023_s14, 7  ;;  %s6064_s20 = smov 0  }
  0x14   : > { %v4884_v1 = vld [vmem:[%s4878_s23 + $0x140] sm:$0xff]  ;;  %v480_v3 = vsel %vm479_vm0, %v4881_v0, 0.0  ;;  %v4894_v5 = vld [vmem:[%s4878_s23 + $0x148] sm:$0xff]  ;;  %v483_v6 = vsel %vm479_vm0, %v4887_v2, 0.0  ;;  %v4904_v9 = vld [vmem:[%s4878_s23 + $0x18] sm:$0xff]  ;;  %v486_v10 = vsel %vm479_vm0, %v4901_v8, 0.0 }
  0x15   : > { %v600_v4 = vsel %vm479_vm0, %v4884_v1, 0.0  ;;  %481 = vadd.xlane.f32.xlu0 %v480_v3  ;;  %v603_v7 = vsel %vm479_vm0, %v4894_v5, 0.0  ;;  %v489_v11 = vsel %vm479_vm0, %v4904_v9, 0.0  ;;  %v4911_v12 = vld [vmem:[%s4878_s23 + $0x150] sm:$0xff]  ;;  %v4914_v13 = vld [vmem:[%s4878_s23 + $0x158] sm:$0xff]  ;;  %v4921_v16 = vld [vmem:[%s4878_s23 + $0x20] sm:$0xff] }
  0x16   : > { %601 = vadd.xlane.f32.xlu1 %v600_v4  ;;  %v606_v14 = vsel %vm479_vm0, %v4911_v12, 0.0  ;;  %v609_v15 = vsel %vm479_vm0, %v4914_v13, 0.0  ;;  %v4924_v17 = vld [vmem:[%s4878_s23 + $0x28] sm:$0xff]  ;;  %v492_v18 = vsel %vm479_vm0, %v4921_v16, 0.0  ;;  %v4931_v20 = vld [vmem:[%s4878_s23 + $0x160] sm:$0xff]  ;;  %v4941_v24 = vld [vmem:[%s4878_s23 + $0x30] sm:$0xff] }
  0x17   : > { %v495_v19 = vsel %vm479_vm0, %v4924_v17, 0.0  ;;  %v4934_v21 = vld [vmem:[%s4878_s23 + $0x168] sm:$0xff]  ;;  %v612_v22 = vsel %vm479_vm0, %v4931_v20, 0.0  ;;  %v4944_v25 = vld [vmem:[%s4878_s23 + $0x38] sm:$0xff]  ;;  %v498_v26 = vsel %vm479_vm0, %v4941_v24, 0.0  ;;  %v4951_v28 = vld [vmem:[%s4878_s23 + $0x170] sm:$0xff] }
  0x18   : > { %v615_v23 = vsel %vm479_vm0, %v4934_v21, 0.0  ;;  %v501_v27 = vsel %vm479_vm0, %v4944_v25, 0.0  ;;  %v4954_v29 = vld [vmem:[%s4878_s23 + $0x178] sm:$0xff]  ;;  %v618_v30 = vsel %vm479_vm0, %v4951_v28, 0.0  ;;  %v4961_v32 = vld [vmem:[%s4878_s23 + $0x40] sm:$0xff]  ;;  %v4964_v33 = vld [vmem:[%s4878_s23 + $0x48] sm:$0xff] }
  0x19   : > { %484 = vadd.xlane.f32.xlu0 %v483_v6  ;;  %v621_v31 = vsel %vm479_vm0, %v4954_v29, 0.0  ;;  %v504_v34 = vsel %vm479_vm0, %v4961_v32, 0.0  ;;  %v507_v35 = vsel %vm479_vm0, %v4964_v33, 0.0  ;;  %v4971_v36 = vld [vmem:[%s4878_s23 + $0x180] sm:$0xff]  ;;  %v4974_v37 = vld [vmem:[%s4878_s23 + $0x188] sm:$0xff]  ;;  %v4981_v40 = vld [vmem:[%s4878_s23 + $0x50] sm:$0xff] }
  0x1a   : > { %604 = vadd.xlane.f32.xlu1 %v603_v7  ;;  %v624_v38 = vsel %vm479_vm0, %v4971_v36, 0.0  ;;  %v627_v39 = vsel %vm479_vm0, %v4974_v37, 0.0  ;;  %v4984_v41 = vld [vmem:[%s4878_s23 + $0x58] sm:$0xff]  ;;  %v510_v42 = vsel %vm479_vm0, %v4981_v40, 0.0  ;;  %v4991_v44 = vld [vmem:[%s4878_s23 + $0x190] sm:$0xff]  ;;  %v5001_v48 = vld [vmem:[%s4878_s23 + $0x60] sm:$0xff] }
  0x1b   : > { %v513_v43 = vsel %vm479_vm0, %v4984_v41, 0.0  ;;  %v4994_v45 = vld [vmem:[%s4878_s23 + $0x198] sm:$0xff]  ;;  %v630_v46 = vsel %vm479_vm0, %v4991_v44, 0.0  ;;  %v5004_v49 = vld [vmem:[%s4878_s23 + $0x68] sm:$0xff]  ;;  %v516_v50 = vsel %vm479_vm0, %v5001_v48, 0.0  ;;  %v5011_v52 = vld [vmem:[%s4878_s23 + $0x1a0] sm:$0xff] }
  0x1c   : > { %v633_v47 = vsel %vm479_vm0, %v4994_v45, 0.0  ;;  %v519_v51 = vsel %vm479_vm0, %v5004_v49, 0.0  ;;  %v5014_v53 = vld [vmem:[%s4878_s23 + $0x1a8] sm:$0xff]  ;;  %v636_v54 = vsel %vm479_vm0, %v5011_v52, 0.0  ;;  %v5021_v56 = vld [vmem:[%s4878_s23 + $0x70] sm:$0xff]  ;;  %v5024_v57 = vld [vmem:[%s4878_s23 + $0x78] sm:$0xff] }
  0x1d   : > { %487 = vadd.xlane.f32.xlu0 %v486_v10  ;;  %v639_v55 = vsel %vm479_vm0, %v5014_v53, 0.0  ;;  %v522_v58 = vsel %vm479_vm0, %v5021_v56, 0.0  ;;  %v525_v59 = vsel %vm479_vm0, %v5024_v57, 0.0  ;;  %v5031_v60 = vld [vmem:[%s4878_s23 + $0x1b0] sm:$0xff]  ;;  %v5034_v61 = vld [vmem:[%s4878_s23 + $0x1b8] sm:$0xff]  ;;  %v5041_v3 = vld [vmem:[%s4878_s23 + $0x80] sm:$0xff] }
  0x1e   : > { %490 = vadd.xlane.f32.xlu1 %v489_v11  ;;  %v642_v62 = vsel %vm479_vm0, %v5031_v60, 0.0  ;;  %v645_v63 = vsel %vm479_vm0, %v5034_v61, 0.0  ;;  %v5044_v4 = vld [vmem:[%s4878_s23 + $0x88] sm:$0xff]  ;;  %v528_v6 = vsel %vm479_vm0, %v5041_v3, 0.0  ;;  %v5051_v10 = vld [vmem:[%s4878_s23 + $0x1c0] sm:$0xff]  ;;  %s6958_s14 = smov (!%p407_p5, %s4023_s14), 7 }
  0x1f   : > { %v531_v7 = vsel %vm479_vm0, %v5044_v4, 0.0  ;;  %v5054_v11 = vld [vmem:[%s4878_s23 + $0x1c8] sm:$0xff]  ;;  %s4024_s15 = sshll.u32 %s6958_s14, 3 }
  0x20   : > { %s5454_s19 = scalar_lea.vmem %s6799_s11, %s4024_s15 }
  0x21   : > { %607 = vadd.xlane.f32.xlu0 %v606_v14  ;;  %v648_v14 = vsel %vm479_vm0, %v5051_v10, 0.0 }
  0x22   : > { %610 = vadd.xlane.f32.xlu1 %v609_v15  ;;  %v651_v15 = vsel %vm479_vm0, %v5054_v11, 0.0 }
  0x25   : > { %493 = vadd.xlane.f32.xlu0 %v492_v18  ;;  %v5061_v18 = vld [vmem:[%s4878_s23 + $0x90] sm:$0xff] }
  0x26   : > { %496 = vadd.xlane.f32.xlu1 %v495_v19  ;;  %v5064_v19 = vld [vmem:[%s4878_s23 + $0x98] sm:$0xff] }
  0x29   : > { %613 = vadd.xlane.f32.xlu0 %v612_v22  ;;  %v534_v22 = vsel %vm479_vm0, %v5061_v18, 0.0 }
  0x2a   : > { %616 = vadd.xlane.f32.xlu1 %v615_v23  ;;  %v537_v23 = vsel %vm479_vm0, %v5064_v19, 0.0 }
  0x2d   : > { %499 = vadd.xlane.f32.xlu0 %v498_v26  ;;  %v5071_v26 = vld [vmem:[%s4878_s23 + $0x1d0] sm:$0xff] }
  0x2e   : > { %502 = vadd.xlane.f32.xlu1 %v501_v27  ;;  %v5074_v27 = vld [vmem:[%s4878_s23 + $0x1d8] sm:$0xff] }
  0x31   : > { %619 = vadd.xlane.f32.xlu0 %v618_v30  ;;  %v654_v30 = vsel %vm479_vm0, %v5071_v26, 0.0 }
  0x32   : > { %622 = vadd.xlane.f32.xlu1 %v621_v31  ;;  %v657_v31 = vsel %vm479_vm0, %v5074_v27, 0.0 }
  0x35   : > { %505 = vadd.xlane.f32.xlu0 %v504_v34  ;;  %v5081_v34 = vld [vmem:[%s4878_s23 + $0xa0] sm:$0xff] }
  0x36   : > { %508 = vadd.xlane.f32.xlu1 %v507_v35  ;;  %v5084_v35 = vld [vmem:[%s4878_s23 + $0xa8] sm:$0xff] }
  0x39   : > { %625 = vadd.xlane.f32.xlu0 %v624_v38  ;;  %v540_v38 = vsel %vm479_vm0, %v5081_v34, 0.0 }
  0x3a   : > { %628 = vadd.xlane.f32.xlu1 %v627_v39  ;;  %v543_v39 = vsel %vm479_vm0, %v5084_v35, 0.0 }
  0x3d   : > { %511 = vadd.xlane.f32.xlu0 %v510_v42  ;;  %v5091_v42 = vld [vmem:[%s4878_s23 + $0x1e0] sm:$0xff] }
  0x3e   : > { %514 = vadd.xlane.f32.xlu1 %v513_v43  ;;  %v5094_v43 = vld [vmem:[%s4878_s23 + $0x1e8] sm:$0xff] }
  0x41   : > { %631 = vadd.xlane.f32.xlu0 %v630_v46  ;;  %v660_v46 = vsel %vm479_vm0, %v5091_v42, 0.0 }
  0x42   : > { %634 = vadd.xlane.f32.xlu1 %v633_v47  ;;  %v663_v47 = vsel %vm479_vm0, %v5094_v43, 0.0 }
  0x45   : > { %517 = vadd.xlane.f32.xlu0 %v516_v50  ;;  %v5102_v50 = vld [vmem:[%s4878_s23 + $0xb0] sm:$0xff] }
  0x46   : > { %520 = vadd.xlane.f32.xlu1 %v519_v51  ;;  %v5105_v51 = vld [vmem:[%s4878_s23 + $0xb8] sm:$0xff] }
  0x49   : > { %637 = vadd.xlane.f32.xlu0 %v636_v54  ;;  %v546_v54 = vsel %vm479_vm0, %v5102_v50, 0.0 }
  0x4a   : > { %640 = vadd.xlane.f32.xlu1 %v639_v55  ;;  %v549_v55 = vsel %vm479_vm0, %v5105_v51, 0.0 }
  0x4d   : > { %523 = vadd.xlane.f32.xlu0 %v522_v58  ;;  %v5112_v58 = vld [vmem:[%s4878_s23 + $0x1f0] sm:$0xff] }
  0x4e   : > { %526 = vadd.xlane.f32.xlu1 %v525_v59  ;;  %v5115_v59 = vld [vmem:[%s4878_s23 + $0x1f8] sm:$0xff] }
  0x51   : > { %643 = vadd.xlane.f32.xlu0 %v642_v62  ;;  %v666_v62 = vsel %vm479_vm0, %v5112_v58, 0.0 }
  0x52   : > { %646 = vadd.xlane.f32.xlu1 %v645_v63  ;;  %v669_v63 = vsel %vm479_vm0, %v5115_v59, 0.0 }
  0x55   : > { %529 = vadd.xlane.f32.xlu0 %v528_v6  ;;  %v5122_v6 = vld [vmem:[%s4878_s23 + $0xc0] sm:$0xff] }
  0x56   : > { %532 = vadd.xlane.f32.xlu1 %v531_v7  ;;  %v5125_v7 = vld [vmem:[%s4878_s23 + $0xc8] sm:$0xff] }
  0x59   : > { %649 = vadd.xlane.f32.xlu0 %v648_v14  ;;  %v552_v14 = vsel %vm479_vm0, %v5122_v6, 0.0 }
  0x5a   : > { %652 = vadd.xlane.f32.xlu1 %v651_v15  ;;  %v555_v15 = vsel %vm479_vm0, %v5125_v7, 0.0 }
  0x5d   : > { %535 = vadd.xlane.f32.xlu0 %v534_v22  ;;  %v5132_v22 = vld [vmem:[%s4878_s23 + $0xd0] sm:$0xff] }
  0x5e   : > { %538 = vadd.xlane.f32.xlu1 %v537_v23  ;;  %6851 = vst [vmem:[#allocation4_spill] sm:$0xff] %v5132_v22  ;;  %v5135_v23 = vld [vmem:[%s4878_s23 + $0xd8] sm:$0xff] }
  0x5f   : > { %6852 = vst [vmem:[#allocation5_spill] sm:$0xff] %v5135_v23 }
  0x61   : > { %655 = vadd.xlane.f32.xlu0 %v654_v30  ;;  %v558_v30 = vsel %vm479_vm0, %v5132_v22, 0.0 }
  0x62   : > { %658 = vadd.xlane.f32.xlu1 %v657_v31  ;;  %v561_v31 = vsel %vm479_vm0, %v5135_v23, 0.0 }
  0x65   : > { %541 = vadd.xlane.f32.xlu0 %v540_v38  ;;  %v5147_v38 = vld [vmem:[%s5140_s28] sm:$0xff] }
  0x66   : > { %544 = vadd.xlane.f32.xlu1 %v543_v39  ;;  %6853 = vst [vmem:[#allocation6_spill] sm:$0xff] %v5147_v38  ;;  %v5150_v39 = vld [vmem:[%s5140_s28 + $0x8] sm:$0xff] }
  0x67   : > { %6854 = vst [vmem:[#allocation7_spill] sm:$0xff] %v5150_v39 }
  0x69   : > { %661 = vadd.xlane.f32.xlu0 %v660_v46  ;;  %v1974_v46 = vsel %vm479_vm0, %v5147_v38, 0.0 }
  0x6a   : > { %664 = vadd.xlane.f32.xlu1 %v663_v47  ;;  %v1977_v47 = vsel %vm479_vm0, %v5150_v39, 0.0 }
  0x6d   : > { %547 = vadd.xlane.f32.xlu0 %v546_v54  ;;  %v5157_v54 = vld [vmem:[%s4878_s23 + $0xe0] sm:$0xff] }
  0x6e   : > { %550 = vadd.xlane.f32.xlu1 %v549_v55  ;;  %6855 = vst [vmem:[#allocation8_spill] sm:$0xff] %v5157_v54  ;;  %v5160_v55 = vld [vmem:[%s4878_s23 + $0xe8] sm:$0xff] }
  0x6f   : > { %6856 = vst [vmem:[#allocation9_spill] sm:$0xff] %v5160_v55 }
  0x71   : > { %667 = vadd.xlane.f32.xlu0 %v666_v62  ;;  %v564_v62 = vsel %vm479_vm0, %v5157_v54, 0.0  ;;  %v5230_v54 = vld [vmem:[%s4878_s23 + $0x138] sm:$0xff] }
  0x72   : > { %670 = vadd.xlane.f32.xlu1 %v669_v63  ;;  %v567_v63 = vsel %vm479_vm0, %v5160_v55, 0.0  ;;  %v5187_v55 = vld [vmem:[%s4878_s23 + $0x100] sm:$0xff]  ;;  %6870 = vst [vmem:[#allocation23_spill] sm:$0xff] %v5230_v54 }
  0x73   : > { %6861 = vst [vmem:[#allocation14_spill] sm:$0xff] %v5187_v55 }
  0x75   : > { %553 = vadd.xlane.f32.xlu0 %v552_v14  ;;  %v5167_v14 = vld [vmem:[%s4878_s23 + $0xf0] sm:$0xff] }
  0x76   : > { %556 = vadd.xlane.f32.xlu1 %v555_v15  ;;  %6857 = vst [vmem:[#allocation10_spill] sm:$0xff] %v5167_v14  ;;  %v5170_v15 = vld [vmem:[%s4878_s23 + $0xf8] sm:$0xff] }
  0x77   : > { %6858 = vst [vmem:[#allocation11_spill] sm:$0xff] %v5170_v15 }
  0x79   : > { %559 = vadd.xlane.f32.xlu0 %v558_v30  ;;  %v570_v30 = vsel %vm479_vm0, %v5167_v14, 0.0  ;;  %v5190_v14 = vld [vmem:[%s4878_s23 + $0x108] sm:$0xff] }
  0x7a   : > { %562 = vadd.xlane.f32.xlu1 %v561_v31  ;;  %v573_v31 = vsel %vm479_vm0, %v5170_v15, 0.0  ;;  %6862 = vst [vmem:[#allocation15_spill] sm:$0xff] %v5190_v14  ;;  %v5197_v15 = vld [vmem:[%s4878_s23 + $0x110] sm:$0xff] }
  0x7b   : > { %6863 = vst [vmem:[#allocation16_spill] sm:$0xff] %v5197_v15 }
  0x7d   : > { %1975 = vadd.xlane.f32.xlu0 %v1974_v46  ;;  %v5177_v46 = vld [vmem:[%s5140_s28 + $0x10] sm:$0xff] }
  0x7e   : > { %1978 = vadd.xlane.f32.xlu1 %v1977_v47  ;;  %6859 = vst [vmem:[#allocation12_spill] sm:$0xff] %v5177_v46  ;;  %v5180_v47 = vld [vmem:[%s5140_s28 + $0x18] sm:$0xff] }
  0x7f   : > { %6860 = vst [vmem:[#allocation13_spill] sm:$0xff] %v5180_v47 }
  0x81   : > { %565 = vadd.xlane.f32.xlu0 %v564_v62  ;;  %v1980_v62 = vsel %vm479_vm0, %v5177_v46, 0.0  ;;  %v5200_v46 = vld [vmem:[%s4878_s23 + $0x118] sm:$0xff] }
  0x82   : > { %568 = vadd.xlane.f32.xlu1 %v567_v63  ;;  %v1983_v63 = vsel %vm479_vm0, %v5180_v47, 0.0  ;;  %6864 = vst [vmem:[#allocation17_spill] sm:$0xff] %v5200_v46  ;;  %v5207_v47 = vld [vmem:[%s5140_s28 + $0x20] sm:$0xff] }
  0x83   : > { %6865 = vst [vmem:[#allocation18_spill] sm:$0xff] %v5207_v47 }
  0x85   : > { %571 = vadd.xlane.f32.xlu0 %v570_v30  ;;  %v576_v30 = vsel %vm479_vm0, %v5187_v55, 0.0  ;;  %v5210_v55 = vld [vmem:[%s5140_s28 + $0x28] sm:$0xff] }
  0x86   : > { %574 = vadd.xlane.f32.xlu1 %v573_v31  ;;  %v579_v31 = vsel %vm479_vm0, %v5190_v14, 0.0  ;;  %6866 = vst [vmem:[#allocation19_spill] sm:$0xff] %v5210_v55  ;;  %v5217_v14 = vld [vmem:[%s4878_s23 + $0x120] sm:$0xff] }
  0x87   : > { %6867 = vst [vmem:[#allocation20_spill] sm:$0xff] %v5217_v14 }
  0x89   : > { %1981 = vadd.xlane.f32.xlu0 %v1980_v62  ;;  %v582_v62 = vsel %vm479_vm0, %v5197_v15, 0.0  ;;  %v5220_v15 = vld [vmem:[%s4878_s23 + $0x128] sm:$0xff] }
  0x8a   : > { %1984 = vadd.xlane.f32.xlu1 %v1983_v63  ;;  %v585_v63 = vsel %vm479_vm0, %v5200_v46, 0.0  ;;  %6868 = vst [vmem:[#allocation21_spill] sm:$0xff] %v5220_v15  ;;  %v588_v46 = vsel %vm479_vm0, %v5217_v14, 0.0 }
  0x8d   : > { %577 = vadd.xlane.f32.xlu0 %v576_v30  ;;  %v1986_v30 = vsel %vm479_vm0, %v5207_v47, 0.0  ;;  %v597_v47 = vsel %vm479_vm0, %v5230_v54, 0.0 }
  0x8e   : > { %580 = vadd.xlane.f32.xlu1 %v579_v31  ;;  %v1989_v31 = vsel %vm479_vm0, %v5210_v55, 0.0 }
  0x91   : > { %583 = vadd.xlane.f32.xlu0 %v582_v62  ;;  %v591_v62 = vsel %vm479_vm0, %v5220_v15, 0.0 }
  0x92   : > { %586 = vadd.xlane.f32.xlu1 %v585_v63  ;;  %v5227_v63 = vld [vmem:[%s4878_s23 + $0x130] sm:$0xff] }
  0x93   : > { %6869 = vst [vmem:[#allocation22_spill] sm:$0xff] %v5227_v63  ;;  %v594_v55 = vsel %vm479_vm0, %v5227_v63, 0.0 }
  0x95   : > { %1987 = vadd.xlane.f32.xlu0 %v1986_v30  ;;  %v5237_v30 = vld [vmem:[%s5140_s28 + $0x30] sm:$0xff] }
  0x96   : > { %1990 = vadd.xlane.f32.xlu1 %v1989_v31  ;;  %6871 = vst [vmem:[#allocation24_spill] sm:$0xff] %v5237_v30  ;;  %v5240_v31 = vld [vmem:[%s5140_s28 + $0x38] sm:$0xff]  ;;  %v1992_v15 = vsel %vm479_vm0, %v5237_v30, 0.0 }
  0x97   : > { %v1995_v14 = vsel %vm479_vm0, %v5240_v31, 0.0 }
  0x99   : > { %589 = vadd.xlane.f32.xlu0 %v588_v46 }
  0x9a   : > { %592 = vadd.xlane.f32.xlu1 %v591_v62 }
  0x9d   : > { %595 = vadd.xlane.f32.xlu0 %v594_v55 }
  0x9e   : > { %598 = vadd.xlane.f32.xlu1 %v597_v47 }
  0xa1   : > { %1993 = vadd.xlane.f32.xlu0 %v1992_v15 }
  0xa2   : > { %1996 = vadd.xlane.f32.xlu1 %v1995_v14  ;;  %v482_v46 = vpop.xlane.xlu0 %481 }
  0xa3   : > { %v602_v62 = vpop.xlane.xlu1 %601  ;;  %v673_v63 = vmul.f32 0.03125, %v482_v46 }
  0xa4   : > { %v713_v39 = vmul.f32 0.03125, %v602_v62 }
  0xa5   : > { %v5247_v54 = vsub.f32 %v4881_v0, %v673_v63 }
  0xa6   : > { %v5250_v38 = vsub.f32 %v4884_v1, %v713_v39  ;;  %v485_v55 = vpop.xlane.xlu0 %484 }
  0xa7   : > { %v605_v47 = vpop.xlane.xlu1 %604  ;;  %v674_v23 = vmul.f32 0.03125, %v485_v55  ;;  %v801_v30 = vmul.f32 %v5247_v54, %v5247_v54 }
  0xa8   : > { %6872 = vst [vmem:[#allocation25_spill] sm:$0xff] %v5250_v38  ;;  %v714_v22 = vmul.f32 0.03125, %v605_v47  ;;  %v841_v14 = vmul.f32 %v5250_v38, %v5250_v38 }
  0xa9   : > { %v5257_v15 = vsub.f32 %v4887_v2, %v674_v23  ;;  %v865_v0 = vsel %vm479_vm0, %v801_v30, 0.0 }
  0xaa   : > { %v5260_v46 = vsub.f32 %v4894_v5, %v714_v22  ;;  %866 = vadd.xlane.f32.xlu0 %v865_v0  ;;  %v488_v1 = vpop.xlane.xlu0 %487  ;;  %v985_v63 = vsel %vm479_vm0, %v841_v14, 0.0 }
  0xab   : > { %v491_v39 = vpop.xlane.xlu1 %490  ;;  %v675_v62 = vmul.f32 0.03125, %v488_v1  ;;  %v802_v47 = vmul.f32 %v5257_v15, %v5257_v15 }
  0xac   : > { %v676_v55 = vmul.f32 0.03125, %v491_v39  ;;  %v842_v38 = vmul.f32 %v5260_v46, %v5260_v46 }
  0xad   : > { %v5269_v2 = vsub.f32 %v4901_v8, %v675_v62  ;;  %v868_v22 = vsel %vm479_vm0, %v802_v47, 0.0 }
  0xae   : > { %v5272_v5 = vsub.f32 %v4904_v9, %v676_v55  ;;  %986 = vadd.xlane.f32.xlu0 %v985_v63  ;;  %869 = vadd.xlane.f32.xlu1 %v868_v22  ;;  %v608_v23 = vpop.xlane.xlu0 %607  ;;  %v988_v14 = vsel %vm479_vm0, %v842_v38, 0.0 }
  0xaf   : > { %v611_v30 = vpop.xlane.xlu1 %610  ;;  %v715_v0 = vmul.f32 0.03125, %v608_v23  ;;  %v803_v39 = vmul.f32 %v5269_v2, %v5269_v2 }
  0xb0   : > { %v716_v1 = vmul.f32 0.03125, %v611_v30  ;;  %v804_v8 = vmul.f32 %v5272_v5, %v5272_v5 }
  0xb1   : > { %v5281_v62 = vsub.f32 %v4911_v12, %v715_v0  ;;  %v871_v63 = vsel %vm479_vm0, %v803_v39, 0.0 }
  0xb2   : > { %v5284_v9 = vsub.f32 %v4914_v13, %v716_v1  ;;  %989 = vadd.xlane.f32.xlu1 %v988_v14  ;;  %872 = vadd.xlane.f32.xlu0 %v871_v63  ;;  %v494_v55 = vpop.xlane.xlu0 %493  ;;  %v874_v47 = vsel %vm479_vm0, %v804_v8, 0.0 }
  0xb3   : > { %v497_v38 = vpop.xlane.xlu1 %496  ;;  %v677_v22 = vmul.f32 0.03125, %v494_v55  ;;  %v843_v30 = vmul.f32 %v5281_v62, %v5281_v62 }
  0xb4   : > { %v678_v23 = vmul.f32 0.03125, %v497_v38  ;;  %v844_v12 = vmul.f32 %v5284_v9, %v5284_v9 }
  0xb5   : > { %v5293_v0 = vsub.f32 %v4921_v16, %v677_v22  ;;  %v991_v14 = vsel %vm479_vm0, %v843_v30, 0.0 }
  0xb6   : > { %v5296_v13 = vsub.f32 %v4924_v17, %v678_v23  ;;  %875 = vadd.xlane.f32.xlu1 %v874_v47  ;;  %992 = vadd.xlane.f32.xlu0 %v991_v14  ;;  %v614_v1 = vpop.xlane.xlu0 %613  ;;  %v994_v8 = vsel %vm479_vm0, %v844_v12, 0.0 }
  0xb7   : > { %v617_v39 = vpop.xlane.xlu1 %616  ;;  %v717_v63 = vmul.f32 0.03125, %v614_v1  ;;  %v805_v38 = vmul.f32 %v5293_v0, %v5293_v0 }
  0xb8   : > { %v718_v55 = vmul.f32 0.03125, %v617_v39  ;;  %v806_v16 = vmul.f32 %v5296_v13, %v5296_v13 }
  0xb9   : > { %v5305_v22 = vsub.f32 %v4931_v20, %v717_v63  ;;  %v877_v47 = vsel %vm479_vm0, %v805_v38, 0.0 }
  0xba   : > { %v5308_v17 = vsub.f32 %v4934_v21, %v718_v55  ;;  %995 = vadd.xlane.f32.xlu1 %v994_v8  ;;  %878 = vadd.xlane.f32.xlu0 %v877_v47  ;;  %v500_v23 = vpop.xlane.xlu0 %499  ;;  %v880_v12 = vsel %vm479_vm0, %v806_v16, 0.0 }
  0xbb   : > { %v503_v30 = vpop.xlane.xlu1 %502  ;;  %v679_v14 = vmul.f32 0.03125, %v500_v23  ;;  %v845_v39 = vmul.f32 %v5305_v22, %v5305_v22 }
  0xbc   : > { %v680_v1 = vmul.f32 0.03125, %v503_v30  ;;  %v846_v20 = vmul.f32 %v5308_v17, %v5308_v17 }
  0xbd   : > { %v5317_v63 = vsub.f32 %v4941_v24, %v679_v14  ;;  %v997_v8 = vsel %vm479_vm0, %v845_v39, 0.0 }
  0xbe   : > { %v5320_v21 = vsub.f32 %v4944_v25, %v680_v1  ;;  %881 = vadd.xlane.f32.xlu1 %v880_v12  ;;  %998 = vadd.xlane.f32.xlu0 %v997_v8  ;;  %v620_v55 = vpop.xlane.xlu0 %619  ;;  %v1000_v16 = vsel %vm479_vm0, %v846_v20, 0.0 }
  0xbf   : > { %v623_v38 = vpop.xlane.xlu1 %622  ;;  %v719_v47 = vmul.f32 0.03125, %v620_v55  ;;  %v807_v30 = vmul.f32 %v5317_v63, %v5317_v63 }
  0xc0   : > { %v720_v23 = vmul.f32 0.03125, %v623_v38  ;;  %v808_v24 = vmul.f32 %v5320_v21, %v5320_v21 }
  0xc1   : > { %v5329_v14 = vsub.f32 %v4951_v28, %v719_v47  ;;  %v883_v12 = vsel %vm479_vm0, %v807_v30, 0.0 }
  0xc2   : > { %v5332_v25 = vsub.f32 %v4954_v29, %v720_v23  ;;  %1001 = vadd.xlane.f32.xlu1 %v1000_v16  ;;  %884 = vadd.xlane.f32.xlu0 %v883_v12  ;;  %v506_v1 = vpop.xlane.xlu0 %505  ;;  %v886_v20 = vsel %vm479_vm0, %v808_v24, 0.0 }
  0xc3   : > { %v509_v39 = vpop.xlane.xlu1 %508  ;;  %v681_v8 = vmul.f32 0.03125, %v506_v1  ;;  %v847_v38 = vmul.f32 %v5329_v14, %v5329_v14 }
  0xc4   : > { %v682_v55 = vmul.f32 0.03125, %v509_v39  ;;  %v848_v28 = vmul.f32 %v5332_v25, %v5332_v25 }
  0xc5   : > { %v5341_v47 = vsub.f32 %v4961_v32, %v681_v8  ;;  %v1003_v16 = vsel %vm479_vm0, %v847_v38, 0.0 }
  0xc6   : > { %v5344_v29 = vsub.f32 %v4964_v33, %v682_v55  ;;  %887 = vadd.xlane.f32.xlu1 %v886_v20  ;;  %1004 = vadd.xlane.f32.xlu0 %v1003_v16  ;;  %v626_v23 = vpop.xlane.xlu0 %625  ;;  %v1006_v24 = vsel %vm479_vm0, %v848_v28, 0.0 }
  0xc7   : > { %v629_v30 = vpop.xlane.xlu1 %628  ;;  %v721_v12 = vmul.f32 0.03125, %v626_v23  ;;  %v809_v39 = vmul.f32 %v5341_v47, %v5341_v47 }
  0xc8   : > { %v722_v1 = vmul.f32 0.03125, %v629_v30  ;;  %v810_v32 = vmul.f32 %v5344_v29, %v5344_v29 }
  0xc9   : > { %v5353_v8 = vsub.f32 %v4971_v36, %v721_v12  ;;  %v889_v20 = vsel %vm479_vm0, %v809_v39, 0.0 }
  0xca   : > { %v5356_v33 = vsub.f32 %v4974_v37, %v722_v1  ;;  %1007 = vadd.xlane.f32.xlu1 %v1006_v24  ;;  %890 = vadd.xlane.f32.xlu0 %v889_v20  ;;  %v512_v55 = vpop.xlane.xlu0 %511  ;;  %v892_v28 = vsel %vm479_vm0, %v810_v32, 0.0 }
  0xcb   : > { %v515_v38 = vpop.xlane.xlu1 %514  ;;  %v683_v16 = vmul.f32 0.03125, %v512_v55  ;;  %v849_v30 = vmul.f32 %v5353_v8, %v5353_v8 }
  0xcc   : > { %v684_v23 = vmul.f32 0.03125, %v515_v38  ;;  %v850_v36 = vmul.f32 %v5356_v33, %v5356_v33 }
  0xcd   : > { %v5365_v12 = vsub.f32 %v4981_v40, %v683_v16  ;;  %v1009_v24 = vsel %vm479_vm0, %v849_v30, 0.0 }
  0xce   : > { %v5368_v37 = vsub.f32 %v4984_v41, %v684_v23  ;;  %893 = vadd.xlane.f32.xlu1 %v892_v28  ;;  %1010 = vadd.xlane.f32.xlu0 %v1009_v24  ;;  %v632_v1 = vpop.xlane.xlu0 %631  ;;  %v1012_v32 = vsel %vm479_vm0, %v850_v36, 0.0  ;;  %v4525_v24 = vld [vmem:[%s6790_s2] sm:$0xff]  }
  0xcf   : > { %v635_v39 = vpop.xlane.xlu1 %634  ;;  %v723_v20 = vmul.f32 0.03125, %v632_v1  ;;  %v811_v38 = vmul.f32 %v5365_v12, %v5365_v12  ;;  %4319 = vmatprep.subr.bf16.mxu0 %v4525_v24  ;;  %4463 = vmatprep.subr.bf16.mxu1 %v4525_v24 }
  0xd0   : > { %v724_v55 = vmul.f32 0.03125, %v635_v39  ;;  %v812_v40 = vmul.f32 %v5368_v37, %v5368_v37  ;;  %4320 = vmatpush3.bf16.msra.mxu0 %v4525_v24  ;;  %4465 = vmatpush3.bf16.msra.mxu1 %v4525_v24 }
  0xd1   : > { %v5377_v16 = vsub.f32 %v4991_v44, %v723_v20  ;;  %v895_v28 = vsel %vm479_vm0, %v811_v38, 0.0 }
  0xd2   : > { %v5380_v41 = vsub.f32 %v4994_v45, %v724_v55  ;;  %1013 = vadd.xlane.f32.xlu1 %v1012_v32  ;;  %896 = vadd.xlane.f32.xlu0 %v895_v28  ;;  %v518_v23 = vpop.xlane.xlu0 %517  ;;  %v898_v36 = vsel %vm479_vm0, %v812_v40, 0.0 }
  0xd3   : > { %v521_v30 = vpop.xlane.xlu1 %520  ;;  %v685_v1 = vmul.f32 0.03125, %v518_v23  ;;  %v851_v44 = vmul.f32 %v5377_v16, %v5377_v16  ;;  %v4526_v23 = vld [vmem:[%s6790_s2 + $0x8] sm:$0xff]  }
  0xd4   : > { %v686_v39 = vmul.f32 0.03125, %v521_v30  ;;  %v852_v45 = vmul.f32 %v5380_v41, %v5380_v41  ;;  %4321 = vmatprep.subr.bf16.mxu0 %v4526_v23  ;;  %4464 = vmatprep.subr.bf16.mxu1 %v4526_v23 }
  0xd5   : > { %v5392_v32 = vsub.f32 %v5001_v48, %v685_v1  ;;  %v1015_v55 = vsel %vm479_vm0, %v851_v44, 0.0  ;;  %4322 = vmatpush3.bf16.msra.mxu0 %v4526_v23  ;;  %4466 = vmatpush3.bf16.msra.mxu1 %v4526_v23 }
  0xd6   : > { %v5395_v20 = vsub.f32 %v5004_v49, %v686_v39  ;;  %899 = vadd.xlane.f32.xlu1 %v898_v36  ;;  %1016 = vadd.xlane.f32.xlu0 %v1015_v55  ;;  %v638_v38 = vpop.xlane.xlu0 %637  ;;  %v1018_v28 = vsel %vm479_vm0, %v852_v45, 0.0 }
  0xd7   : > { %v641_v40 = vpop.xlane.xlu1 %640  ;;  %v725_v30 = vmul.f32 0.03125, %v638_v38  ;;  %v813_v49 = vmul.f32 %v5392_v32, %v5392_v32 }
  0xd8   : > { %v726_v48 = vmul.f32 0.03125, %v641_v40  ;;  %v814_v1 = vmul.f32 %v5395_v20, %v5395_v20 }
  0xd9   : > { %v5407_v36 = vsub.f32 %v5011_v52, %v725_v30  ;;  %v901_v39 = vsel %vm479_vm0, %v813_v49, 0.0 }
  0xda   : > { %v5410_v24 = vsub.f32 %v5014_v53, %v726_v48  ;;  %1019 = vadd.xlane.f32.xlu1 %v1018_v28  ;;  %902 = vadd.xlane.f32.xlu0 %v901_v39  ;;  %v524_v44 = vpop.xlane.xlu0 %523  ;;  %v904_v55 = vsel %vm479_vm0, %v814_v1, 0.0 }
  0xdb   : > { %v527_v45 = vpop.xlane.xlu1 %526  ;;  %v687_v38 = vmul.f32 0.03125, %v524_v44  ;;  %v853_v52 = vmul.f32 %v5407_v36, %v5407_v36 }
  0xdc   : > { %v688_v40 = vmul.f32 0.03125, %v527_v45  ;;  %v854_v53 = vmul.f32 %v5410_v24, %v5410_v24 }
  0xdd   : > { %v5419_v30 = vsub.f32 %v5021_v56, %v687_v38  ;;  %v1021_v28 = vsel %vm479_vm0, %v853_v52, 0.0 }
  0xde   : > { %v5422_v23 = vsub.f32 %v5024_v57, %v688_v40  ;;  %905 = vadd.xlane.f32.xlu1 %v904_v55  ;;  %1022 = vadd.xlane.f32.xlu0 %v1021_v28  ;;  %v644_v48 = vpop.xlane.xlu0 %643  ;;  %v1024_v1 = vsel %vm479_vm0, %v854_v53, 0.0 }
  0xdf   : > { %v647_v49 = vpop.xlane.xlu1 %646  ;;  %v727_v39 = vmul.f32 0.03125, %v644_v48  ;;  %v815_v45 = vmul.f32 %v5419_v30, %v5419_v30 }
  0xe0   : > { %v728_v44 = vmul.f32 0.03125, %v647_v49  ;;  %v816_v56 = vmul.f32 %v5422_v23, %v5422_v23 }
  0xe1   : > { %v5432_v57 = vsub.f32 %v5031_v60, %v727_v39  ;;  %v907_v55 = vsel %vm479_vm0, %v815_v45, 0.0 }
  0xe2   : > { %v5435_v38 = vsub.f32 %v5034_v61, %v728_v44  ;;  %1025 = vadd.xlane.f32.xlu1 %v1024_v1  ;;  %908 = vadd.xlane.f32.xlu0 %v907_v55  ;;  %v530_v40 = vpop.xlane.xlu0 %529  ;;  %v910_v53 = vsel %vm479_vm0, %v816_v56, 0.0 }
  0xe3   : > { %v533_v52 = vpop.xlane.xlu1 %532  ;;  %v689_v28 = vmul.f32 0.03125, %v530_v40  ;;  %v855_v49 = vmul.f32 %v5432_v57, %v5432_v57 }
  0xe4   : > { %v690_v48 = vmul.f32 0.03125, %v533_v52  ;;  %v856_v60 = vmul.f32 %v5435_v38, %v5435_v38 }
  0xe5   : > { %v5444_v61 = vsub.f32 %v5041_v3, %v689_v28  ;;  %v1027_v1 = vsel %vm479_vm0, %v855_v49, 0.0 }
  0xe6   : > { %v5447_v39 = vsub.f32 %v5044_v4, %v690_v48  ;;  %911 = vadd.xlane.f32.xlu1 %v910_v53  ;;  %1028 = vadd.xlane.f32.xlu0 %v1027_v1  ;;  %v650_v44 = vpop.xlane.xlu0 %649  ;;  %v1030_v56 = vsel %vm479_vm0, %v856_v60, 0.0 }
  0xe7   : > { %v653_v45 = vpop.xlane.xlu1 %652  ;;  %v729_v55 = vmul.f32 0.03125, %v650_v44  ;;  %v817_v4 = vmul.f32 %v5444_v61, %v5444_v61 }
  0xe8   : > { %v730_v3 = vmul.f32 0.03125, %v653_v45  ;;  %v818_v40 = vmul.f32 %v5447_v39, %v5447_v39 }
  0xe9   : > { %v5461_v52 = vsub.f32 %v5051_v10, %v729_v55  ;;  %v913_v28 = vsel %vm479_vm0, %v817_v4, 0.0 }
  0xea   : > { %v5464_v53 = vsub.f32 %v5054_v11, %v730_v3  ;;  %1031 = vadd.xlane.f32.xlu1 %v1030_v56  ;;  %914 = vadd.xlane.f32.xlu0 %v913_v28  ;;  %v536_v48 = vpop.xlane.xlu0 %535  ;;  %v916_v60 = vsel %vm479_vm0, %v818_v40, 0.0 }
  0xeb   : > { %v539_v49 = vpop.xlane.xlu1 %538  ;;  %v691_v1 = vmul.f32 0.03125, %v536_v48  ;;  %v857_v45 = vmul.f32 %v5461_v52, %v5461_v52 }
  0xec   : > { %v692_v44 = vmul.f32 0.03125, %v539_v49  ;;  %v858_v10 = vmul.f32 %v5464_v53, %v5464_v53 }
  0xed   : > { %v5473_v55 = vsub.f32 %v5061_v18, %v691_v1  ;;  %v1033_v56 = vsel %vm479_vm0, %v857_v45, 0.0 }
  0xee   : > { %v5476_v11 = vsub.f32 %v5064_v19, %v692_v44  ;;  %917 = vadd.xlane.f32.xlu1 %v916_v60  ;;  %1034 = vadd.xlane.f32.xlu0 %v1033_v56  ;;  %v656_v3 = vpop.xlane.xlu0 %655  ;;  %v1036_v40 = vsel %vm479_vm0, %v858_v10, 0.0 }
  0xef   : > { %v659_v4 = vpop.xlane.xlu1 %658  ;;  %v731_v28 = vmul.f32 0.03125, %v656_v3  ;;  %v819_v49 = vmul.f32 %v5473_v55, %v5473_v55 }
  0xf0   : > { %v732_v48 = vmul.f32 0.03125, %v659_v4  ;;  %v820_v18 = vmul.f32 %v5476_v11, %v5476_v11 }
  0xf1   : > { %v5485_v1 = vsub.f32 %v5071_v26, %v731_v28  ;;  %v919_v60 = vsel %vm479_vm0, %v819_v49, 0.0 }
  0xf2   : > { %v5488_v19 = vsub.f32 %v5074_v27, %v732_v48  ;;  %1037 = vadd.xlane.f32.xlu1 %v1036_v40  ;;  %920 = vadd.xlane.f32.xlu0 %v919_v60  ;;  %v542_v44 = vpop.xlane.xlu0 %541  ;;  %v922_v10 = vsel %vm479_vm0, %v820_v18, 0.0 }
  0xf3   : > { %v545_v45 = vpop.xlane.xlu1 %544  ;;  %v693_v56 = vmul.f32 0.03125, %v542_v44  ;;  %v859_v4 = vmul.f32 %v5485_v1, %v5485_v1 }
  0xf4   : > { %v694_v3 = vmul.f32 0.03125, %v545_v45  ;;  %v860_v26 = vmul.f32 %v5488_v19, %v5488_v19 }
  0xf5   : > { %v5497_v28 = vsub.f32 %v5081_v34, %v693_v56  ;;  %v1039_v40 = vsel %vm479_vm0, %v859_v4, 0.0 }
  0xf6   : > { %v5500_v27 = vsub.f32 %v5084_v35, %v694_v3  ;;  %923 = vadd.xlane.f32.xlu1 %v922_v10  ;;  %1040 = vadd.xlane.f32.xlu0 %v1039_v40  ;;  %v662_v48 = vpop.xlane.xlu0 %661  ;;  %v1042_v18 = vsel %vm479_vm0, %v860_v26, 0.0 }
  0xf7   : > { %v665_v49 = vpop.xlane.xlu1 %664  ;;  %v733_v60 = vmul.f32 0.03125, %v662_v48  ;;  %v821_v45 = vmul.f32 %v5497_v28, %v5497_v28 }
  0xf8   : > { %v734_v44 = vmul.f32 0.03125, %v665_v49  ;;  %v822_v34 = vmul.f32 %v5500_v27, %v5500_v27 }
  0xf9   : > { %v5509_v56 = vsub.f32 %v5091_v42, %v733_v60  ;;  %v925_v10 = vsel %vm479_vm0, %v821_v45, 0.0 }
  0xfa   : > { %v5512_v35 = vsub.f32 %v5094_v43, %v734_v44  ;;  %1043 = vadd.xlane.f32.xlu1 %v1042_v18  ;;  %926 = vadd.xlane.f32.xlu0 %v925_v10  ;;  %v548_v3 = vpop.xlane.xlu0 %547  ;;  %v928_v26 = vsel %vm479_vm0, %v822_v34, 0.0 }
  0xfb   : > { %v551_v4 = vpop.xlane.xlu1 %550  ;;  %v695_v40 = vmul.f32 0.03125, %v548_v3  ;;  %v861_v49 = vmul.f32 %v5509_v56, %v5509_v56 }
  0xfc   : > { %6873 = vst [vmem:[#allocation26_spill] sm:$0xff] %v5512_v35  ;;  %v696_v48 = vmul.f32 0.03125, %v551_v4  ;;  %v862_v42 = vmul.f32 %v5512_v35, %v5512_v35 }
  0xfd   : > { %v5521_v60 = vsub.f32 %v5102_v50, %v695_v40  ;;  %v1045_v18 = vsel %vm479_vm0, %v861_v49, 0.0 }
  0xfe   : > { %v5524_v43 = vsub.f32 %v5105_v51, %v696_v48  ;;  %929 = vadd.xlane.f32.xlu1 %v928_v26  ;;  %1046 = vadd.xlane.f32.xlu0 %v1045_v18  ;;  %v668_v44 = vpop.xlane.xlu0 %667  ;;  %v1048_v34 = vsel %vm479_vm0, %v862_v42, 0.0 }
  0xff   : > { %6874 = vst [vmem:[#allocation27_spill] sm:$0xff] %v5521_v60  ;;  %v671_v45 = vpop.xlane.xlu1 %670  ;;  %v735_v10 = vmul.f32 0.03125, %v668_v44  ;;  %v823_v4 = vmul.f32 %v5521_v60, %v5521_v60 }
 0x100   : > { %6875 = vst [vmem:[#allocation28_spill] sm:$0xff] %v5524_v43  ;;  %v736_v3 = vmul.f32 0.03125, %v671_v45  ;;  %v824_v50 = vmul.f32 %v5524_v43, %v5524_v43 }
 0x101   : > { %v5533_v40 = vsub.f32 %v5112_v58, %v735_v10  ;;  %v931_v26 = vsel %vm479_vm0, %v823_v4, 0.0 }
 0x102   : > { %v5536_v51 = vsub.f32 %v5115_v59, %v736_v3  ;;  %1049 = vadd.xlane.f32.xlu1 %v1048_v34  ;;  %932 = vadd.xlane.f32.xlu0 %v931_v26  ;;  %v554_v48 = vpop.xlane.xlu0 %553  ;;  %v934_v42 = vsel %vm479_vm0, %v824_v50, 0.0 }
 0x103   : > { %6876 = vst [vmem:[#allocation29_spill] sm:$0xff] %v5533_v40  ;;  %v557_v49 = vpop.xlane.xlu1 %556  ;;  %v697_v18 = vmul.f32 0.03125, %v554_v48  ;;  %v863_v45 = vmul.f32 %v5533_v40, %v5533_v40 }
 0x104   : > { %6877 = vst [vmem:[#allocation30_spill] sm:$0xff] %v5536_v51  ;;  %v698_v44 = vmul.f32 0.03125, %v557_v49  ;;  %v864_v58 = vmul.f32 %v5536_v51, %v5536_v51 }
 0x105   : > { %v5545_v10 = vsub.f32 %v5122_v6, %v697_v18  ;;  %v1051_v34 = vsel %vm479_vm0, %v863_v45, 0.0  ;;  %v6880_v18 = vld [vmem:[#allocation4_spill] sm:$0xff] }
 0x106   : > { %v5548_v59 = vsub.f32 %v5125_v7, %v698_v44  ;;  %935 = vadd.xlane.f32.xlu1 %v934_v42  ;;  %1052 = vadd.xlane.f32.xlu0 %v1051_v34  ;;  %v560_v3 = vpop.xlane.xlu0 %559  ;;  %v1054_v50 = vsel %vm479_vm0, %v864_v58, 0.0  ;;  %v6882_v7 = vld [vmem:[#allocation5_spill] sm:$0xff] }
 0x107   : > { %6878 = vst [vmem:[#allocation31_spill] sm:$0xff] %v5545_v10  ;;  %v563_v4 = vpop.xlane.xlu1 %562  ;;  %v699_v26 = vmul.f32 0.03125, %v560_v3  ;;  %v825_v49 = vmul.f32 %v5545_v10, %v5545_v10 }
 0x108   : > { %6879 = vst [vmem:[#allocation32_spill] sm:$0xff] %v5548_v59  ;;  %v700_v48 = vmul.f32 0.03125, %v563_v4  ;;  %v826_v6 = vmul.f32 %v5548_v59, %v5548_v59 }
 0x109   : > { %v5557_v51 = vsub.f32 %v6880_v18, %v699_v26  ;;  %v937_v42 = vsel %vm479_vm0, %v825_v49, 0.0  ;;  %v6884_v18 = vld [vmem:[#allocation6_spill] sm:$0xff] }
 0x10a   : > { %v5560_v44 = vsub.f32 %v6882_v7, %v700_v48  ;;  %1055 = vadd.xlane.f32.xlu1 %v1054_v50  ;;  %938 = vadd.xlane.f32.xlu0 %v937_v42  ;;  %v1976_v45 = vpop.xlane.xlu0 %1975  ;;  %v940_v34 = vsel %vm479_vm0, %v826_v6, 0.0  ;;  %v6886_v48 = vld [vmem:[#allocation7_spill] sm:$0xff] }
 0x10b   : > { %6881 = vst [vmem:[#allocation4_spill] sm:$0xff] %v5557_v51  ;;  %v1979_v58 = vpop.xlane.xlu1 %1978  ;;  %v1998_v3 = vmul.f32 0.03125, %v1976_v45  ;;  %v827_v10 = vmul.f32 %v5557_v51, %v5557_v51 }
 0x10c   : > { %6883 = vst [vmem:[#allocation5_spill] sm:$0xff] %v5560_v44  ;;  %v1999_v4 = vmul.f32 0.03125, %v1979_v58  ;;  %v828_v26 = vmul.f32 %v5560_v44, %v5560_v44 }
 0x10d   : > { %v5569_v59 = vsub.f32 %v6884_v18, %v1998_v3  ;;  %v943_v50 = vsel %vm479_vm0, %v827_v10, 0.0  ;;  %v6888_v18 = vld [vmem:[#allocation8_spill] sm:$0xff] }
 0x10e   : > { %v5572_v7 = vsub.f32 %v6886_v48, %v1999_v4  ;;  %941 = vadd.xlane.f32.xlu1 %v940_v34  ;;  %944 = vadd.xlane.f32.xlu0 %v943_v50  ;;  %v566_v49 = vpop.xlane.xlu0 %565  ;;  %v946_v42 = vsel %vm479_vm0, %v828_v26, 0.0  ;;  %v6890_v4 = vld [vmem:[#allocation9_spill] sm:$0xff] }
 0x10f   : > { %6885 = vst [vmem:[#allocation6_spill] sm:$0xff] %v5569_v59  ;;  %v569_v6 = vpop.xlane.xlu1 %568  ;;  %v701_v45 = vmul.f32 0.03125, %v566_v49  ;;  %v2014_v51 = vmul.f32 %v5569_v59, %v5569_v59 }
 0x110   : > { %6887 = vst [vmem:[#allocation7_spill] sm:$0xff] %v5572_v7  ;;  %v702_v58 = vmul.f32 0.03125, %v569_v6  ;;  %v2015_v3 = vmul.f32 %v5572_v7, %v5572_v7 }
 0x111   : > { %v5581_v44 = vsub.f32 %v6888_v18, %v701_v45  ;;  %v2022_v10 = vsel %vm479_vm0, %v2014_v51, 0.0  ;;  %v6892_v18 = vld [vmem:[#allocation10_spill] sm:$0xff] }
 0x112   : > { %v5584_v48 = vsub.f32 %v6890_v4, %v702_v58  ;;  %947 = vadd.xlane.f32.xlu1 %v946_v42  ;;  %2023 = vadd.xlane.f32.xlu0 %v2022_v10  ;;  %v572_v34 = vpop.xlane.xlu0 %571  ;;  %v2025_v50 = vsel %vm479_vm0, %v2015_v3, 0.0  ;;  %v6894_v58 = vld [vmem:[#allocation11_spill] sm:$0xff] }
 0x113   : > { %6889 = vst [vmem:[#allocation8_spill] sm:$0xff] %v5581_v44  ;;  %v575_v26 = vpop.xlane.xlu1 %574  ;;  %v703_v49 = vmul.f32 0.03125, %v572_v34  ;;  %v829_v59 = vmul.f32 %v5581_v44, %v5581_v44 }
 0x114   : > { %6891 = vst [vmem:[#allocation9_spill] sm:$0xff] %v5584_v48  ;;  %v704_v6 = vmul.f32 0.03125, %v575_v26  ;;  %v830_v45 = vmul.f32 %v5584_v48, %v5584_v48 }
 0x115   : > { %v5593_v7 = vsub.f32 %v6892_v18, %v703_v49  ;;  %v949_v51 = vsel %vm479_vm0, %v829_v59, 0.0  ;;  %v6896_v18 = vld [vmem:[#allocation12_spill] sm:$0xff] }
 0x116   : > { %v5596_v4 = vsub.f32 %v6894_v58, %v704_v6  ;;  %2026 = vadd.xlane.f32.xlu1 %v2025_v50  ;;  %950 = vadd.xlane.f32.xlu0 %v949_v51  ;;  %v1982_v42 = vpop.xlane.xlu0 %1981  ;;  %v952_v10 = vsel %vm479_vm0, %v830_v45, 0.0  ;;  %v6898_v6 = vld [vmem:[#allocation13_spill] sm:$0xff] }
 0x117   : > { %6893 = vst [vmem:[#allocation10_spill] sm:$0xff] %v5593_v7  ;;  %v1985_v3 = vpop.xlane.xlu1 %1984  ;;  %v2000_v34 = vmul.f32 0.03125, %v1982_v42  ;;  %v831_v44 = vmul.f32 %v5593_v7, %v5593_v7 }
 0x118   : > { %6895 = vst [vmem:[#allocation11_spill] sm:$0xff] %v5596_v4  ;;  %v2001_v26 = vmul.f32 0.03125, %v1985_v3  ;;  %v832_v49 = vmul.f32 %v5596_v4, %v5596_v4 }
 0x119   : > { %v5605_v48 = vsub.f32 %v6896_v18, %v2000_v34  ;;  %v955_v59 = vsel %vm479_vm0, %v831_v44, 0.0  ;;  %v6900_v18 = vld [vmem:[#allocation14_spill] sm:$0xff] }
 0x11a   : > { %v5608_v58 = vsub.f32 %v6898_v6, %v2001_v26  ;;  %953 = vadd.xlane.f32.xlu1 %v952_v10  ;;  %956 = vadd.xlane.f32.xlu0 %v955_v59  ;;  %v578_v50 = vpop.xlane.xlu0 %577  ;;  %v958_v51 = vsel %vm479_vm0, %v832_v49, 0.0  ;;  %v6902_v26 = vld [vmem:[#allocation15_spill] sm:$0xff] }
 0x11b   : > { %6897 = vst [vmem:[#allocation12_spill] sm:$0xff] %v5605_v48  ;;  %v581_v45 = vpop.xlane.xlu1 %580  ;;  %v705_v42 = vmul.f32 0.03125, %v578_v50  ;;  %v2016_v7 = vmul.f32 %v5605_v48, %v5605_v48 }
 0x11c   : > { %6899 = vst [vmem:[#allocation13_spill] sm:$0xff] %v5608_v58  ;;  %v706_v3 = vmul.f32 0.03125, %v581_v45  ;;  %v2017_v34 = vmul.f32 %v5608_v58, %v5608_v58 }
 0x11d   : > { %v5617_v4 = vsub.f32 %v6900_v18, %v705_v42  ;;  %v2028_v44 = vsel %vm479_vm0, %v2016_v7, 0.0  ;;  %v6904_v18 = vld [vmem:[#allocation16_spill] sm:$0xff] }
 0x11e   : > { %v5620_v6 = vsub.f32 %v6902_v26, %v706_v3  ;;  %959 = vadd.xlane.f32.xlu1 %v958_v51  ;;  %2029 = vadd.xlane.f32.xlu0 %v2028_v44  ;;  %v584_v10 = vpop.xlane.xlu0 %583  ;;  %v2031_v59 = vsel %vm479_vm0, %v2017_v34, 0.0  ;;  %v6906_v3 = vld [vmem:[#allocation17_spill] sm:$0xff] }
 0x11f   : > { %6901 = vst [vmem:[#allocation14_spill] sm:$0xff] %v5617_v4  ;;  %v587_v49 = vpop.xlane.xlu1 %586  ;;  %v707_v50 = vmul.f32 0.03125, %v584_v10  ;;  %v833_v48 = vmul.f32 %v5617_v4, %v5617_v4 }
 0x120   : > { %6903 = vst [vmem:[#allocation15_spill] sm:$0xff] %v5620_v6  ;;  %v708_v45 = vmul.f32 0.03125, %v587_v49  ;;  %v834_v42 = vmul.f32 %v5620_v6, %v5620_v6 }
 0x121   : > { %v5629_v58 = vsub.f32 %v6904_v18, %v707_v50  ;;  %v961_v7 = vsel %vm479_vm0, %v833_v48, 0.0  ;;  %v6908_v18 = vld [vmem:[#allocation18_spill] sm:$0xff] }
 0x122   : > { %v5632_v26 = vsub.f32 %v6906_v3, %v708_v45  ;;  %2032 = vadd.xlane.f32.xlu1 %v2031_v59  ;;  %962 = vadd.xlane.f32.xlu0 %v961_v7  ;;  %v1988_v51 = vpop.xlane.xlu0 %1987  ;;  %v964_v44 = vsel %vm479_vm0, %v834_v42, 0.0  ;;  %v4529_v45 = vld [vmem:[%s6791_s3 + $0x4] ss:$8 sps:$4 sm:$0xff]   ;;  %v6910_v59 = vld [vmem:[#allocation19_spill] sm:$0xff] }
 0x123   : > { %6905 = vst [vmem:[#allocation16_spill] sm:$0xff] %v5629_v58  ;;  %v1991_v34 = vpop.xlane.xlu1 %1990  ;;  %v2002_v10 = vmul.f32 0.03125, %v1988_v51  ;;  %v835_v4 = vmul.f32 %v5629_v58, %v5629_v58  ;;  %2134 = vmatprep.subr.bf16.mxu1 %v4529_v45  ;;  %v6916_v45 = vld [vmem:[#allocation22_spill] sm:$0xff] }
 0x124   : > { %6907 = vst [vmem:[#allocation17_spill] sm:$0xff] %v5632_v26  ;;  %v2003_v49 = vmul.f32 0.03125, %v1991_v34  ;;  %v836_v50 = vmul.f32 %v5632_v26, %v5632_v26 }
 0x125   : > { %v5644_v48 = vsub.f32 %v6908_v18, %v2002_v10  ;;  %v967_v42 = vsel %vm479_vm0, %v835_v4, 0.0  ;;  %v6912_v18 = vld [vmem:[#allocation20_spill] sm:$0xff] }
 0x126   : > { %v5647_v3 = vsub.f32 %v6910_v59, %v2003_v49  ;;  %965 = vadd.xlane.f32.xlu1 %v964_v44  ;;  %968 = vadd.xlane.f32.xlu0 %v967_v42  ;;  %v590_v7 = vpop.xlane.xlu0 %589  ;;  %v970_v34 = vsel %vm479_vm0, %v836_v50, 0.0  ;;  %v6914_v59 = vld [vmem:[#allocation21_spill] sm:$0xff] }
 0x127   : > { %6909 = vst [vmem:[#allocation18_spill] sm:$0xff] %v5644_v48  ;;  %v593_v51 = vpop.xlane.xlu1 %592  ;;  %v709_v58 = vmul.f32 0.03125, %v590_v7  ;;  %v2018_v6 = vmul.f32 %v5644_v48, %v5644_v48 }
 0x128   : > { %6911 = vst [vmem:[#allocation19_spill] sm:$0xff] %v5647_v3  ;;  %v710_v26 = vmul.f32 0.03125, %v593_v51  ;;  %v2019_v10 = vmul.f32 %v5647_v3, %v5647_v3 }
 0x129   : > { %v5656_v49 = vsub.f32 %v6912_v18, %v709_v58  ;;  %v2034_v44 = vsel %vm479_vm0, %v2018_v6, 0.0 }
 0x12a   : > { %v5659_v4 = vsub.f32 %v6914_v59, %v710_v26  ;;  %971 = vadd.xlane.f32.xlu1 %v970_v34  ;;  %2035 = vadd.xlane.f32.xlu0 %v2034_v44  ;;  %v596_v50 = vpop.xlane.xlu0 %595  ;;  %v2037_v7 = vsel %vm479_vm0, %v2019_v10, 0.0  ;;  %v6918_v26 = vld [vmem:[#allocation23_spill] sm:$0xff] }
 0x12b   : > { %6913 = vst [vmem:[#allocation20_spill] sm:$0xff] %v5656_v49  ;;  %v599_v42 = vpop.xlane.xlu1 %598  ;;  %v711_v51 = vmul.f32 0.03125, %v596_v50  ;;  %v837_v3 = vmul.f32 %v5656_v49, %v5656_v49 }
 0x12c   : > { %6915 = vst [vmem:[#allocation21_spill] sm:$0xff] %v5659_v4  ;;  %v712_v48 = vmul.f32 0.03125, %v599_v42  ;;  %v838_v58 = vmul.f32 %v5659_v4, %v5659_v4 }
 0x12d   : > { %v5668_v18 = vsub.f32 %v6916_v45, %v711_v51  ;;  %v973_v6 = vsel %vm479_vm0, %v837_v3, 0.0  ;;  %v6920_v45 = vld [vmem:[#allocation24_spill] sm:$0xff] }
 0x12e   : > { %v5671_v59 = vsub.f32 %v6918_v26, %v712_v48  ;;  %2038 = vadd.xlane.f32.xlu1 %v2037_v7  ;;  %974 = vadd.xlane.f32.xlu0 %v973_v6  ;;  %v1994_v34 = vpop.xlane.xlu0 %1993  ;;  %v976_v44 = vsel %vm479_vm0, %v838_v58, 0.0 }
 0x12f   : > { %6917 = vst [vmem:[#allocation22_spill] sm:$0xff] %v5668_v18  ;;  %v1997_v10 = vpop.xlane.xlu1 %1996  ;;  %v2004_v50 = vmul.f32 0.03125, %v1994_v34  ;;  %v839_v49 = vmul.f32 %v5668_v18, %v5668_v18 }
 0x130   : > { %6919 = vst [vmem:[#allocation23_spill] sm:$0xff] %v5671_v59  ;;  %v2005_v42 = vmul.f32 0.03125, %v1997_v10  ;;  %v840_v51 = vmul.f32 %v5671_v59, %v5671_v59 }
 0x131   : > { %v5680_v4 = vsub.f32 %v6920_v45, %v2004_v50  ;;  %v979_v3 = vsel %vm479_vm0, %v839_v49, 0.0 }
 0x132   : > { %v5683_v48 = vsub.f32 %v5240_v31, %v2005_v42  ;;  %977 = vadd.xlane.f32.xlu1 %v976_v44  ;;  %980 = vadd.xlane.f32.xlu0 %v979_v3  ;;  %v982_v7 = vsel %vm479_vm0, %v840_v51, 0.0 }
 0x133   : > { %6921 = vst [vmem:[#allocation24_spill] sm:$0xff] %v5680_v4  ;;  %v2020_v58 = vmul.f32 %v5680_v4, %v5680_v4 }
 0x134   : > { %6922 = vst [vmem:[#allocation33_spill] sm:$0xff] %v5683_v48  ;;  %v2021_v26 = vmul.f32 %v5683_v48, %v5683_v48 }
 0x135   : > { %v2040_v6 = vsel %vm479_vm0, %v2020_v58, 0.0 }
 0x136   : > { %983 = vadd.xlane.f32.xlu1 %v982_v7  ;;  %2041 = vadd.xlane.f32.xlu0 %v2040_v6  ;;  %v2043_v31 = vsel %vm479_vm0, %v2021_v26, 0.0 }
 0x137   : > { %v867_v34 = vpop.xlane.xlu0 %866 }
 0x138   : > { %v1057_v10 = vmul.f32 0.03125, %v867_v34 }
 0x13a   : > { %v1121_v50 = vadd.f32 1e-05, %v1057_v10  ;;  %2044 = vadd.xlane.f32.xlu1 %v2043_v31 }
 0x13b   : > { %v870_v49 = vpop.xlane.xlu1 %869  ;;  %v987_v44 = vpop.xlane.xlu0 %986 }
 0x13c   : > { %4533 = vrsqrt.f32 %v1121_v50  ;;  %v1058_v42 = vmul.f32 0.03125, %v870_v49  ;;  %v1097_v51 = vmul.f32 0.03125, %v987_v44 }
 0x13e   : > { %v1122_v45 = vadd.f32 1e-05, %v1058_v42  ;;  %v1161_v3 = vadd.f32 1e-05, %v1097_v51 }
 0x13f   : > { %v990_v4 = vpop.xlane.xlu1 %989  ;;  %v873_v59 = vpop.xlane.xlu0 %872 }
 0x140   : > { %4535 = vrsqrt.f32 %v1122_v45  ;;  %v1098_v48 = vmul.f32 0.03125, %v990_v4  ;;  %v1059_v58 = vmul.f32 0.03125, %v873_v59  ;;  %v5697_v59 = vld [vmem:[%s6793_s5] ss:$0 sm:$0xff] }
 0x141   : > { %4537 = vrsqrt.f32 %v1161_v3 }
 0x142   : > { %v1162_v7 = vadd.f32 1e-05, %v1098_v48  ;;  %v1123_v6 = vadd.f32 1e-05, %v1059_v58 }
 0x143   : > { %v876_v18 = vpop.xlane.xlu1 %875  ;;  %v993_v26 = vpop.xlane.xlu0 %992 }
 0x144   : > { %4539 = vrsqrt.f32 %v1162_v7  ;;  %v1060_v34 = vmul.f32 0.03125, %v876_v18  ;;  %v1099_v31 = vmul.f32 0.03125, %v993_v26 }
 0x145   : > { %4541 = vrsqrt.f32 %v1123_v6 }
 0x146   : > { %v4534_v10 = vpop.eup %4533  ;;  %v1124_v50 = vadd.f32 1e-05, %v1060_v34  ;;  %v1163_v49 = vadd.f32 1e-05, %v1099_v31 }
 0x147   : > { %v996_v44 = vpop.xlane.xlu1 %995  ;;  %v879_v42 = vpop.xlane.xlu0 %878  ;;  %v1249_v51 = vmul.f32 %v4534_v10, %v5247_v54  ;;  %v5704_v10 = vld [vmem:[%s6794_s6] ss:$0 sm:$0xff] }
 0x148   : > { %4543 = vrsqrt.f32 %v1124_v50  ;;  %v1100_v45 = vmul.f32 0.03125, %v996_v44  ;;  %v1061_v4 = vmul.f32 0.03125, %v879_v42  ;;  %v6923_v50 = vld [vmem:[#allocation25_spill] sm:$0xff] }
 0x149   : > { %4545 = vrsqrt.f32 %v1163_v49  ;;  %v1319_v34 = vmul.f32 %v5697_v59, %v1249_v51 }
 0x14a   : > { %v4536_v48 = vpop.eup %4535  ;;  %v1164_v18 = vadd.f32 1e-05, %v1100_v45  ;;  %v1125_v3 = vadd.f32 1e-05, %v1061_v4 }
 0x14b   : > { %v4538_v58 = vpop.eup %4537  ;;  %v882_v7 = vpop.xlane.xlu1 %881  ;;  %v1250_v26 = vmul.f32 %v4536_v48, %v5257_v15  ;;  %v1389_v51 = vadd.f32 %v5704_v10, %v1319_v34 }
 0x14c   : > { %v999_v6 = vpop.xlane.xlu0 %998  ;;  %4547 = vrsqrt.f32 %v1164_v18  ;;  %v1062_v54 = vmul.f32 0.03125, %v882_v7  ;;  %v1289_v49 = vmul.f32 %v4538_v58, %v6923_v50 }
 0x14d   : > { %v1101_v31 = vmul.f32 0.03125, %v999_v6  ;;  %4549 = vrsqrt.f32 %v1125_v3  ;;  %v1320_v44 = vmul.f32 %v5697_v59, %v1250_v26 }
 0x14e   : > { %v4540_v42 = vpop.eup %4539  ;;  %v1126_v45 = vadd.f32 1e-05, %v1062_v54  ;;  %v1359_v6 = vmul.f32 %v5697_v59, %v1289_v49 }
 0x14f   : > { %v1165_v4 = vadd.f32 1e-05, %v1101_v31  ;;  %v4542_v40 = vpop.eup %4541  ;;  %v1002_v15 = vpop.xlane.xlu1 %1001  ;;  %v1390_v18 = vadd.f32 %v5704_v10, %v1320_v44  ;;  %v1290_v7 = vmul.f32 %v4540_v42, %v5260_v46 }
 0x150   : > { %v885_v48 = vpop.xlane.xlu0 %884  ;;  %v1251_v43 = vmul.f32 %v4542_v40, %v5269_v2  ;;  %4551 = vrsqrt.f32 %v1126_v45  ;;  %v1102_v3 = vmul.f32 0.03125, %v1002_v15  ;;  %v1429_v49 = vadd.f32 %v5704_v10, %v1359_v6 }
 0x151   : > { %v1063_v58 = vmul.f32 0.03125, %v885_v48  ;;  %4553 = vrsqrt.f32 %v1165_v4  ;;  %v1453_v26 = vpack.c.bf16 %v1390_v18, %v1389_v51  ;;  %v1360_v54 = vmul.f32 %v5697_v59, %v1290_v7 }
 0x152   : > { %v4544_v31 = vpop.eup %4543  ;;  %v1166_v50 = vadd.f32 1e-05, %v1102_v3  ;;  %v1321_v40 = vmul.f32 %v5697_v59, %v1251_v43 }
 0x153   : > { %v1127_v60 = vadd.f32 1e-05, %v1063_v58  ;;  %v4546_v35 = vpop.eup %4545  ;;  %v1252_v34 = vmul.f32 %v4544_v31, %v5272_v5  ;;  %v888_v44 = vpop.xlane.xlu1 %887  ;;  %4323 = vmatprep.mubr.msk.bf16.mxu0 %vm479_vm0, %v1453_v26  ;;  %v1430_v2 = vadd.f32 %v5704_v10, %v1360_v54 }
 0x154   : > { %v1005_v46 = vpop.xlane.xlu0 %1004  ;;  %v1291_v42 = vmul.f32 %v4546_v35, %v5281_v62  ;;  %4555 = vrsqrt.f32 %v1166_v50  ;;  %v1064_v45 = vmul.f32 0.03125, %v888_v44  ;;  %v1391_v43 = vadd.f32 %v5704_v10, %v1321_v40 }
 0x155   : > { %v1103_v4 = vmul.f32 0.03125, %v1005_v46  ;;  %4557 = vrsqrt.f32 %v1127_v60  ;;  %v1473_v15 = vpack.c.bf16 %v1430_v2, %v1429_v49  ;;  %v1322_v48 = vmul.f32 %v5697_v59, %v1252_v34 }
 0x156   : > { %v4548_v5 = vpop.eup %4547  ;;  %v1128_v51 = vadd.f32 1e-05, %v1064_v45  ;;  %v1361_v35 = vmul.f32 %v5697_v59, %v1291_v42 }
 0x157   : > { %v1167_v18 = vadd.f32 1e-05, %v1103_v4  ;;  %v4550_v7 = vpop.eup %4549  ;;  %v1292_v3 = vmul.f32 %v4548_v5, %v5284_v9  ;;  %v1008_v6 = vpop.xlane.xlu1 %1007  ;;  %4363 = vmatprep.mubr.msk.bf16.mxu1 %vm479_vm0, %v1473_v15  ;;  %v1392_v62 = vadd.f32 %v5704_v10, %v1322_v48  ;;  %v4527_v5 = vld [vmem:[%s6791_s3] ss:$8 sps:$4 sm:$0xff]  }
 0x158   : > { %v891_v58 = vpop.xlane.xlu0 %890  ;;  %v1253_v60 = vmul.f32 %v4550_v7, %v5293_v0  ;;  %4559 = vrsqrt.f32 %v1128_v51  ;;  %v1104_v26 = vmul.f32 0.03125, %v1008_v6  ;;  %v1431_v42 = vadd.f32 %v5704_v10, %v1361_v35 }
 0x159   : > { %v1065_v54 = vmul.f32 0.03125, %v891_v58  ;;  %4561 = vrsqrt.f32 %v1167_v18  ;;  %v1454_v31 = vpack.c.bf16 %v1392_v62, %v1391_v43  ;;  %v1362_v50 = vmul.f32 %v5697_v59, %v1292_v3  ;;  %v4532_v18 = vld [vmem:[%s6791_s3 + $0x14] ss:$8 sps:$4 sm:$0xff]  }
 0x15a   : > { %v4552_v9 = vpop.eup %4551  ;;  %v1168_v34 = vadd.f32 1e-05, %v1104_v26  ;;  %v1323_v45 = vmul.f32 %v5697_v59, %v1253_v60 }
 0x15b   : > { %v1129_v44 = vadd.f32 1e-05, %v1065_v54  ;;  %v4554_v46 = vpop.eup %4553  ;;  %v1254_v49 = vmul.f32 %v4552_v9, %v5296_v13  ;;  %v894_v2 = vpop.xlane.xlu1 %893  ;;  %4324 = vmatmul.mubr.msk.bf16.vlgmr.msra.gmra.mrb[0].mxu0 %vm479_vm0, %v1454_v31  ;;  %v1432_v0 = vadd.f32 %v5704_v10, %v1362_v50 }
 0x15c   : > { %v1011_v40 = vpop.xlane.xlu0 %1010  ;;  %v1293_v4 = vmul.f32 %v4554_v46, %v5305_v22  ;;  %4563 = vrsqrt.f32 %v1168_v34  ;;  %v1066_v15 = vmul.f32 0.03125, %v894_v2  ;;  %v1393_v35 = vadd.f32 %v5704_v10, %v1323_v45 }
 0x15d   : > { %v1105_v48 = vmul.f32 0.03125, %v1011_v40  ;;  %4565 = vrsqrt.f32 %v1129_v44  ;;  %v1474_v13 = vpack.c.bf16 %v1432_v0, %v1431_v42  ;;  %v1324_v51 = vmul.f32 %v5697_v59, %v1254_v49 }
 0x15e   : > { %v4556_v7 = vpop.eup %4555  ;;  %v1130_v3 = vadd.f32 1e-05, %v1066_v15  ;;  %v1363_v26 = vmul.f32 %v5697_v59, %v1293_v4 }
 0x15f   : > { %v1169_v6 = vadd.f32 1e-05, %v1105_v48  ;;  %v4558_v58 = vpop.eup %4557  ;;  %v1294_v22 = vmul.f32 %v4556_v7, %v5308_v17  ;;  %v1014_v43 = vpop.xlane.xlu1 %1013  ;;  %4364 = vmatmul.mubr.msk.bf16.vlgmr.msra.gmra.mrb[0].mxu1 %vm479_vm0, %v1474_v13  ;;  %v1394_v60 = vadd.f32 %v5704_v10, %v1324_v51  ;;  %v4530_v17 = vld [vmem:[%s6791_s3 + $0x10] ss:$8 sps:$4 sm:$0xff]  }
 0x160   : > { %v897_v62 = vpop.xlane.xlu0 %896  ;;  %v1255_v54 = vmul.f32 %v4558_v58, %v5317_v63  ;;  %4567 = vrsqrt.f32 %v1130_v3  ;;  %v1106_v31 = vmul.f32 0.03125, %v1014_v43  ;;  %2135 = vmatpush1.bf16.msra.mxu1 %v4527_v5  ;;  %v1433_v0 = vadd.f32 %v5704_v10, %v1363_v26 }
 0x161   : > { %v1067_v50 = vmul.f32 0.03125, %v897_v62  ;;  %4569 = vrsqrt.f32 %v1169_v6  ;;  %v1455_v9 = vpack.c.bf16 %v1394_v60, %v1393_v35  ;;  %v1364_v34 = vmul.f32 %v5697_v59, %v1294_v22  ;;  %2136 = vmatprep.subr.bf16.mxu1 %v4532_v18 }
 0x162   : > { %v4560_v44 = vpop.eup %4559  ;;  %v1170_v46 = vadd.f32 1e-05, %v1106_v31  ;;  %v1325_v4 = vmul.f32 %v5697_v59, %v1255_v54 }
 0x163   : > { %v1131_v49 = vadd.f32 1e-05, %v1067_v50  ;;  %v4562_v2 = vpop.eup %4561  ;;  %v1256_v40 = vmul.f32 %v4560_v44, %v5320_v21  ;;  %v900_v63 = vpop.xlane.xlu1 %899  ;;  %4327 = vmatprep.mubr.msk.bf16.mxu0 %vm479_vm0, %v1455_v9  ;;  %v1434_v45 = vadd.f32 %v5704_v10, %v1364_v34 }
 0x164   : > { %v1017_v42 = vpop.xlane.xlu0 %1016  ;;  %v1295_v15 = vmul.f32 %v4562_v2, %v5329_v14  ;;  %4571 = vrsqrt.f32 %v1170_v46  ;;  %v1068_v48 = vmul.f32 0.03125, %v900_v63  ;;  %2137 = vmatpush1.bf16.msra.mxu1 %v4530_v17  ;;  %v1395_v14 = vadd.f32 %v5704_v10, %v1325_v4 }
 0x165   : > { %v1107_v5 = vmul.f32 0.03125, %v1017_v42  ;;  %4573 = vrsqrt.f32 %v1131_v49  ;;  %v1475_v13 = vpack.c.bf16 %v1434_v45, %v1433_v0  ;;  %v1326_v21 = vmul.f32 %v5697_v59, %v1256_v40 }
 0x166   : > { %v4564_v51 = vpop.eup %4563  ;;  %v1132_v18 = vadd.f32 1e-05, %v1068_v48  ;;  %v1365_v62 = vmul.f32 %v5697_v59, %v1295_v15 }
 0x167   : > { %v1171_v7 = vadd.f32 1e-05, %v1107_v5  ;;  %v4566_v3 = vpop.eup %4565  ;;  %v1296_v6 = vmul.f32 %v4564_v51, %v5332_v25  ;;  %v1020_v58 = vpop.xlane.xlu1 %1019  ;;  %4367 = vmatprep.mubr.msk.bf16.mxu1 %vm479_vm0, %v1475_v13  ;;  %v1396_v43 = vadd.f32 %v5704_v10, %v1326_v21 }
 0x168   : > { %v903_v22 = vpop.xlane.xlu0 %902  ;;  %v1257_v35 = vmul.f32 %v4566_v3, %v5341_v47  ;;  %4575 = vrsqrt.f32 %v1132_v18  ;;  %v1108_v60 = vmul.f32 0.03125, %v1020_v58  ;;  %v1435_v49 = vadd.f32 %v5704_v10, %v1365_v62 }
 0x169   : > { %v1069_v26 = vmul.f32 0.03125, %v903_v22  ;;  %4577 = vrsqrt.f32 %v1171_v7  ;;  %v1456_v54 = vpack.c.bf16 %v1396_v43, %v1395_v14  ;;  %v1366_v31 = vmul.f32 %v5697_v59, %v1296_v6 }
 0x16a   : > { %v4568_v25 = vpop.eup %4567  ;;  %v1172_v50 = vadd.f32 1e-05, %v1108_v60  ;;  %v1327_v2 = vmul.f32 %v5697_v59, %v1257_v35 }
 0x16b   : > { %v1133_v17 = vadd.f32 1e-05, %v1069_v26  ;;  %v4570_v9 = vpop.eup %4569  ;;  %v1258_v34 = vmul.f32 %v4568_v25, %v5344_v29  ;;  %v906_v44 = vpop.xlane.xlu1 %905  ;;  %4328 = vmatmul.mubr.msk.bf16.gmra.mrb[4].mxu0 %vm479_vm0, %v1456_v54  ;;  %v1436_v47 = vadd.f32 %v5704_v10, %v1366_v31 }
 0x16c   : > { %v1023_v46 = vpop.xlane.xlu0 %1022  ;;  %v1297_v40 = vmul.f32 %v4570_v9, %v5353_v8  ;;  %4579 = vrsqrt.f32 %v1172_v50  ;;  %v1070_v63 = vmul.f32 0.03125, %v906_v44  ;;  %v1397_v51 = vadd.f32 %v5704_v10, %v1327_v2 }
 0x16d   : > { %v1109_v42 = vmul.f32 0.03125, %v1023_v46  ;;  %4581 = vrsqrt.f32 %v1133_v17  ;;  %v1476_v0 = vpack.c.bf16 %v1436_v47, %v1435_v49  ;;  %v1328_v45 = vmul.f32 %v5697_v59, %v1258_v34 }
 0x16e   : > { %v4572_v29 = vpop.eup %4571  ;;  %v1134_v4 = vadd.f32 1e-05, %v1070_v63  ;;  %v1367_v18 = vmul.f32 %v5697_v59, %v1297_v40 }
 0x16f   : > { %v1173_v15 = vadd.f32 1e-05, %v1109_v42  ;;  %v4574_v48 = vpop.eup %4573  ;;  %v1298_v5 = vmul.f32 %v4572_v29, %v5356_v33  ;;  %v1026_v13 = vpop.xlane.xlu1 %1025  ;;  %4368 = vmatmul.mubr.msk.bf16.gmra.mrb[4].mxu1 %vm479_vm0, %v1476_v0  ;;  %v1398_v8 = vadd.f32 %v5704_v10, %v1328_v45 }
 0x170   : > { %v909_v21 = vpop.xlane.xlu0 %908  ;;  %v1259_v7 = vmul.f32 %v4574_v48, %v5365_v12  ;;  %4583 = vrsqrt.f32 %v1134_v4  ;;  %v1110_v3 = vmul.f32 0.03125, %v1026_v13  ;;  %v1437_v54 = vadd.f32 %v5704_v10, %v1367_v18 }
 0x171   : > { %v1071_v6 = vmul.f32 0.03125, %v909_v21  ;;  %4585 = vrsqrt.f32 %v1173_v15  ;;  %v1457_v58 = vpack.c.bf16 %v1398_v8, %v1397_v51  ;;  %v1368_v22 = vmul.f32 %v5697_v59, %v1298_v5 }
 0x172   : > { %v4576_v33 = vpop.eup %4575  ;;  %v1174_v14 = vadd.f32 1e-05, %v1110_v3  ;;  %v1329_v31 = vmul.f32 %v5697_v59, %v1259_v7 }
 0x173   : > { %v1135_v43 = vadd.f32 1e-05, %v1071_v6  ;;  %v4578_v62 = vpop.eup %4577  ;;  %v1260_v35 = vmul.f32 %v4576_v33, %v5368_v37  ;;  %v912_v60 = vpop.xlane.xlu1 %911  ;;  %4331 = vmatprep.mubr.msk.bf16.mxu0 %vm479_vm0, %v1457_v58  ;;  %v1438_v12 = vadd.f32 %v5704_v10, %v1368_v22 }
 0x174   : > { %v1029_v26 = vpop.xlane.xlu0 %1028  ;;  %v1299_v25 = vmul.f32 %v4578_v62, %v5377_v16  ;;  %4587 = vrsqrt.f32 %v1174_v14  ;;  %v1072_v50 = vmul.f32 0.03125, %v912_v60  ;;  %v1399_v63 = vadd.f32 %v5704_v10, %v1329_v31 }
 0x175   : > { %v1111_v17 = vmul.f32 0.03125, %v1029_v26  ;;  %4589 = vrsqrt.f32 %v1135_v43  ;;  %v1477_v9 = vpack.c.bf16 %v1438_v12, %v1437_v54  ;;  %v1330_v34 = vmul.f32 %v5697_v59, %v1260_v35 }
 0x176   : > { %v4580_v37 = vpop.eup %4579  ;;  %v1136_v44 = vadd.f32 1e-05, %v1072_v50  ;;  %v1369_v42 = vmul.f32 %v5697_v59, %v1299_v25 }
 0x177   : > { %v1175_v46 = vadd.f32 1e-05, %v1111_v17  ;;  %v4582_v49 = vpop.eup %4581  ;;  %v1300_v47 = vmul.f32 %v4580_v37, %v5380_v41  ;;  %v1032_v2 = vpop.xlane.xlu1 %1031  ;;  %4371 = vmatprep.mubr.msk.bf16.mxu1 %vm479_vm0, %v1477_v9  ;;  %v1400_v16 = vadd.f32 %v5704_v10, %v1330_v34 }
 0x178   : > { %v915_v40 = vpop.xlane.xlu0 %914  ;;  %v1261_v0 = vmul.f32 %v4582_v49, %v5392_v32  ;;  %4591 = vrsqrt.f32 %v1136_v44  ;;  %v1112_v45 = vmul.f32 0.03125, %v1032_v2  ;;  %v1439_v18 = vadd.f32 %v5704_v10, %v1369_v42 }
 0x179   : > { %v1073_v29 = vmul.f32 0.03125, %v915_v40  ;;  %4593 = vrsqrt.f32 %v1175_v46  ;;  %v1458_v4 = vpack.c.bf16 %v1400_v16, %v1399_v63  ;;  %v1370_v15 = vmul.f32 %v5697_v59, %v1300_v47 }
 0x17a   : > { %v4584_v41 = vpop.eup %4583  ;;  %v1176_v48 = vadd.f32 1e-05, %v1112_v45  ;;  %v1331_v7 = vmul.f32 %v5697_v59, %v1261_v0 }
 0x17b   : > { %v1137_v5 = vadd.f32 1e-05, %v1073_v29  ;;  %v4586_v13 = vpop.eup %4585  ;;  %v1262_v21 = vmul.f32 %v4584_v41, %v5395_v20  ;;  %v918_v51 = vpop.xlane.xlu1 %917  ;;  %4332 = vmatmul.mubr.msk.bf16.gmra.mrb[8].mxu0 %vm479_vm0, %v1458_v4  ;;  %v1440_v32 = vadd.f32 %v5704_v10, %v1370_v15 }
 0x17c   : > { %v1035_v8 = vpop.xlane.xlu0 %1034  ;;  %v1301_v3 = vmul.f32 %v4586_v13, %v5407_v36  ;;  %4595 = vrsqrt.f32 %v1176_v48  ;;  %v1074_v6 = vmul.f32 0.03125, %v918_v51  ;;  %v1401_v54 = vadd.f32 %v5704_v10, %v1331_v7 }
 0x17d   : > { %v1113_v58 = vmul.f32 0.03125, %v1035_v8  ;;  %4597 = vrsqrt.f32 %v1137_v5  ;;  %v1478_v22 = vpack.c.bf16 %v1440_v32, %v1439_v18  ;;  %v1332_v33 = vmul.f32 %v5697_v59, %v1262_v21 }
 0x17e   : > { %v4588_v20 = vpop.eup %4587  ;;  %v1138_v14 = vadd.f32 1e-05, %v1074_v6  ;;  %v1371_v12 = vmul.f32 %v5697_v59, %v1301_v3 }
 0x17f   : > { %v1177_v43 = vadd.f32 1e-05, %v1113_v58  ;;  %v4590_v62 = vpop.eup %4589  ;;  %v1302_v35 = vmul.f32 %v4588_v20, %v5410_v24  ;;  %v1038_v60 = vpop.xlane.xlu1 %1037  ;;  %4372 = vmatmul.mubr.msk.bf16.gmra.mrb[8].mxu1 %vm479_vm0, %v1478_v22  ;;  %v1402_v36 = vadd.f32 %v5704_v10, %v1332_v33 }
 0x180   : > { %v921_v26 = vpop.xlane.xlu0 %920  ;;  %v1263_v31 = vmul.f32 %v4590_v62, %v5419_v30  ;;  %4599 = vrsqrt.f32 %v1138_v14  ;;  %v1114_v25 = vmul.f32 0.03125, %v1038_v60  ;;  %v1441_v2 = vadd.f32 %v5704_v10, %v1371_v12 }
 0x181   : > { %v1075_v50 = vmul.f32 0.03125, %v921_v26  ;;  %4601 = vrsqrt.f32 %v1177_v43  ;;  %v1459_v17 = vpack.c.bf16 %v1402_v36, %v1401_v54  ;;  %v1372_v9 = vmul.f32 %v5697_v59, %v1302_v35 }
 0x182   : > { %v4592_v24 = vpop.eup %4591  ;;  %v1178_v34 = vadd.f32 1e-05, %v1114_v25  ;;  %v1333_v40 = vmul.f32 %v5697_v59, %v1263_v31 }
 0x183   : > { %v1139_v37 = vadd.f32 1e-05, %v1075_v50  ;;  %v4594_v44 = vpop.eup %4593  ;;  %v1264_v46 = vmul.f32 %v4592_v24, %v5422_v23  ;;  %v924_v49 = vpop.xlane.xlu1 %923  ;;  %4335 = vmatprep.mubr.msk.bf16.mxu0 %vm479_vm0, %v1459_v17  ;;  %v1442_v30 = vadd.f32 %v5704_v10, %v1372_v9 }
 0x184   : > { %v1041_v47 = vpop.xlane.xlu0 %1040  ;;  %v1303_v63 = vmul.f32 %v4594_v44, %v5432_v57  ;;  %4603 = vrsqrt.f32 %v1178_v34  ;;  %v1076_v16 = vmul.f32 0.03125, %v924_v49  ;;  %v1403_v13 = vadd.f32 %v5704_v10, %v1333_v40 }
 0x185   : > { %v1115_v42 = vmul.f32 0.03125, %v1041_v47  ;;  %4605 = vrsqrt.f32 %v1139_v37  ;;  %v1479_v0 = vpack.c.bf16 %v1442_v30, %v1441_v2  ;;  %v1334_v45 = vmul.f32 %v5697_v59, %v1264_v46 }
 0x186   : > { %v4596_v23 = vpop.eup %4595  ;;  %v1140_v29 = vadd.f32 1e-05, %v1076_v16  ;;  %v1373_v21 = vmul.f32 %v5697_v59, %v1303_v63 }
 0x187   : > { %v1179_v4 = vadd.f32 1e-05, %v1115_v42  ;;  %v4598_v15 = vpop.eup %4597  ;;  %v1304_v41 = vmul.f32 %v4596_v23, %v5435_v38  ;;  %v1044_v48 = vpop.xlane.xlu1 %1043  ;;  %4375 = vmatprep.mubr.msk.bf16.mxu1 %vm479_vm0, %v1479_v0  ;;  %v1404_v57 = vadd.f32 %v5704_v10, %v1334_v45 }
 0x188   : > { %v927_v5 = vpop.xlane.xlu0 %926  ;;  %v1265_v51 = vmul.f32 %v4598_v15, %v5444_v61  ;;  %4607 = vrsqrt.f32 %v1140_v29  ;;  %v1116_v8 = vmul.f32 0.03125, %v1044_v48  ;;  %v1443_v14 = vadd.f32 %v5704_v10, %v1373_v21 }
 0x189   : > { %v1077_v18 = vmul.f32 0.03125, %v927_v5  ;;  %4609 = vrsqrt.f32 %v1179_v4  ;;  %v1460_v32 = vpack.c.bf16 %v1404_v57, %v1403_v13  ;;  %v1374_v7 = vmul.f32 %v5697_v59, %v1304_v41 }
 0x18a   : > { %v4600_v38 = vpop.eup %4599  ;;  %v1180_v3 = vadd.f32 1e-05, %v1116_v8  ;;  %v1335_v43 = vmul.f32 %v5697_v59, %v1265_v51 }
 0x18b   : > { %v1141_v6 = vadd.f32 1e-05, %v1077_v18  ;;  %v4602_v58 = vpop.eup %4601  ;;  %v1266_v22 = vmul.f32 %v4600_v38, %v5447_v39  ;;  %v930_v33 = vpop.xlane.xlu1 %929  ;;  %4336 = vmatmul.mubr.msk.bf16.gmra.mrb[12].mxu0 %vm479_vm0, %v1460_v32  ;;  %v1444_v61 = vadd.f32 %v5704_v10, %v1374_v7 }
 0x18c   : > { %v1047_v20 = vpop.xlane.xlu0 %1046  ;;  %v1305_v62 = vmul.f32 %v4602_v58, %v5461_v52  ;;  %4611 = vrsqrt.f32 %v1180_v3  ;;  %v1078_v35 = vmul.f32 0.03125, %v930_v33  ;;  %v1405_v9 = vadd.f32 %v5704_v10, %v1335_v43 }
 0x18d   : > { %v1117_v60 = vmul.f32 0.03125, %v1047_v20  ;;  %4613 = vrsqrt.f32 %v1141_v6  ;;  %v1480_v26 = vpack.c.bf16 %v1444_v61, %v1443_v14  ;;  %v1336_v54 = vmul.f32 %v5697_v59, %v1266_v22 }
 0x18e   : > { %v4604_v39 = vpop.eup %4603  ;;  %v1142_v36 = vadd.f32 1e-05, %v1078_v35  ;;  %v1375_v24 = vmul.f32 %v5697_v59, %v1305_v62 }
 0x18f   : > { %v1181_v12 = vadd.f32 1e-05, %v1117_v60  ;;  %v4606_v31 = vpop.eup %4605  ;;  %v1306_v25 = vmul.f32 %v4604_v39, %v5464_v53  ;;  %v1050_v50 = vpop.xlane.xlu1 %1049  ;;  %4376 = vmatmul.mubr.msk.bf16.gmra.mrb[12].mxu1 %vm479_vm0, %v1480_v26  ;;  %v1406_v52 = vadd.f32 %v5704_v10, %v1336_v54 }
 0x190   : > { %v933_v17 = vpop.xlane.xlu0 %932  ;;  %v1267_v34 = vmul.f32 %v4606_v31, %v5473_v55  ;;  %4615 = vrsqrt.f32 %v1142_v36  ;;  %v1118_v37 = vmul.f32 0.03125, %v1050_v50  ;;  %v1445_v42 = vadd.f32 %v5704_v10, %v1375_v24  ;;  %v6924_v31 = vld [vmem:[#allocation26_spill] sm:$0xff]  ;;  %v6925_v24 = vld [vmem:[#allocation27_spill] sm:$0xff] }
 0x191   : > { %v1079_v44 = vmul.f32 0.03125, %v933_v17  ;;  %4617 = vrsqrt.f32 %v1181_v12  ;;  %v1461_v46 = vpack.c.bf16 %v1406_v52, %v1405_v9  ;;  %v1376_v49 = vmul.f32 %v5697_v59, %v1306_v25 }
 0x192   : > { %v4608_v53 = vpop.eup %4607  ;;  %v1182_v47 = vadd.f32 1e-05, %v1118_v37  ;;  %v1337_v0 = vmul.f32 %v5697_v59, %v1267_v34 }
 0x193   : > { %v1143_v2 = vadd.f32 1e-05, %v1079_v44  ;;  %v4610_v30 = vpop.eup %4609  ;;  %v1268_v40 = vmul.f32 %v4608_v53, %v5476_v11  ;;  %v936_v63 = vpop.xlane.xlu1 %935  ;;  %4339 = vmatprep.mubr.msk.bf16.mxu0 %vm479_vm0, %v1461_v46  ;;  %v1446_v55 = vadd.f32 %v5704_v10, %v1376_v49 }
 0x194   : > { %v1053_v16 = vpop.xlane.xlu0 %1052  ;;  %v1307_v45 = vmul.f32 %v4610_v30, %v5485_v1  ;;  %4619 = vrsqrt.f32 %v1182_v47  ;;  %v1080_v23 = vmul.f32 0.03125, %v936_v63  ;;  %v1407_v51 = vadd.f32 %v5704_v10, %v1337_v0 }
 0x195   : > { %v1119_v29 = vmul.f32 0.03125, %v1053_v16  ;;  %4621 = vrsqrt.f32 %v1143_v2  ;;  %v1481_v4 = vpack.c.bf16 %v1446_v55, %v1445_v42  ;;  %v1338_v15 = vmul.f32 %v5697_v59, %v1268_v40  ;;  %v6926_v40 = vld [vmem:[#allocation28_spill] sm:$0xff] }
 0x196   : > { %v4612_v11 = vpop.eup %4611  ;;  %v1144_v41 = vadd.f32 1e-05, %v1080_v23  ;;  %v1377_v8 = vmul.f32 %v5697_v59, %v1307_v45  ;;  %v6927_v23 = vld [vmem:[#allocation29_spill] sm:$0xff] }
 0x197   : > { %v1183_v48 = vadd.f32 1e-05, %v1119_v29  ;;  %v4614_v5 = vpop.eup %4613  ;;  %v1308_v13 = vmul.f32 %v4612_v11, %v5488_v19  ;;  %v1056_v57 = vpop.xlane.xlu1 %1055  ;;  %4379 = vmatprep.mubr.msk.bf16.mxu1 %vm479_vm0, %v1481_v4  ;;  %v1408_v1 = vadd.f32 %v5704_v10, %v1338_v15 }
 0x198   : > { %v939_v21 = vpop.xlane.xlu0 %938  ;;  %v1269_v18 = vmul.f32 %v4614_v5, %v5497_v28  ;;  %4623 = vrsqrt.f32 %v1144_v41  ;;  %v1120_v32 = vmul.f32 0.03125, %v1056_v57  ;;  %v1447_v61 = vadd.f32 %v5704_v10, %v1377_v8 }
 0x199   : > { %v1081_v7 = vmul.f32 0.03125, %v939_v21  ;;  %4625 = vrsqrt.f32 %v1183_v48  ;;  %v1462_v38 = vpack.c.bf16 %v1408_v1, %v1407_v51  ;;  %v1378_v3 = vmul.f32 %v5697_v59, %v1308_v13  ;;  %v6928_v21 = vld [vmem:[#allocation30_spill] sm:$0xff] }
 0x19a   : > { %v4616_v19 = vpop.eup %4615  ;;  %v1184_v6 = vadd.f32 1e-05, %v1120_v32  ;;  %v1339_v43 = vmul.f32 %v5697_v59, %v1269_v18 }
 0x19b   : > { %v1145_v58 = vadd.f32 1e-05, %v1081_v7  ;;  %v4618_v22 = vpop.eup %4617  ;;  %v1270_v33 = vmul.f32 %v4616_v19, %v5500_v27  ;;  %v942_v20 = vpop.xlane.xlu1 %941  ;;  %4340 = vmatmul.mubr.msk.bf16.gmra.mrb[16].mxu0 %vm479_vm0, %v1462_v38  ;;  %v1448_v28 = vadd.f32 %v5704_v10, %v1378_v3  ;;  %v6929_v38 = vld [vmem:[#allocation31_spill] sm:$0xff] }
 0x19c   : > { %v945_v14 = vpop.xlane.xlu0 %944  ;;  %v1309_v62 = vmul.f32 %v4618_v22, %v5509_v56  ;;  %4627 = vrsqrt.f32 %v1184_v6  ;;  %v1082_v35 = vmul.f32 0.03125, %v942_v20  ;;  %v1409_v9 = vadd.f32 %v5704_v10, %v1339_v43 }
 0x19d   : > { %v1083_v60 = vmul.f32 0.03125, %v945_v14  ;;  %4629 = vrsqrt.f32 %v1145_v58  ;;  %v1482_v26 = vpack.c.bf16 %v1448_v28, %v1447_v61  ;;  %v1340_v54 = vmul.f32 %v5697_v59, %v1270_v33  ;;  %v6930_v28 = vld [vmem:[#allocation32_spill] sm:$0xff] }
 0x19e   : > { %v4620_v27 = vpop.eup %4619  ;;  %v1146_v39 = vadd.f32 1e-05, %v1082_v35  ;;  %v1379_v52 = vmul.f32 %v5697_v59, %v1309_v62 }
 0x19f   : > { %v1147_v36 = vadd.f32 1e-05, %v1083_v60  ;;  %v4622_v12 = vpop.eup %4621  ;;  %v1310_v25 = vmul.f32 %v4620_v27, %v6924_v31  ;;  %v948_v50 = vpop.xlane.xlu1 %947  ;;  %4380 = vmatmul.mubr.msk.bf16.gmra.mrb[16].mxu1 %vm479_vm0, %v1482_v26  ;;  %v1410_v56 = vadd.f32 %v5704_v10, %v1340_v54  ;;  %v6931_v27 = vld [vmem:[#allocation4_spill] sm:$0xff] }
 0x1a0   : > { %v2024_v17 = vpop.xlane.xlu0 %2023  ;;  %v1271_v34 = vmul.f32 %v4622_v12, %v6925_v24  ;;  %4631 = vrsqrt.f32 %v1146_v39  ;;  %v1084_v37 = vmul.f32 0.03125, %v948_v50  ;;  %v1449_v55 = vadd.f32 %v5704_v10, %v1379_v52  ;;  %v6932_v52 = vld [vmem:[#allocation5_spill] sm:$0xff] }
 0x1a1   : > { %v2046_v44 = vmul.f32 0.03125, %v2024_v17  ;;  %4633 = vrsqrt.f32 %v1147_v36  ;;  %v1463_v46 = vpack.c.bf16 %v1410_v56, %v1409_v9  ;;  %v1380_v49 = vmul.f32 %v5697_v59, %v1310_v25 }
 0x1a2   : > { %v4624_v53 = vpop.eup %4623  ;;  %v1148_v47 = vadd.f32 1e-05, %v1084_v37  ;;  %v1341_v45 = vmul.f32 %v5697_v59, %v1271_v34  ;;  %v1958_v34 = vld [vmem:[%s6795_s7] sm:$0xff] }
 0x1a3   : > { %v2054_v2 = vadd.f32 1e-05, %v2046_v44  ;;  %v4626_v30 = vpop.eup %4625  ;;  %v1272_v63 = vmul.f32 %v4624_v53, %v6926_v40  ;;  %v2027_v16 = vpop.xlane.xlu1 %2026  ;;  %4343 = vmatprep.mubr.msk.bf16.mxu0 %vm479_vm0, %v1463_v46  ;;  %v1450_v0 = vadd.f32 %v5704_v10, %v1380_v49 }
 0x1a4   : > { %v951_v42 = vpop.xlane.xlu0 %950  ;;  %v1311_v29 = vmul.f32 %v4626_v30, %v6927_v23  ;;  %4635 = vrsqrt.f32 %v1148_v47  ;;  %v2047_v4 = vmul.f32 0.03125, %v2027_v16  ;;  %v1411_v18 = vadd.f32 %v5704_v10, %v1341_v45  ;;  %v6933_v47 = vld [vmem:[#allocation6_spill] sm:$0xff]  ;;  %v1959_v45 = vld [vmem:[%s6795_s7 + $0x8] sm:$0xff] }
 0x1a5   : > { %v1085_v15 = vmul.f32 0.03125, %v951_v42  ;;  %4637 = vrsqrt.f32 %v2054_v2  ;;  %v1483_v11 = vpack.c.bf16 %v1450_v0, %v1449_v55  ;;  %v1342_v41 = vmul.f32 %v5697_v59, %v1272_v63 }
 0x1a6   : > { %v4628_v48 = vpop.eup %4627  ;;  %v2055_v5 = vadd.f32 1e-05, %v2047_v4  ;;  %v1381_v7 = vmul.f32 %v5697_v59, %v1311_v29  ;;  %v4794_v63 = vmov 0  }
 0x1a7   : > { %v1149_v13 = vadd.f32 1e-05, %v1085_v15  ;;  %v4630_v57 = vpop.eup %4629  ;;  %v1312_v51 = vmul.f32 %v4628_v48, %v6928_v21  ;;  %v954_v1 = vpop.xlane.xlu1 %953  ;;  %4383 = vmatprep.mubr.msk.bf16.mxu1 %vm479_vm0, %v1483_v11  ;;  %v1412_v32 = vadd.f32 %v5704_v10, %v1342_v41  ;;  %v1966_v15 = vld [vmem:[%s6796_s8] sm:$0xff]  ;;  %v6934_v11 = vld [vmem:[#allocation7_spill] sm:$0xff]  ;;  %v1967_v21 = vld [vmem:[%s6796_s8 + $0x8] sm:$0xff] }
 0x1a8   : > { %v957_v8 = vpop.xlane.xlu0 %956  ;;  %v1273_v3 = vmul.f32 %v4630_v57, %v6929_v38  ;;  %4639 = vrsqrt.f32 %v2055_v5  ;;  %v1086_v19 = vmul.f32 0.03125, %v954_v1  ;;  %v1451_v60 = vadd.f32 %v5704_v10, %v1381_v7 }
 0x1a9   : > { %v1087_v6 = vmul.f32 0.03125, %v957_v8  ;;  %4641 = vrsqrt.f32 %v1149_v13  ;;  %v1464_v58 = vpack.c.bf16 %v1412_v32, %v1411_v18  ;;  %v1382_v22 = vmul.f32 %v5697_v59, %v1312_v51  ;;  %v6935_v51 = vld [vmem:[#allocation8_spill] sm:$0xff] }
 0x1aa   : > { %v4632_v33 = vpop.eup %4631  ;;  %v1150_v20 = vadd.f32 1e-05, %v1086_v19  ;;  %v1343_v54 = vmul.f32 %v5697_v59, %v1273_v3 }
 0x1ab   : > { %v1151_v14 = vadd.f32 1e-05, %v1087_v6  ;;  %v4634_v61 = vpop.eup %4633  ;;  %v1274_v43 = vmul.f32 %v4632_v33, %v6930_v28  ;;  %v960_v62 = vpop.xlane.xlu1 %959  ;;  %4344 = vmatmul.mubr.msk.bf16.gmra.mrb[20].mxu0 %vm479_vm0, %v1464_v58  ;;  %v1452_v26 = vadd.f32 %v5704_v10, %v1382_v22  ;;  %v6936_v22 = vld [vmem:[#allocation9_spill] sm:$0xff] }
 0x1ac   : > { %v2030_v35 = vpop.xlane.xlu0 %2029  ;;  %v1275_v39 = vmul.f32 %v4634_v61, %v6931_v27  ;;  %4643 = vrsqrt.f32 %v1150_v20  ;;  %v1088_v36 = vmul.f32 0.03125, %v960_v62  ;;  %v1413_v46 = vadd.f32 %v5704_v10, %v1343_v54  ;;  %v5916_v54 = vld [vmem:[%s6793_s5] ss:$0 sm:$0xff] }
 0x1ad   : > { %v2048_v12 = vmul.f32 0.03125, %v2030_v35  ;;  %4645 = vrsqrt.f32 %v1151_v14  ;;  %v1484_v31 = vpack.c.bf16 %v1452_v26, %v1451_v60  ;;  %v1344_v25 = vmul.f32 %v5697_v59, %v1274_v43  ;;  %v6937_v43 = vld [vmem:[#allocation10_spill] sm:$0xff] }
 0x1ae   : > { %v4636_v50 = vpop.eup %4635  ;;  %v1152_v17 = vadd.f32 1e-05, %v1088_v36  ;;  %v1345_v53 = vmul.f32 %v5697_v59, %v1275_v39 }
 0x1af   : > { %v2056_v9 = vadd.f32 1e-05, %v2048_v12  ;;  %v4638_v56 = vpop.eup %4637  ;;  %v1276_v24 = vmul.f32 %v4636_v50, %v6932_v52  ;;  %v2033_v37 = vpop.xlane.xlu1 %2032  ;;  %4384 = vmatmul.mubr.msk.bf16.gmra.mrb[20].mxu1 %vm479_vm0, %v1484_v31  ;;  %v1414_v49 = vadd.f32 %v5704_v10, %v1344_v25  ;;  %v6938_v25 = vld [vmem:[#allocation11_spill] sm:$0xff] }
 0x1b0   : > { %v963_v44 = vpop.xlane.xlu0 %962  ;;  %v2070_v2 = vmul.f32 %v4638_v56, %v6933_v47  ;;  %4647 = vrsqrt.f32 %v1152_v17  ;;  %v2049_v30 = vmul.f32 0.03125, %v2033_v37  ;;  %2166 = vmatprep.mubr.bf16.mxu1 %v4794_v63  ;;  %v1415_v13 = vadd.f32 %v5704_v10, %v1345_v53 }
 0x1b1   : > { %v1089_v40 = vmul.f32 0.03125, %v963_v44  ;;  %4649 = vrsqrt.f32 %v2056_v9  ;;  %v1465_v16 = vpack.c.bf16 %v1414_v49, %v1413_v46  ;;  %v1346_v42 = vmul.f32 %v5697_v59, %v1276_v24  ;;  %v6939_v24 = vld [vmem:[#allocation12_spill] sm:$0xff]  ;;  %v1960_v46 = vld [vmem:[%s6795_s7 + $0x10] sm:$0xff] }
 0x1b2   : > { %v4640_v55 = vpop.eup %4639  ;;  %v2078_v0 = vmul.f32 %v2070_v2, %v1958_v34  ;;  %v2057_v23 = vadd.f32 1e-05, %v2049_v30  ;;  %v1961_v30 = vld [vmem:[%s6795_s7 + $0x18] sm:$0xff] }
 0x1b3   : > { %v1153_v29 = vadd.f32 1e-05, %v1089_v40  ;;  %v4642_v4 = vpop.eup %4641  ;;  %v2071_v41 = vmul.f32 %v4640_v55, %v6934_v11  ;;  %v966_v48 = vpop.xlane.xlu1 %965  ;;  %4347 = vmatprep.mubr.msk.bf16.mxu0 %vm479_vm0, %v1465_v16  ;;  %v1416_v57 = vadd.f32 %v5704_v10, %v1346_v42  ;;  %v6940_v16 = vld [vmem:[#allocation13_spill] sm:$0xff] }
 0x1b4   : > { %v969_v5 = vpop.xlane.xlu0 %968  ;;  %v1277_v1 = vmul.f32 %v4642_v4, %v6935_v51  ;;  %4651 = vrsqrt.f32 %v2057_v23  ;;  %v1090_v8 = vmul.f32 0.03125, %v966_v48  ;;  %v2086_v3 = vadd.f32 %v2078_v0, %v1966_v15  ;;  %v6941_v15 = vld [vmem:[#allocation14_spill] sm:$0xff] }
 0x1b5   : > { %v2079_v18 = vmul.f32 %v2071_v41, %v1959_v45  ;;  %4653 = vrsqrt.f32 %v1153_v29  ;;  %v1091_v32 = vmul.f32 0.03125, %v969_v5  ;;  %v1466_v7 = vpack.c.bf16 %v1416_v57, %v1415_v13  ;;  %v5938_v45 = vld [vmem:[%s6794_s6] ss:$0 sm:$0xff]  ;;  %v1968_v5 = vld [vmem:[%s6796_s8 + $0x10] sm:$0xff]  ;;  %v1969_v13 = vld [vmem:[%s6796_s8 + $0x18] sm:$0xff] }
 0x1b6   : > { %v4644_v38 = vpop.eup %4643  ;;  %v1154_v19 = vadd.f32 1e-05, %v1090_v8  ;;  %v1347_v28 = vmul.f32 %v5697_v59, %v1277_v1 }
 0x1b7   : > { %v4646_v6 = vpop.eup %4645  ;;  %v2087_v58 = vadd.f32 %v2079_v18, %v1967_v21  ;;  %v1278_v33 = vmul.f32 %v4644_v38, %v6936_v22  ;;  %v1155_v20 = vadd.f32 1e-05, %v1091_v32  ;;  %v972_v14 = vpop.xlane.xlu1 %971  ;;  %4348 = vmatmul.mubr.msk.bf16.gmra.mrb[24].mxu0 %vm479_vm0, %v1466_v7  ;;  %v6942_v32 = vld [vmem:[#allocation15_spill] sm:$0xff]  ;;  %v6943_v22 = vld [vmem:[#allocation16_spill] sm:$0xff] }
 0x1b8   : > { %v2036_v61 = vpop.xlane.xlu0 %2035  ;;  %v1279_v62 = vmul.f32 %v4646_v6, %v6937_v43  ;;  %4655 = vrsqrt.f32 %v1154_v19  ;;  %v1092_v35 = vmul.f32 0.03125, %v972_v14  ;;  %v1417_v9 = vadd.f32 %v5704_v10, %v1347_v28 }
 0x1b9   : > { %v2050_v60 = vmul.f32 0.03125, %v2036_v61  ;;  %4657 = vrsqrt.f32 %v1155_v20  ;;  %v2094_v26 = vpack.c.bf16 %v2087_v58, %v2086_v3  ;;  %v1348_v27 = vmul.f32 %v5916_v54, %v1278_v33 }
 0x1ba   : > { %v4648_v39 = vpop.eup %4647  ;;  %v1156_v36 = vadd.f32 1e-05, %v1092_v35  ;;  %v1349_v52 = vmul.f32 %v5916_v54, %v1279_v62 }
 0x1bb   : > { %v2058_v12 = vadd.f32 1e-05, %v2050_v60  ;;  %v4650_v31 = vpop.eup %4649  ;;  %v1280_v59 = vmul.f32 %v4648_v39, %v6938_v25  ;;  %v2039_v50 = vpop.xlane.xlu1 %2038  ;;  %4065 = vmatmul.mubr.msk.bf16.vlgmr.msra.gmra.mrb[24].mxu1 %vm479_vm0, %v2094_v26  ;;  %v1418_v56 = vadd.f32 %v5704_v10, %v1348_v27  ;;  %v6944_v26 = vld [vmem:[#allocation17_spill] sm:$0xff]  ;;  %v6945_v25 = vld [vmem:[#allocation18_spill] sm:$0xff] }
 0x1bc   : > { %v975_v17 = vpop.xlane.xlu0 %974  ;;  %v2072_v34 = vmul.f32 %v4650_v31, %v6939_v24  ;;  %4659 = vrsqrt.f32 %v1156_v36  ;;  %v2051_v37 = vmul.f32 0.03125, %v2039_v50  ;;  %2176 = vmatprep.mubr.bf16.mxu1 %v4794_v63  ;;  %v1419_v23 = vadd.f32 %v5938_v45, %v1349_v52 }
 0x1bd   : > { %v1093_v44 = vmul.f32 0.03125, %v975_v17  ;;  %4661 = vrsqrt.f32 %v2058_v12  ;;  %v1467_v49 = vpack.c.bf16 %v1418_v56, %v1417_v9  ;;  %v1350_v53 = vmul.f32 %v5916_v54, %v1280_v59  ;;  %v1962_v17 = vld [vmem:[%s6795_s7 + $0x20] sm:$0xff] }
 0x1be   : > { %v4652_v47 = vpop.eup %4651  ;;  %v2059_v2 = vadd.f32 1e-05, %v2051_v37  ;;  %v2080_v4 = vmul.f32 %v2072_v34, %v1960_v46  ;;  %v1963_v34 = vld [vmem:[%s6795_s7 + $0x28] sm:$0xff] }
 0x1bf   : > { %v1157_v10 = vadd.f32 1e-05, %v1093_v44  ;;  %v4654_v40 = vpop.eup %4653  ;;  %v2073_v42 = vmul.f32 %v4652_v47, %v6940_v16  ;;  %v978_v55 = vpop.xlane.xlu1 %977  ;;  %4351 = vmatprep.mubr.msk.bf16.mxu0 %vm479_vm0, %v1467_v49  ;;  %v1420_v29 = vadd.f32 %v5938_v45, %v1350_v53  ;;  %v6946_v44 = vld [vmem:[#allocation19_spill] sm:$0xff] }
 0x1c0   : > { %v981_v0 = vpop.xlane.xlu0 %980  ;;  %v1281_v11 = vmul.f32 %v4654_v40, %v6941_v15  ;;  %4663 = vrsqrt.f32 %v2059_v2  ;;  %v1094_v41 = vmul.f32 0.03125, %v978_v55  ;;  %v2088_v19 = vadd.f32 %v2080_v4, %v1968_v5  ;;  %v6947_v2 = vld [vmem:[#allocation20_spill] sm:$0xff]  ;;  %v1971_v40 = vld [vmem:[%s6796_s8 + $0x28] sm:$0xff] }
 0x1c1   : > { %v1095_v48 = vmul.f32 0.03125, %v981_v0  ;;  %4665 = vrsqrt.f32 %v1157_v10  ;;  %v1468_v57 = vpack.c.bf16 %v1420_v29, %v1419_v23  ;;  %v2081_v21 = vmul.f32 %v2073_v42, %v1961_v30  ;;  %v1970_v30 = vld [vmem:[%s6796_s8 + $0x20] sm:$0xff]  ;;  %v6948_v23 = vld [vmem:[#allocation21_spill] sm:$0xff] }
 0x1c2   : > { %v4656_v51 = vpop.eup %4655  ;;  %v1158_v1 = vadd.f32 1e-05, %v1094_v41  ;;  %v1351_v58 = vmul.f32 %v5916_v54, %v1281_v11  ;;  %v6949_v41 = vld [vmem:[#allocation22_spill] sm:$0xff] }
 0x1c3   : > { %v1159_v8 = vadd.f32 1e-05, %v1095_v48  ;;  %v4658_v18 = vpop.eup %4657  ;;  %v1282_v7 = vmul.f32 %v4656_v51, %v6942_v32  ;;  %v984_v38 = vpop.xlane.xlu1 %983  ;;  %4352 = vmatmul.mubr.msk.bf16.gmra.mrb[28].mxu0 %vm479_vm0, %v1468_v57  ;;  %v2089_v6 = vadd.f32 %v2081_v21, %v1969_v13  ;;  %v6950_v51 = vld [vmem:[#allocation23_spill] sm:$0xff] }
 0x1c4   : > { %v2042_v3 = vpop.xlane.xlu0 %2041  ;;  %v1283_v33 = vmul.f32 %v4658_v18, %v6943_v22  ;;  %4667 = vrsqrt.f32 %v1158_v1  ;;  %v1096_v20 = vmul.f32 0.03125, %v984_v38  ;;  %v1421_v36 = vadd.f32 %v5938_v45, %v1351_v58  ;;  %v1965_v22 = vld [vmem:[%s6795_s7 + $0x38] sm:$0xff] }
 0x1c5   : > { %v2052_v14 = vmul.f32 0.03125, %v2042_v3  ;;  %4669 = vrsqrt.f32 %v1159_v8  ;;  %v2095_v61 = vpack.c.bf16 %v2089_v6, %v2088_v19  ;;  %v1352_v28 = vmul.f32 %v5916_v54, %v1282_v7  ;;  %v6951_v7 = vld [vmem:[#allocation24_spill] sm:$0xff]  ;;  %v1964_v3 = vld [vmem:[%s6795_s7 + $0x30] sm:$0xff] }
 0x1c6   : > { %v4660_v43 = vpop.eup %4659  ;;  %v1160_v62 = vadd.f32 1e-05, %v1096_v20  ;;  %v1353_v31 = vmul.f32 %v5916_v54, %v1283_v33  ;;  %v6952_v33 = vld [vmem:[#allocation33_spill] sm:$0xff] }
 0x1c7   : > { %v2060_v35 = vadd.f32 1e-05, %v2052_v14  ;;  %v4662_v60 = vpop.eup %4661  ;;  %v1284_v27 = vmul.f32 %v4660_v43, %v6944_v26  ;;  %v2045_v39 = vpop.xlane.xlu1 %2044  ;;  %4066 = vmatmul.mubr.msk.bf16.gmra.mrb[28].mxu1 %vm479_vm0, %v2095_v61  ;;  %v1422_v12 = vadd.f32 %v5938_v45, %v1352_v28  ;;  %v1972_v28 = vld [vmem:[%s6796_s8 + $0x30] sm:$0xff] }
 0x1c8   : > { %v2074_v59 = vmul.f32 %v4662_v60, %v6945_v25  ;;  %4671 = vrsqrt.f32 %v1160_v62  ;;  %v2053_v50 = vmul.f32 0.03125, %v2045_v39  ;;  %2186 = vmatprep.mubr.bf16.mxu1 %v4794_v63  ;;  %v1423_v49 = vadd.f32 %v5938_v45, %v1353_v31 }
 0x1c9   : > { %4673 = vrsqrt.f32 %v2060_v35  ;;  %v1469_v9 = vpack.c.bf16 %v1422_v12, %v1421_v36  ;;  %v1354_v56 = vmul.f32 %v5916_v54, %v1284_v27 }
 0x1ca   : > { %v4664_v52 = vpop.eup %4663  ;;  %v2061_v24 = vadd.f32 1e-05, %v2053_v50  ;;  %v2082_v47 = vmul.f32 %v2074_v59, %v1962_v17 }
 0x1cb   : > { %v4666_v37 = vpop.eup %4665  ;;  %v2075_v46 = vmul.f32 %v4664_v52, %v6946_v44  ;;  %4355 = vmatprep.mubr.msk.bf16.mxu0 %vm479_vm0, %v1469_v9  ;;  %v1424_v53 = vadd.f32 %v5938_v45, %v1354_v56  ;;  %v6013_v52 = vld [vmem:[%s6797_s9] sm:$0xff]  ;;  %v6033_v44 = vld [vmem:[%s6792_s4 + $0x8] sm:$0xf] }
 0x1cc   : > { %v1285_v10 = vmul.f32 %v4666_v37, %v6947_v2  ;;  %4675 = vrsqrt.f32 %v2061_v24  ;;  %v2090_v4 = vadd.f32 %v2082_v47, %v1970_v30  ;;  %v6018_v24 = vld [vmem:[%s6798_s10] ss:$0 sm:$0xff]  ;;  %v6028_v37 = vld [vmem:[%s6792_s4 + $0x4] sm:$0xf]  ;;  %v6053_v47 = vld [vmem:[%s6792_s4 + $0x18] sm:$0xf] }
 0x1cd   : > { %v1470_v16 = vpack.c.bf16 %v1424_v53, %v1423_v49  ;;  %v2083_v42 = vmul.f32 %v2075_v46, %v1963_v34  ;;  %v6023_v34 = vld [vmem:[%s6792_s4] sm:$0xf]  ;;  %v6038_v46 = vld [vmem:[%s6792_s4 + $0xc] sm:$0xf]  ;;  %v6043_v49 = vld [vmem:[%s6792_s4 + $0x10] sm:$0xf] }
 0x1ce   : > { %v4668_v55 = vpop.eup %4667  ;;  %v1355_v11 = vmul.f32 %v5916_v54, %v1285_v10  ;;  %v6048_v53 = vld [vmem:[%s6792_s4 + $0x14] sm:$0xf]  ;;  %v6058_v2 = vld [vmem:[%s6792_s4 + $0x1c] sm:$0xf] }
 0x1cf   : > { %v4670_v0 = vpop.eup %4669  ;;  %v1286_v29 = vmul.f32 %v4668_v55, %v6948_v23  ;;  %4356 = vmatmul.mubr.msk.bf16.gmra.mrb[32].mxu0 %vm479_vm0, %v1470_v16  ;;  %v2091_v15 = vadd.f32 %v2083_v42, %v1971_v40 }
 0x1d0   : > { %v1287_v48 = vmul.f32 %v4670_v0, %v6949_v41  ;;  %v1425_v8 = vadd.f32 %v5938_v45, %v1355_v11 }
 0x1d1   : > { %v2096_v5 = vpack.c.bf16 %v2091_v15, %v2090_v4  ;;  %v1356_v13 = vmul.f32 %v5916_v54, %v1286_v29 }
 0x1d2   : > { %v4672_v57 = vpop.eup %4671  ;;  %v1357_v32 = vmul.f32 %v5916_v54, %v1287_v48 }
 0x1d3   : > { %v4674_v21 = vpop.eup %4673  ;;  %v1288_v1 = vmul.f32 %v4672_v57, %v6950_v51  ;;  %4067 = vmatmul.mubr.msk.bf16.gmra.mrb[32].mxu1 %vm479_vm0, %v2096_v5  ;;  %v1426_v18 = vadd.f32 %v5938_v45, %v1356_v13 }
 0x1d4   : > { %v2076_v38 = vmul.f32 %v4674_v21, %v6951_v7  ;;  %2196 = vmatprep.mubr.bf16.mxu1 %v4794_v63  ;;  %v1427_v14 = vadd.f32 %v5938_v45, %v1357_v32 }
 0x1d5   : > { %v1471_v19 = vpack.c.bf16 %v1426_v18, %v1425_v8  ;;  %v1358_v6 = vmul.f32 %v5916_v54, %v1288_v1  ;;  %v1973_v54 = vld [vmem:[%s6796_s8 + $0x38] sm:$0xff] }
 0x1d6   : > { %v4676_v58 = vpop.eup %4675  ;;  %v2084_v61 = vmul.f32 %v2076_v38, %v1964_v3 }
 0x1d7   : > { %v2077_v20 = vmul.f32 %v4676_v58, %v6952_v33  ;;  %4359 = vmatprep.mubr.msk.bf16.mxu0 %vm479_vm0, %v1471_v19  ;;  %v1428_v63 = vadd.f32 %v5938_v45, %v1358_v6 }
 0x1d8   : > { %v2092_v35 = vadd.f32 %v2084_v61, %v1972_v28 }
 0x1d9   : > { %v1472_v43 = vpack.c.bf16 %v1428_v63, %v1427_v14  ;;  %v2085_v62 = vmul.f32 %v2077_v20, %v1965_v22 }
 0x1db   : > { %4360 = vmatmul.mubr.msk.bf16.gmra.mrb[36].mxu0 %vm479_vm0, %v1472_v43  ;;  %v2093_v60 = vadd.f32 %v2085_v62, %v1973_v54 }
 0x1dd   : > { %v2097_v26 = vpack.c.bf16 %v2093_v60, %v2092_v35 }
 0x1df   : > { %4068 = vmatmul.mubr.msk.bf16.gmra.mrb[36].mxu1 %vm479_vm0, %v2097_v26 }
 0x22e   : > { %v4325_v27 = vpop.f32.mrb[0].mxu0 }
 0x22f   : > { %v1631_v45 = vpop.f32.mrb[1].mxu0 }
 0x230   : > { %v4326_v39 = vpop.f32.mrb[2].mxu0 }
 0x231   : > { %v1887_v36 = vpack.c.bf16 %v4326_v39, %v4325_v27  ;;  %v1634_v12 = vpop.f32.mrb[3].mxu0 }
 0x232   : > { %v1886_v31 = vpack.c.bf16 %v1634_v12, %v1631_v45  ;;  %v4365_v25 = vpop.f32.mrb[0].mxu1 }
 0x233   : > { %1919 = vst [vmem:[#allocation2 + $0x8] sm:$0xff] %v1887_v36  ;;  %v1791_v59 = vpop.f32.mrb[1].mxu1 }
 0x234   : > { %1918 = vst [vmem:[#allocation2] sm:$0xff] %v1886_v31  ;;  %v4366_v50 = vpop.f32.mrb[2].mxu1 }
 0x235   : > { %v1907_v17 = vpack.c.bf16 %v4366_v50, %v4365_v25  ;;  %v1794_v9 = vpop.f32.mrb[3].mxu1 }
 0x236   : > { %v1906_v56 = vpack.c.bf16 %v1794_v9, %v1791_v59 }
 0x237   : > { %1939 = vst [vmem:[#allocation2 + $0xa8] sm:$0xff] %v1907_v17 }
 0x238   : > { %1938 = vst [vmem:[#allocation2 + $0xa0] sm:$0xff] %v1906_v56 }
 0x23e   : > { %v4329_v10 = vpop.f32.mrb[4].mxu0 }
 0x23f   : > { %v1647_v30 = vpop.f32.mrb[5].mxu0 }
 0x240   : > { %v4330_v40 = vpop.f32.mrb[6].mxu0 }
 0x241   : > { %v1889_v16 = vpack.c.bf16 %v4330_v40, %v4329_v10  ;;  %v1650_v42 = vpop.f32.mrb[7].mxu0 }
 0x242   : > { %v1888_v55 = vpack.c.bf16 %v1650_v42, %v1647_v30  ;;  %v4369_v0 = vpop.f32.mrb[4].mxu1 }
 0x243   : > { %1921 = vst [vmem:[#allocation2 + $0x18] sm:$0xff] %v1889_v16  ;;  %v1807_v23 = vpop.f32.mrb[5].mxu1 }
 0x244   : > { %1920 = vst [vmem:[#allocation2 + $0x10] sm:$0xff] %v1888_v55  ;;  %v4370_v29 = vpop.f32.mrb[6].mxu1 }
 0x245   : > { %v1909_v4 = vpack.c.bf16 %v4370_v29, %v4369_v0  ;;  %v1810_v15 = vpop.f32.mrb[7].mxu1 }
 0x246   : > { %v1908_v11 = vpack.c.bf16 %v1810_v15, %v1807_v23 }
 0x247   : > { %1941 = vst [vmem:[#allocation2 + $0xb8] sm:$0xff] %v1909_v4 }
 0x248   : > { %1940 = vst [vmem:[#allocation2 + $0xb0] sm:$0xff] %v1908_v11 }
 0x24e   : > { %v4333_v41 = vpop.f32.mrb[8].mxu0 }
 0x24f   : > { %v1663_v48 = vpop.f32.mrb[9].mxu0 }
 0x250   : > { %v4334_v5 = vpop.f32.mrb[10].mxu0 }
 0x251   : > { %v1891_v13 = vpack.c.bf16 %v4334_v5, %v4333_v41  ;;  %v1666_v57 = vpop.f32.mrb[11].mxu0 }
 0x252   : > { %v1890_v21 = vpack.c.bf16 %v1666_v57, %v1663_v48  ;;  %v4373_v51 = vpop.f32.mrb[8].mxu1 }
 0x253   : > { %1923 = vst [vmem:[#allocation2 + $0x28] sm:$0xff] %v1891_v13  ;;  %v1823_v1 = vpop.f32.mrb[9].mxu1 }
 0x254   : > { %1922 = vst [vmem:[#allocation2 + $0x20] sm:$0xff] %v1890_v21  ;;  %v4374_v8 = vpop.f32.mrb[10].mxu1 }
 0x255   : > { %v1911_v18 = vpack.c.bf16 %v4374_v8, %v4373_v51  ;;  %v1826_v32 = vpop.f32.mrb[11].mxu1 }
 0x256   : > { %v1910_v7 = vpack.c.bf16 %v1826_v32, %v1823_v1 }
 0x257   : > { %1943 = vst [vmem:[#allocation2 + $0xc8] sm:$0xff] %v1911_v18 }
 0x258   : > { %1942 = vst [vmem:[#allocation2 + $0xc0] sm:$0xff] %v1910_v7 }
 0x25e   : > { %v4337_v38 = vpop.f32.mrb[12].mxu0 }
 0x25f   : > { %v1679_v3 = vpop.f32.mrb[13].mxu0 }
 0x260   : > { %v4338_v19 = vpop.f32.mrb[14].mxu0 }
 0x261   : > { %v1893_v6 = vpack.c.bf16 %v4338_v19, %v4337_v38  ;;  %v1682_v58 = vpop.f32.mrb[15].mxu0 }
 0x262   : > { %v1892_v22 = vpack.c.bf16 %v1682_v58, %v1679_v3  ;;  %v4377_v33 = vpop.f32.mrb[12].mxu1 }
 0x263   : > { %1925 = vst [vmem:[#allocation2 + $0x38] sm:$0xff] %v1893_v6  ;;  %v1839_v20 = vpop.f32.mrb[13].mxu1 }
 0x264   : > { %1924 = vst [vmem:[#allocation2 + $0x30] sm:$0xff] %v1892_v22  ;;  %v4378_v14 = vpop.f32.mrb[14].mxu1 }
 0x265   : > { %v1913_v63 = vpack.c.bf16 %v4378_v14, %v4377_v33  ;;  %v1842_v61 = vpop.f32.mrb[15].mxu1 }
 0x266   : > { %v1912_v28 = vpack.c.bf16 %v1842_v61, %v1839_v20 }
 0x267   : > { %1945 = vst [vmem:[#allocation2 + $0xd8] sm:$0xff] %v1913_v63 }
 0x268   : > { %1944 = vst [vmem:[#allocation2 + $0xd0] sm:$0xff] %v1912_v28 }
 0x26e   : > { %v4341_v54 = vpop.f32.mrb[16].mxu0 }
 0x26f   : > { %v1695_v43 = vpop.f32.mrb[17].mxu0 }
 0x270   : > { %v4342_v62 = vpop.f32.mrb[18].mxu0 }
 0x271   : > { %v1895_v35 = vpack.c.bf16 %v4342_v62, %v4341_v54  ;;  %v1698_v60 = vpop.f32.mrb[19].mxu0 }
 0x272   : > { %v1894_v26 = vpack.c.bf16 %v1698_v60, %v1695_v43  ;;  %v4381_v27 = vpop.f32.mrb[16].mxu1 }
 0x273   : > { %1927 = vst [vmem:[#allocation2 + $0x48] sm:$0xff] %v1895_v35  ;;  %v1855_v45 = vpop.f32.mrb[17].mxu1 }
 0x274   : > { %1926 = vst [vmem:[#allocation2 + $0x40] sm:$0xff] %v1894_v26  ;;  %v4382_v39 = vpop.f32.mrb[18].mxu1 }
 0x275   : > { %v1915_v36 = vpack.c.bf16 %v4382_v39, %v4381_v27  ;;  %v1858_v12 = vpop.f32.mrb[19].mxu1 }
 0x276   : > { %v1914_v31 = vpack.c.bf16 %v1858_v12, %v1855_v45 }
 0x277   : > { %1947 = vst [vmem:[#allocation2 + $0xe8] sm:$0xff] %v1915_v36 }
 0x278   : > { %1946 = vst [vmem:[#allocation2 + $0xe0] sm:$0xff] %v1914_v31 }
 0x27e   : > { %v4345_v25 = vpop.f32.mrb[20].mxu0 }
 0x27f   : > { %v1711_v59 = vpop.f32.mrb[21].mxu0 }
 0x280   : > { %v4346_v50 = vpop.f32.mrb[22].mxu0 }
 0x281   : > { %v1897_v17 = vpack.c.bf16 %v4346_v50, %v4345_v25  ;;  %v1714_v9 = vpop.f32.mrb[23].mxu0 }
 0x282   : > { %v1896_v56 = vpack.c.bf16 %v1714_v9, %v1711_v59  ;;  %v4385_v10 = vpop.f32.mrb[20].mxu1 }
 0x283   : > { %1929 = vst [vmem:[#allocation2 + $0x58] sm:$0xff] %v1897_v17  ;;  %v1871_v30 = vpop.f32.mrb[21].mxu1 }
 0x284   : > { %1928 = vst [vmem:[#allocation2 + $0x50] sm:$0xff] %v1896_v56  ;;  %v4386_v40 = vpop.f32.mrb[22].mxu1 }
 0x285   : > { %v1917_v16 = vpack.c.bf16 %v4386_v40, %v4385_v10  ;;  %v1874_v42 = vpop.f32.mrb[23].mxu1 }
 0x286   : > { %v1916_v55 = vpack.c.bf16 %v1874_v42, %v1871_v30 }
 0x287   : > { %1949 = vst [vmem:[#allocation2 + $0xf8] sm:$0xff] %v1917_v16 }
 0x288   : > { %1948 = vst [vmem:[#allocation2 + $0xf0] sm:$0xff] %v1916_v55 }
 0x28a   : > { %v4349_v0 = vpop.f32.mrb[24].mxu0 }
 0x28b   : > { %v1727_v23 = vpop.f32.mrb[25].mxu0 }
 0x28c   : > { %v4350_v29 = vpop.f32.mrb[26].mxu0 }
 0x28d   : > { %v1899_v4 = vpack.c.bf16 %v4350_v29, %v4349_v0  ;;  %v1730_v15 = vpop.f32.mrb[27].mxu0 }
 0x28e   : > { %v1898_v11 = vpack.c.bf16 %v1730_v15, %v1727_v23  ;;  %v2168_v41 = vpop.f32.mrb[24].mxu1 }
 0x28f   : > { %1931 = vst [vmem:[#allocation2 + $0x68] sm:$0xff] %v1899_v4  ;;  %v2170_v48 = vpop.f32.mrb[25].mxu1 }
 0x290   : > { %1930 = vst [vmem:[#allocation2 + $0x60] sm:$0xff] %v1898_v11  ;;  %v2172_v5 = vpop.f32.mrb[26].mxu1 }
 0x291   : > { %v2207_v13 = vpack.c.bf16 %v2172_v5, %v2168_v41  ;;  %v2174_v57 = vpop.f32.mrb[27].mxu1 }
 0x292   : > { %v2208_v21 = vpack.c.bf16 %v2174_v57, %v2170_v48 }
 0x293   : > { %2215 = vst [vmem:[#allocation3] sm:$0xff] %v2207_v13 }
 0x294   : > { %2217 = vst.msk [vmem:[#allocation3 + $0x8] sm:$0xff] %vm2216_vm1, %v2208_v21 }
 0x296   : > { %v4353_v51 = vpop.f32.mrb[28].mxu0 }
 0x297   : > { %v1743_v1 = vpop.f32.mrb[29].mxu0 }
 0x298   : > { %v4354_v8 = vpop.f32.mrb[30].mxu0 }
 0x299   : > { %v1901_v18 = vpack.c.bf16 %v4354_v8, %v4353_v51  ;;  %v1746_v32 = vpop.f32.mrb[31].mxu0 }
 0x29a   : > { %v1900_v7 = vpack.c.bf16 %v1746_v32, %v1743_v1  ;;  %v2178_v38 = vpop.f32.mrb[28].mxu1 }
 0x29b   : > { %1933 = vst [vmem:[#allocation2 + $0x78] sm:$0xff] %v1901_v18  ;;  %v2180_v3 = vpop.f32.mrb[29].mxu1 }
 0x29c   : > { %1932 = vst [vmem:[#allocation2 + $0x70] sm:$0xff] %v1900_v7  ;;  %v2182_v19 = vpop.f32.mrb[30].mxu1 }
 0x29d   : > { %v2209_v6 = vpack.c.bf16 %v2182_v19, %v2178_v38  ;;  %v2184_v58 = vpop.f32.mrb[31].mxu1 }
 0x29e   : > { %v2210_v22 = vpack.c.bf16 %v2184_v58, %v2180_v3 }
 0x29f   : > { %2218 = vst [vmem:[#allocation3 + $0x10] sm:$0xff] %v2209_v6 }
 0x2a0   : > { %2219 = vst.msk [vmem:[#allocation3 + $0x18] sm:$0xff] %vm2216_vm1, %v2210_v22 }
 0x2a2   : > { %v4357_v33 = vpop.f32.mrb[32].mxu0 }
 0x2a3   : > { %v1759_v20 = vpop.f32.mrb[33].mxu0 }
 0x2a4   : > { %v4358_v14 = vpop.f32.mrb[34].mxu0 }
 0x2a5   : > { %v1903_v63 = vpack.c.bf16 %v4358_v14, %v4357_v33  ;;  %v1762_v61 = vpop.f32.mrb[35].mxu0 }
 0x2a6   : > { %v1902_v28 = vpack.c.bf16 %v1762_v61, %v1759_v20  ;;  %v2188_v54 = vpop.f32.mrb[32].mxu1 }
 0x2a7   : > { %1935 = vst [vmem:[#allocation2 + $0x88] sm:$0xff] %v1903_v63  ;;  %v2190_v43 = vpop.f32.mrb[33].mxu1 }
 0x2a8   : > { %1934 = vst [vmem:[#allocation2 + $0x80] sm:$0xff] %v1902_v28  ;;  %v2192_v62 = vpop.f32.mrb[34].mxu1 }
 0x2a9   : > { %v2211_v35 = vpack.c.bf16 %v2192_v62, %v2188_v54  ;;  %v2194_v60 = vpop.f32.mrb[35].mxu1 }
 0x2aa   : > { %v2212_v26 = vpack.c.bf16 %v2194_v60, %v2190_v43 }
 0x2ab   : > { %2220 = vst [vmem:[#allocation3 + $0x20] sm:$0xff] %v2211_v35 }
 0x2ac   : > { %2221 = vst.msk [vmem:[#allocation3 + $0x28] sm:$0xff] %vm2216_vm1, %v2212_v26 }
 0x2ae   : > { %v4361_v27 = vpop.f32.mrb[36].mxu0 }
 0x2af   : > { %v1775_v45 = vpop.f32.mrb[37].mxu0 }
 0x2b0   : > { %v4362_v39 = vpop.f32.mrb[38].mxu0 }
 0x2b1   : > { %v1905_v36 = vpack.c.bf16 %v4362_v39, %v4361_v27  ;;  %v1778_v12 = vpop.f32.mrb[39].mxu0 }
 0x2b2   : > { %v1904_v31 = vpack.c.bf16 %v1778_v12, %v1775_v45  ;;  %v2198_v25 = vpop.f32.mrb[36].mxu1 }
 0x2b3   : > { %1937 = vst [vmem:[#allocation2 + $0x98] sm:$0xff] %v1905_v36  ;;  %v2200_v59 = vpop.f32.mrb[37].mxu1 }
 0x2b4   : > { %1936 = vst [vmem:[#allocation2 + $0x90] sm:$0xff] %v1904_v31  ;;  %v2202_v50 = vpop.f32.mrb[38].mxu1 }
 0x2b5   : > { %v2213_v17 = vpack.c.bf16 %v2202_v50, %v2198_v25  ;;  %v2204_v9 = vpop.f32.mrb[39].mxu1 }
 0x2b6   : > { %v2214_v56 = vpack.c.bf16 %v2204_v9, %v2200_v59 }
 0x2b7   : > { %2222 = vst [vmem:[#allocation3 + $0x30] sm:$0xff] %v2213_v17 }
 0x2b8   : > { %2223 = vst.msk [vmem:[#allocation3 + $0x38] sm:$0xff] %vm2216_vm1, %v2214_v56 }
 0x2b9 LB: >> { %v4795_v10 = vmov 0.0   ;;  %s4070_s21 = sshll.u32 %s4792_s20, 5  ;;  %s4069_s22 = sshll.u32 %s4792_s20, 8  ;;  %vm4796_vm2 = vmmov 0   ;;  %vm2272_vm3 = vcmask 130048   ;;  %v2368_v20 = vlaneseq  ;;  %s4792_s20 = sphi %s6064_s20, %s2239_s20  }
 0x2ba   : >> { %4387 = vmatprep.subr.bf16.mxu1 %v4795_v10  ;;  %4391 = vmatprep.mubr.msk.bf16.mxu1 %vm4796_vm2, %v4795_v10  ;;  %s2243_s23 = sshra.s32 %s4069_s22, 4  ;;  %s6074_s24 = scalar_lea.vmem [#allocation3], %s4070_s21  ;;  %vm3860_vm4 = vcmask 392192  }
 0x2bb   : >> { %s4072_s25 = sshll.u32 %s2243_s23, 3  ;;  %s4797_s26 = smov 64   ;;  %v6183_v14 = vshrl.u32 %v2368_v20, 7 }
 0x2bc   : >> { %s6086_s27 = scalar_lea.vmem [#allocation2], %s4072_s25  ;;  %s4798_s28 = smov 112  }
 0x2bd   : >> { %v6089_v16 = vld [vmem:[%s6086_s27 + $0x40] sm:$0xff]  ;;  %v6095_v55 = vld [vmem:[%s6086_s27 + $0x48] sm:$0xff]  ;;  %v6111_v4 = vld [vmem:[%s6086_s27 + $0x50] sm:$0xff]  ;;  %v2370_v63 = vsub.s32 0, %v6183_v14  ;;  %v2374_v61 = vsub.s32 4, %v6183_v14  ;;  %s4799_s29 = smov 48  }
 0x2be   : >> { %v6092_v42 = vld [vmem:[%s6086_s27] sm:$0xff]  ;;  %4467 = vmatprep.subr.msk.bf16.mxu0 %vm2272_vm3, %v6089_v16  ;;  %v6106_v23 = vld [vmem:[%s6086_s27 + $0x8] sm:$0xff]  ;;  %v6116_v15 = vld [vmem:[%s6086_s27 + $0x10] sm:$0xff]  ;;  %s4800_s30 = smov 96   ;;  %s4801_s12 = smov 32  }
 0x2bf   : >> { %v6077_v30 = vld [vmem:[%s6074_s24] sm:$0xff]  ;;  %v6082_v40 = vld [vmem:[%s6074_s24 + $0x10] sm:$0xff]  ;;  %v2277_v0 = vsel %vm2272_vm3, %v6092_v42, 0  ;;  %v2280_v29 = vsel %vm2272_vm3, %v6106_v23, 0  ;;  %v2283_v11 = vsel %vm2272_vm3, %v6116_v15, 0  ;;  %v6121_v41 = vld [vmem:[%s6086_s27 + $0x58] sm:$0xff]  ;;  %v2371_v28 = vrot.slane %v6013_v52, %v2370_v63 }
 0x2c0   : >> { %2398 = vrot.lane.b32.xlu0 %v6077_v30, %s4797_s26  ;;  %4146 = vmatprep.mubr.msk.bf16.mxu0 %vm2272_vm3, %v6077_v30  ;;  %v6126_v48 = vld [vmem:[%s6086_s27 + $0x18] sm:$0xff]  ;;  %v6131_v13 = vld [vmem:[%s6086_s27 + $0x60] sm:$0xff]  ;;  %v6141_v51 = vld [vmem:[%s6086_s27 + $0x68] sm:$0xff]  ;;  %v2375_v54 = vrot.slane %v6013_v52, %v2374_v61  ;;  %s4802_s13 = smov 80   ;;  %s4803_s14 = smov 16  }
 0x2c1   : >> { %4131 = vmatpush3.bf16.xpose.msra.mxu0 %v2277_v0  ;;  %v2286_v5 = vsel %vm2272_vm3, %v6126_v48, 0  ;;  %v6136_v57 = vld [vmem:[%s6086_s27 + $0x20] sm:$0xff]  ;;  %v6146_v1 = vld [vmem:[%s6086_s27 + $0x28] sm:$0xff]  ;;  %v6151_v18 = vld [vmem:[%s6086_s27 + $0x70] sm:$0xff]  ;;  %v2381_v43 = vrot.slane %v2371_v28, %v2370_v63  ;;  %s4071_s15 = sshll.u32 %s4792_s20, 4  ;;  %s2239_s20 = sadd.s32 1, %s4792_s20  }
 0x2c2   : >> { %4468 = vmatprep.subr.msk.bf16.mxu0 %vm2272_vm3, %v6095_v55  ;;  %v2289_v21 = vsel %vm2272_vm3, %v6136_v57, 0  ;;  %v2292_v8 = vsel %vm2272_vm3, %v6146_v1, 0  ;;  %v6156_v32 = vld [vmem:[%s6086_s27 + $0x30] sm:$0xff]  ;;  %v6161_v38 = vld [vmem:[%s6086_s27 + $0x78] sm:$0xff]  ;;  %v2385_v62 = vrot.slane %v2375_v54, %v2370_v63  ;;  %v6202_v59 = vld [vmem:[%s6074_s24 + $0x8] sm:$0xff]  ;;  %s3932_s16 = scalar_lea.vmem %s5454_s19, %s4071_s15  ;;  %p2236_p6 = scmp.ge.s32.totalorder %s2239_s20, 2  }
 0x2c3   : >> { %v2295_v7 = vsel %vm2272_vm3, %v6156_v32, 0  ;;  %v6166_v3 = vld [vmem:[%s6086_s27 + $0x38] sm:$0xff] }
 0x2c4   : >> { %2400 = vrot.lane.b32.xlu0 %v6082_v40, %s4797_s26  ;;  %v2298_v19 = vsel %vm2272_vm3, %v6166_v3, 0  ;;  %v6207_v50 = vld [vmem:[%s6074_s24 + $0x18] sm:$0xff] }
 0x2c9   : >> { %4133 = vmatpush3.bf16.xpose.msra.mxu0 %v2280_v29 }
 0x2ca   : >> { %4469 = vmatprep.subr.msk.bf16.mxu0 %vm2272_vm3, %v6111_v4 }
 0x2d1   : >> { %4135 = vmatpush3.bf16.xpose.msra.mxu0 %v2283_v11 }
 0x2d2   : >> { %4470 = vmatprep.subr.msk.bf16.mxu0 %vm2272_vm3, %v6121_v41 }
 0x2d9   : >> { %4137 = vmatpush3.bf16.xpose.msra.mxu0 %v2286_v5 }
 0x2da   : >> { %4471 = vmatprep.subr.msk.bf16.mxu0 %vm2272_vm3, %v6131_v13 }
 0x2e1   : >> { %4139 = vmatpush3.bf16.xpose.msra.mxu0 %v2289_v21 }
 0x2e2   : >> { %4472 = vmatprep.subr.msk.bf16.mxu0 %vm2272_vm3, %v6141_v51 }
 0x2e9   : >> { %4141 = vmatpush3.bf16.xpose.msra.mxu0 %v2292_v8 }
 0x2ea   : >> { %4473 = vmatprep.subr.msk.bf16.mxu0 %vm2272_vm3, %v6151_v18 }
 0x2f1   : >> { %4143 = vmatpush3.bf16.xpose.msra.mxu0 %v2295_v7 }
 0x2f2   : >> { %4474 = vmatprep.subr.msk.bf16.mxu0 %vm2272_vm3, %v6161_v38 }
 0x2f9   : >> { %4145 = vmatpush3.bf16.xpose.msra.mxu0 %v2298_v19 }
 0x2fa   : >> { %4403 = vmatprep.subr.bf16.mxu0 %v4795_v10 }
 0x300   : >> { %4147 = vmatmul.mubr.msk.bf16.vlgmr.msra.gmra.mrb[0].mxu0 %vm2272_vm3, %v6077_v30 }
 0x301   : >> { %4407 = vmatprep.mubr.msk.bf16.mxu0 %vm4796_vm2, %v4795_v10 }
 0x332   : >> { %v2399_v6 = vpop.permute.xlu0 %2398 }
 0x333   : >> { %v2403_v58 = vsel %vm2272_vm3, %v2399_v6, 0 }
 0x334   : >> { %4388 = vmatpush3.bf16.xpose.msra.mxu1 %v2403_v58 }
 0x335   : >> { %4389 = vmatprep.subr.bf16.mxu1 %v4795_v10 }
 0x336   : >> { %v2401_v22 = vpop.permute.xlu0 %2400 }
 0x337   : >> { %v2406_v33 = vsel %vm2272_vm3, %v2401_v22, 0 }
 0x33c   : >> { %4390 = vmatpush3.bf16.xpose.msra.mxu1 %v2406_v33 }
 0x33d   : >> { %4395 = vmatprep.subr.bf16.mxu1 %v4795_v10 }
 0x343   : >> { %4392 = vmatmul.mubr.msk.bf16.vlgmr.msra.gmra.mrb[0].mxu1 %vm2272_vm3, %v6077_v30 }
 0x344   : >> { %4399 = vmatprep.mubr.msk.bf16.mxu1 %vm4796_vm2, %v4795_v10  ;;  %4396 = vmatpush3.bf16.msra.mxu1 %v6202_v59 }
 0x345   : >> { %4397 = vmatprep.subr.bf16.mxu1 %v4795_v10 }
 0x348   : >> { %4398 = vmatpush3.bf16.msra.mxu1 %v6207_v50 }
 0x3d3   : >> { %v2358_v35 = vpop.f32.mrb[0].mxu0 }
 0x3d4   : >> { %v6189_v60 = vmul.f32 %v2381_v43, %v2358_v35  ;;  %v2360_v26 = vpop.f32.mrb[1].mxu0 }
 0x3d5   : >> { %v6191_v27 = vmul.f32 %v2385_v62, %v2360_v26  ;;  %v2362_v45 = vpop.f32.mrb[2].mxu0 }
 0x3d6   : >> { %v2364_v39 = vpop.f32.mrb[3].mxu0  ;;  %v6193_v36 = vmul.f32 %v2381_v43, %v2362_v45 }
 0x3d7   : >> { %v6195_v12 = vmul.f32 %v2385_v62, %v2364_v39  ;;  %v2449_v31 = vmax.f32 %v6189_v60, %v6191_v27 }
 0x3d9   : >> { %2450 = vmax.xlane.f32.xlu1 %v2449_v31  ;;  %v2452_v25 = vmax.f32 %v6193_v36, %v6195_v12 }
 0x3dd   : >> { %2453 = vmax.xlane.f32.xlu1 %v2452_v25 }
 0x3ee   : >> { %2574 = vrot.lane.b32.xlu1 %v6089_v16, %s4797_s26 }
 0x3f2   : >> { %2558 = vrot.lane.b32.xlu1 %v6092_v42, %s4797_s26 }
 0x3f6   : >> { %2576 = vrot.lane.b32.xlu1 %v6095_v55, %s4797_s26 }
 0x3fa   : >> { %2560 = vrot.lane.b32.xlu1 %v6106_v23, %s4797_s26 }
 0x416   : >> { %v2442_v17 = vpop.f32.mrb[0].mxu1 }
 0x417   : >> { %v6219_v9 = vadd.f32 %v6018_v24, %v2442_v17  ;;  %v4393_v56 = vpop.f32.mrb[1].mxu1 }
 0x418   : >> { %v2445_v0 = vpop.f32.mrb[2].mxu1 }
 0x419   : >> { %v2455_v29 = vsel %vm479_vm0, %v6219_v9, -inf  ;;  %v4394_v11 = vpop.f32.mrb[3].mxu1  ;;  %v6224_v5 = vadd.f32 %v6018_v24, %v2445_v0 }
 0x41a   : >> { %2456 = vmax.xlane.f32.xlu0 %v2455_v29 }
 0x41b   : >> { %v2458_v21 = vsel %vm479_vm0, %v6224_v5, -inf }
 0x41e   : >> { %2459 = vmax.xlane.f32.xlu1 %v2458_v21 }
 0x42f   : >> { %2562 = vrot.lane.b32.xlu1 %v6116_v15, %s4797_s26 }
 0x430   : >> { %2578 = vrot.lane.b32.xlu0 %v6111_v4, %s4797_s26 }
 0x433   : >> { %2580 = vrot.lane.b32.xlu1 %v6121_v41, %s4797_s26 }
 0x434   : >> { %2584 = vrot.lane.b32.xlu0 %v6141_v51, %s4797_s26 }
 0x437   : >> { %2564 = vrot.lane.b32.xlu1 %v6126_v48, %s4797_s26 }
 0x438   : >> { %2586 = vrot.lane.b32.xlu0 %v6151_v18, %s4797_s26 }
 0x43b   : >> { %2582 = vrot.lane.b32.xlu1 %v6131_v13, %s4797_s26 }
 0x43c   : >> { %2588 = vrot.lane.b32.xlu0 %v6161_v38, %s4797_s26 }
 0x43f   : >> { %2566 = vrot.lane.b32.xlu1 %v6136_v57, %s4797_s26 }
 0x440   : >> { %2653 = vrot.lane.b32.xlu0 %v6092_v42, %s4798_s28 }
 0x443   : >> { %2568 = vrot.lane.b32.xlu1 %v6146_v1, %s4797_s26 }
 0x444   : >> { %2655 = vrot.lane.b32.xlu0 %v6106_v23, %s4798_s28 }
 0x447   : >> { %2570 = vrot.lane.b32.xlu1 %v6156_v32, %s4797_s26 }
 0x448   : >> { %2657 = vrot.lane.b32.xlu0 %v6116_v15, %s4798_s28 }
 0x44b   : >> { %2572 = vrot.lane.b32.xlu1 %v6166_v3, %s4797_s26 }
 0x44c   : >> { %2659 = vrot.lane.b32.xlu0 %v6126_v48, %s4798_s28 }
 0x44f   : >> { %2669 = vrot.lane.b32.xlu1 %v6089_v16, %s4798_s28 }
 0x450   : >> { %2661 = vrot.lane.b32.xlu0 %v6136_v57, %s4798_s28 }
 0x453   : >> { %2671 = vrot.lane.b32.xlu1 %v6095_v55, %s4798_s28 }
 0x454   : >> { %2663 = vrot.lane.b32.xlu0 %v6146_v1, %s4798_s28 }
 0x457   : >> { %2673 = vrot.lane.b32.xlu1 %v6111_v4, %s4798_s28 }
 0x458   : >> { %2665 = vrot.lane.b32.xlu0 %v6156_v32, %s4798_s28 }
 0x45b   : >> { %2675 = vrot.lane.b32.xlu1 %v6121_v41, %s4798_s28 }
 0x45c   : >> { %2801 = vrot.lane.b32.xlu0 %v6077_v30, %s4799_s29 }
 0x45f   : >> { %2677 = vrot.lane.b32.xlu1 %v6131_v13, %s4798_s28 }
 0x460   : >> { %2683 = vrot.lane.b32.xlu0 %v6161_v38, %s4798_s28 }
 0x463   : >> { %2679 = vrot.lane.b32.xlu1 %v6141_v51, %s4798_s28 }
 0x464   : >> { %2651 = vrot.lane.b32.xlu0 %v6077_v30, %s4798_s28 }
 0x466   : >> { %v2451_v8 = vpop.xlane.xlu1 %2450 }
 0x467   : >> { %2681 = vrot.lane.b32.xlu1 %v6151_v18, %s4798_s28 }
 0x468   : >> { %2953 = vrot.lane.b32.xlu0 %v6092_v42, %s4799_s29 }
 0x46a   : >> { %v2454_v7 = vpop.xlane.xlu1 %2453 }
 0x46b   : >> { %2667 = vrot.lane.b32.xlu1 %v6166_v3, %s4798_s28 }
 0x46e   : >> { %v2575_v19 = vpop.permute.xlu1 %2574 }
 0x46f   : >> { %4154 = vmatprep.subr.bf16.mxu1 %v2575_v19  ;;  %2803 = vrot.lane.b32.xlu1 %v6082_v40, %s4799_s29 }
 0x472   : >> { %v2559_v6 = vpop.permute.xlu1 %2558 }
 0x473   : >> { %2969 = vrot.lane.b32.xlu1 %v6089_v16, %s4799_s29 }
 0x476   : >> { %v2577_v58 = vpop.permute.xlu1 %2576 }
 0x477   : >> { %2955 = vrot.lane.b32.xlu1 %v6106_v23, %s4799_s29 }
 0x47a   : >> { %v2561_v20 = vpop.permute.xlu1 %2560 }
 0x47b   : >> { %2973 = vrot.lane.b32.xlu1 %v6111_v4, %s4799_s29 }
 0x47f   : >> { %2975 = vrot.lane.b32.xlu1 %v6121_v41, %s4799_s29 }
 0x483   : >> { %2977 = vrot.lane.b32.xlu1 %v6131_v13, %s4799_s29 }
 0x487   : >> { %2979 = vrot.lane.b32.xlu1 %v6141_v51, %s4799_s29 }
 0x48b   : >> { %2981 = vrot.lane.b32.xlu1 %v6151_v18, %s4799_s29 }
 0x48f   : >> { %2983 = vrot.lane.b32.xlu1 %v6161_v38, %s4799_s29 }
 0x4a7   : >> { %v2457_v22 = vpop.xlane.xlu0 %2456 }
 0x4a8   : >> { %v2461_v33 = vmax.f32 %v2451_v8, %v2457_v22 }
 0x4aa   : >> { %v2463_v63 = vsub.f32 %v6189_v60, %v2461_v33  ;;  %v2464_v61 = vsub.f32 %v6191_v27, %v2461_v33  ;;  %v2475_v28 = vsub.f32 %v6219_v9, %v2461_v33 }
 0x4ab   : >> { %v2579_v54 = vpop.permute.xlu0 %2578  ;;  %v2460_v35 = vpop.xlane.xlu1 %2459 }
 0x4ac   : >> { %v2467_v43 = vmul.f32 1.442695, %v2463_v63  ;;  %v2469_v62 = vmul.f32 1.442695, %v2464_v61  ;;  %v2462_v26 = vmax.f32 %v2454_v7, %v2460_v35  ;;  %v2477_v45 = vmul.f32 1.442695, %v2475_v28 }
 0x4ae   : >> { %4694 = vpow2.f32 %v2467_v43  ;;  %v2465_v31 = vsub.f32 %v6193_v36, %v2462_v26  ;;  %v2466_v25 = vsub.f32 %v6195_v12, %v2462_v26  ;;  %v2476_v17 = vsub.f32 %v6224_v5, %v2462_v26 }
 0x4af   : >> { %4696 = vpow2.f32 %v2469_v62  ;;  %v2585_v39 = vpop.permute.xlu0 %2584  ;;  %v2563_v60 = vpop.permute.xlu1 %2562 }
 0x4b0   : >> { %v2471_v56 = vmul.f32 1.442695, %v2465_v31  ;;  %v2473_v27 = vmul.f32 1.442695, %v2466_v25  ;;  %v2479_v0 = vmul.f32 1.442695, %v2476_v17  ;;  %4698 = vpow2.f32 %v2477_v45 }
 0x4b2   : >> { %4700 = vpow2.f32 %v2471_v56 }
 0x4b3   : >> { %v2587_v9 = vpop.permute.xlu0 %2586  ;;  %4702 = vpow2.f32 %v2473_v27  ;;  %v2581_v29 = vpop.permute.xlu1 %2580 }
 0x4b4   : >> { %4704 = vpow2.f32 %v2479_v0 }
 0x4b7   : >> { %v2589_v11 = vpop.permute.xlu0 %2588  ;;  %v2565_v7 = vpop.permute.xlu1 %2564 }
 0x4b8   : >> { %v4695_v21 = vpop.eup %4694 }
 0x4b9   : >> { %v4697_v8 = vpop.eup %4696 }
 0x4ba   : >> { %v6314_v19 = vadd.f32 %v4697_v8, %v4695_v21  ;;  %v6316_v12 = vpop.eup %4698 }
 0x4bb   : >> { %v2654_v36 = vpop.permute.xlu0 %2653  ;;  %v2583_v5 = vpop.permute.xlu1 %2582 }
 0x4bc   : >> { %v4701_v22 = vpop.eup %4700 }
 0x4bd   : >> { %v4703_v33 = vpop.eup %4702 }
 0x4be   : >> { %v6318_v61 = vpop.eup %4704  ;;  %v2496_v28 = vpack.c.bf16 %v4703_v33, %v4697_v8  ;;  %v6320_v43 = vadd.f32 %v4703_v33, %v4701_v22 }
 0x4bf   : >> { %v2656_v63 = vpop.permute.xlu0 %2655  ;;  %v2497_v62 = vpack.c.bf16 %v6318_v61, %v6316_v12  ;;  %v2567_v35 = vpop.permute.xlu1 %2566 }
 0x4c1   : >> { %4400 = vmatmul.mubr.msk.bf16.vlgmr.msra.gmra.mrb[4].mxu1 %vm479_vm0, %v2497_v62 }
 0x4c2   : >> { %4155 = vmatpush3.bf16.msra.mxu1 %v2559_v6  ;;  %2638 = vmatprep.mubr.bf16.mxu1 %v2496_v28 }
 0x4c3   : >> { %v2658_v26 = vpop.permute.xlu0 %2657  ;;  %4156 = vmatprep.subr.bf16.mxu1 %v2577_v58  ;;  %v2569_v45 = vpop.permute.xlu1 %2568 }
 0x4c6   : >> { %4157 = vmatpush3.bf16.msra.mxu1 %v2561_v20 }
 0x4c7   : >> { %v2660_v31 = vpop.permute.xlu0 %2659  ;;  %4158 = vmatprep.subr.bf16.mxu1 %v2579_v54  ;;  %v2571_v25 = vpop.permute.xlu1 %2570 }
 0x4ca   : >> { %4159 = vmatpush3.bf16.msra.mxu1 %v2563_v60 }
 0x4cb   : >> { %v2662_v17 = vpop.permute.xlu0 %2661  ;;  %4160 = vmatprep.subr.bf16.mxu1 %v2581_v29  ;;  %v2573_v56 = vpop.permute.xlu1 %2572  ;;  %v2495_v29 = vpack.c.bf16 %v4701_v22, %v4695_v21  ;;  %v2695_v22 = vsel %vm2272_vm3, %v2658_v26, 0 }
 0x4ce   : >> { %4161 = vmatpush3.bf16.msra.mxu1 %v2565_v7 }
 0x4cf   : >> { %v2664_v27 = vpop.permute.xlu0 %2663  ;;  %4162 = vmatprep.subr.bf16.mxu1 %v2583_v5  ;;  %v2670_v0 = vpop.permute.xlu1 %2669 }
 0x4d2   : >> { %4163 = vmatpush3.bf16.msra.mxu1 %v2567_v35 }
 0x4d3   : >> { %v2666_v8 = vpop.permute.xlu0 %2665  ;;  %4164 = vmatprep.subr.bf16.mxu1 %v2585_v39  ;;  %v2672_v33 = vpop.permute.xlu1 %2671 }
 0x4d4   : >> { %v2707_v26 = vsel %vm2272_vm3, %v2666_v8, 0 }
 0x4d6   : >> { %4165 = vmatpush3.bf16.msra.mxu1 %v2569_v45  ;;  %v2704_v45 = vsel %vm2272_vm3, %v2664_v27, 0 }
 0x4d7   : >> { %v2802_v6 = vpop.permute.xlu0 %2801  ;;  %4166 = vmatprep.subr.bf16.mxu1 %v2587_v9  ;;  %v2674_v20 = vpop.permute.xlu1 %2673  ;;  %v2689_v9 = vsel %vm2272_vm3, %v2654_v36, 0  ;;  %v2698_v36 = vsel %vm2272_vm3, %v2660_v31, 0 }
 0x4d8   : >> { %v2806_v58 = vsel %vm2272_vm3, %v2802_v6, 0 }
 0x4d9   : >> { %4404 = vmatpush3.bf16.xpose.msra.mxu0 %v2806_v58 }
 0x4da   : >> { %4405 = vmatprep.subr.bf16.mxu0 %v4795_v10  ;;  %4167 = vmatpush3.bf16.msra.mxu1 %v2571_v25 }
 0x4db   : >> { %v2684_v54 = vpop.permute.xlu0 %2683  ;;  %4168 = vmatprep.subr.bf16.mxu1 %v2589_v11  ;;  %v2676_v60 = vpop.permute.xlu1 %2675  ;;  %v2692_v11 = vsel %vm2272_vm3, %v2656_v63, 0  ;;  %v2701_v63 = vsel %vm2272_vm3, %v2662_v17, 0 }
 0x4de   : >> { %4169 = vmatpush3.bf16.msra.mxu1 %v2573_v56 }
 0x4df   : >> { %4475 = vmatprep.subr.msk.bf16.mxu1 %vm2272_vm3, %v2670_v0  ;;  %v2678_v7 = vpop.permute.xlu1 %2677  ;;  %v2652_v39 = vpop.permute.xlu0 %2651 }
 0x4e1   : >> { %2639 = vmatmul.mubr.bf16.vlgmr.msra.gmra.mrb[8].mxu1 %v2495_v29 }
 0x4e2   : >> { %4192 = vmatprep.mubr.msk.bf16.mxu1 %vm2272_vm3, %v2652_v39 }
 0x4e3   : >> { %v2680_v5 = vpop.permute.xlu1 %2679 }
 0x4e7   : >> { %4177 = vmatpush3.bf16.xpose.msra.mxu1 %v2689_v9  ;;  %v2682_v28 = vpop.permute.xlu1 %2681 }
 0x4e8   : >> { %4476 = vmatprep.subr.msk.bf16.mxu1 %vm2272_vm3, %v2672_v33  ;;  %v2954_v33 = vpop.permute.xlu0 %2953 }
 0x4eb   : >> { %v2668_v62 = vpop.permute.xlu1 %2667 }
 0x4ec   : >> { %v2710_v31 = vsel %vm2272_vm3, %v2668_v62, 0 }
 0x4ef   : >> { %4179 = vmatpush3.bf16.xpose.msra.mxu1 %v2692_v11  ;;  %v2804_v35 = vpop.permute.xlu1 %2803 }
 0x4f0   : >> { %4477 = vmatprep.subr.msk.bf16.mxu1 %vm2272_vm3, %v2674_v20  ;;  %v2809_v21 = vsel %vm2272_vm3, %v2804_v35, 0 }
 0x4f1   : >> { %4406 = vmatpush3.bf16.xpose.msra.mxu0 %v2809_v21 }
 0x4f3   : >> { %v2970_v0 = vpop.permute.xlu1 %2969 }
 0x4f4   : >> { %4200 = vmatprep.subr.bf16.mxu0 %v2970_v0 }
 0x4f7   : >> { %4181 = vmatpush3.bf16.xpose.msra.mxu1 %v2695_v22  ;;  %v2781_v22 = vsub.s32 1, %v6183_v14 }
 0x4f8   : >> { %4478 = vmatprep.subr.msk.bf16.mxu1 %vm2272_vm3, %v2676_v60  ;;  %4408 = vmatmul.mubr.msk.bf16.vlgmr.msra.gmra.mrb[4].mxu0 %vm2272_vm3, %v2652_v39 }
 0x4f9   : >> { %4201 = vmatpush3.bf16.msra.mxu0 %v2954_v33 }
 0x4ff   : >> { %4183 = vmatpush3.bf16.xpose.msra.mxu1 %v2698_v36  ;;  %v2785_v36 = vsub.s32 5, %v6183_v14 }
 0x500   : >> { %4479 = vmatprep.subr.msk.bf16.mxu1 %vm2272_vm3, %v2678_v7 }
 0x507   : >> { %4185 = vmatpush3.bf16.xpose.msra.mxu1 %v2701_v63  ;;  %v2782_v63 = vrot.slane %v6013_v52, %v2781_v22 }
 0x508   : >> { %4480 = vmatprep.subr.msk.bf16.mxu1 %vm2272_vm3, %v2680_v5 }
 0x50f   : >> { %4187 = vmatpush3.bf16.xpose.msra.mxu1 %v2704_v45  ;;  %v2786_v45 = vrot.slane %v6013_v52, %v2785_v36 }
 0x510   : >> { %4481 = vmatprep.subr.msk.bf16.mxu1 %vm2272_vm3, %v2682_v28 }
 0x517   : >> { %4189 = vmatpush3.bf16.xpose.msra.mxu1 %v2707_v26  ;;  %v2792_v26 = vrot.slane %v2782_v63, %v2781_v22 }
 0x518   : >> { %4482 = vmatprep.subr.msk.bf16.mxu1 %vm2272_vm3, %v2684_v54 }
 0x51f   : >> { %4191 = vmatpush3.bf16.xpose.msra.mxu1 %v2710_v31  ;;  %v2796_v31 = vrot.slane %v2786_v45, %v2781_v22 }
 0x520   : >> { %4411 = vmatprep.subr.bf16.mxu1 %v4795_v10 }
 0x526   : >> { %4193 = vmatmul.mubr.msk.bf16.vlgmr.msra.gmra.mrb[12].mxu1 %vm2272_vm3, %v2652_v39 }
 0x527   : >> { %4415 = vmatprep.mubr.msk.bf16.mxu1 %vm4796_vm2, %v4795_v10 }
 0x594   : >> { %v2535_v25 = vpop.f32.mrb[4].mxu1 }
 0x595   : >> { %v4401_v17 = vpop.f32.mrb[5].mxu1 }
 0x596   : >> { %v2538_v56 = vpop.f32.mrb[6].mxu1 }
 0x597   : >> { %v4402_v27 = vpop.f32.mrb[7].mxu1 }
 0x5b4   : >> { %v4170_v8 = vpop.f32.mrb[8].mxu1 }
 0x5b5   : >> { %v4171_v6 = vpop.f32.mrb[9].mxu1 }
 0x5b6   : >> { %v4172_v58 = vadd.f32 %v4171_v6, %v4170_v8  ;;  %v4173_v20 = vpop.f32.mrb[10].mxu1 }
 0x5b7   : >> { %v4174_v54 = vpop.f32.mrb[11].mxu1 }
 0x5b8   : >> { %v6350_v60 = vadd.f32 %v4172_v58, %v2535_v25  ;;  %v4175_v29 = vadd.f32 %v4174_v54, %v4173_v20 }
 0x5ba   : >> { %v6352_v7 = vadd.f32 %v4175_v29, %v2538_v56 }
 0x5cb   : >> { %v2845_v39 = vpop.f32.mrb[4].mxu0 }
 0x5cc   : >> { %v6355_v5 = vadd.f32 %v6018_v24, %v2845_v39  ;;  %v4409_v9 = vpop.f32.mrb[5].mxu0 }
 0x5cd   : >> { %v2848_v28 = vpop.f32.mrb[6].mxu0 }
 0x5ce   : >> { %v6358_v62 = vadd.f32 %v6018_v24, %v2848_v28  ;;  %v4410_v11 = vpop.f32.mrb[7].mxu0  ;;  %v2858_v35 = vsel %vm479_vm0, %v6355_v5, -inf }
 0x5cf   : >> { %2859 = vmax.xlane.f32.xlu0 %v2858_v35 }
 0x5d0   : >> { %v2861_v21 = vsel %vm479_vm0, %v6358_v62, -inf }
 0x5d1   : >> { %2862 = vmax.xlane.f32.xlu1 %v2861_v21 }
 0x5e5   : >> { %2971 = vrot.lane.b32.xlu0 %v6095_v55, %s4799_s29 }
 0x5e9   : >> { %2957 = vrot.lane.b32.xlu0 %v6116_v15, %s4799_s29 }
 0x5ed   : >> { %2959 = vrot.lane.b32.xlu0 %v6126_v48, %s4799_s29 }
 0x5f1   : >> { %2961 = vrot.lane.b32.xlu0 %v6136_v57, %s4799_s29 }
 0x5f5   : >> { %2963 = vrot.lane.b32.xlu0 %v6146_v1, %s4799_s29 }
 0x5f9   : >> { %v2770_v25 = vpop.f32.mrb[12].mxu1  ;;  %2965 = vrot.lane.b32.xlu0 %v6156_v32, %s4799_s29 }
 0x5fa   : >> { %v6380_v17 = vmul.f32 %v2792_v26, %v2770_v25  ;;  %v2772_v56 = vpop.f32.mrb[13].mxu1 }
 0x5fb   : >> { %v6382_v27 = vmul.f32 %v2796_v31, %v2772_v56  ;;  %v2774_v0 = vpop.f32.mrb[14].mxu1 }
 0x5fc   : >> { %v2776_v33 = vpop.f32.mrb[15].mxu1  ;;  %v6388_v6 = vmul.f32 %v2792_v26, %v2774_v0 }
 0x5fd   : >> { %v2852_v8 = vmax.f32 %v6380_v17, %v6382_v27  ;;  %v6390_v58 = vmul.f32 %v2796_v31, %v2776_v33 }
 0x5ff   : >> { %2853 = vmax.xlane.f32.xlu1 %v2852_v8  ;;  %v2855_v20 = vmax.f32 %v6388_v6, %v6390_v58 }
 0x610   : >> { %3048 = vrot.lane.b32.xlu1 %v6092_v42, %s4800_s30 }
 0x614   : >> { %3050 = vrot.lane.b32.xlu1 %v6106_v23, %s4800_s30 }
 0x618   : >> { %2856 = vmax.xlane.f32.xlu0 %v2855_v20  ;;  %3052 = vrot.lane.b32.xlu1 %v6116_v15, %s4800_s30 }
 0x61c   : >> { %3054 = vrot.lane.b32.xlu1 %v6126_v48, %s4800_s30 }
 0x620   : >> { %3056 = vrot.lane.b32.xlu1 %v6136_v57, %s4800_s30 }
 0x624   : >> { %2903 = vrot.lane.b32.xlu1 %v6202_v59, %s4798_s28 }
 0x628   : >> { %3074 = vrot.lane.b32.xlu1 %v6141_v51, %s4800_s30 }
 0x62c   : >> { %3060 = vrot.lane.b32.xlu1 %v6156_v32, %s4800_s30 }
 0x62e   : >> { %2967 = vrot.lane.b32.xlu0 %v6166_v3, %s4799_s29 }
 0x630   : >> { %3196 = vrot.lane.b32.xlu1 %v6077_v30, %s4801_s12 }
 0x632   : >> { %3064 = vrot.lane.b32.xlu0 %v6089_v16, %s4800_s30 }
 0x634   : >> { %3078 = vrot.lane.b32.xlu1 %v6161_v38, %s4800_s30 }
 0x636   : >> { %3066 = vrot.lane.b32.xlu0 %v6095_v55, %s4800_s30 }
 0x638   : >> { %3046 = vrot.lane.b32.xlu1 %v6077_v30, %s4800_s30  ;;  %v2956_v30 = vpop.permute.xlu1 %2955 }
 0x63a   : >> { %3068 = vrot.lane.b32.xlu0 %v6111_v4, %s4800_s30 }
 0x63c   : >> { %3296 = vrot.lane.b32.xlu1 %v6202_v59, %s4800_s30 }
 0x63e   : >> { %3070 = vrot.lane.b32.xlu0 %v6121_v41, %s4800_s30 }
 0x640   : >> { %3362 = vrot.lane.b32.xlu1 %v6089_v16, %s4801_s12  ;;  %v2974_v16 = vpop.permute.xlu1 %2973 }
 0x642   : >> { %3072 = vrot.lane.b32.xlu0 %v6131_v13, %s4800_s30 }
 0x644   : >> { %v2976_v54 = vpop.permute.xlu1 %2975 }
 0x646   : >> { %3058 = vrot.lane.b32.xlu0 %v6146_v1, %s4800_s30 }
 0x648   : >> { %v2978_v39 = vpop.permute.xlu1 %2977 }
 0x64a   : >> { %2905 = vrot.lane.b32.xlu0 %v6207_v50, %s4798_s28 }
 0x64c   : >> { %v2980_v11 = vpop.permute.xlu1 %2979 }
 0x64e   : >> { %3076 = vrot.lane.b32.xlu0 %v6151_v18, %s4800_s30 }
 0x650   : >> { %v2982_v21 = vpop.permute.xlu1 %2981 }
 0x652   : >> { %3062 = vrot.lane.b32.xlu0 %v6166_v3, %s4800_s30 }
 0x654   : >> { %v2984_v36 = vpop.permute.xlu1 %2983 }
 0x656   : >> { %3198 = vrot.lane.b32.xlu0 %v6082_v40, %s4801_s12 }
 0x65c   : >> { %v2860_v59 = vpop.xlane.xlu0 %2859 }
 0x65e   : >> { %v2863_v63 = vpop.xlane.xlu1 %2862 }
 0x660   : >> { %v2972_v29 = vpop.permute.xlu0 %2971 }
 0x661   : >> { %4202 = vmatprep.subr.bf16.mxu0 %v2972_v29 }
 0x662   : >> { %4203 = vmatpush3.bf16.msra.mxu0 %v2956_v30 }
 0x663   : >> { %4204 = vmatprep.subr.bf16.mxu0 %v2974_v16 }
 0x664   : >> { %v2958_v9 = vpop.permute.xlu0 %2957 }
 0x666   : >> { %4205 = vmatpush3.bf16.msra.mxu0 %v2958_v9 }
 0x667   : >> { %4206 = vmatprep.subr.bf16.mxu0 %v2976_v54 }
 0x668   : >> { %v2960_v28 = vpop.permute.xlu0 %2959 }
 0x66a   : >> { %4207 = vmatpush3.bf16.msra.mxu0 %v2960_v28 }
 0x66b   : >> { %4208 = vmatprep.subr.bf16.mxu0 %v2978_v39 }
 0x66c   : >> { %v2962_v35 = vpop.permute.xlu0 %2961 }
 0x66e   : >> { %4209 = vmatpush3.bf16.msra.mxu0 %v2962_v35 }
 0x66f   : >> { %4210 = vmatprep.subr.bf16.mxu0 %v2980_v11 }
 0x670   : >> { %v2964_v40 = vpop.permute.xlu0 %2963 }
 0x672   : >> { %4211 = vmatpush3.bf16.msra.mxu0 %v2964_v40 }
 0x673   : >> { %4212 = vmatprep.subr.bf16.mxu0 %v2982_v21 }
 0x674   : >> { %v2966_v22 = vpop.permute.xlu0 %2965 }
 0x676   : >> { %4213 = vmatpush3.bf16.msra.mxu0 %v2966_v22 }
 0x677   : >> { %4214 = vmatprep.subr.bf16.mxu0 %v2984_v36 }
 0x68c   : >> { %v2854_v45 = vpop.xlane.xlu1 %2853 }
 0x68d   : >> { %v2864_v26 = vmax.f32 %v2854_v45, %v2860_v59 }
 0x68f   : >> { %v2866_v31 = vsub.f32 %v6380_v17, %v2864_v26  ;;  %v2867_v25 = vsub.f32 %v6382_v27, %v2864_v26 }
 0x690   : >> { %v3049_v56 = vpop.permute.xlu1 %3048 }
 0x691   : >> { %v2870_v0 = vmul.f32 1.442695, %v2866_v31  ;;  %v2872_v33 = vmul.f32 1.442695, %v2867_v25 }
 0x693   : >> { %4706 = vpow2.f32 %v2870_v0 }
 0x694   : >> { %4708 = vpow2.f32 %v2872_v33  ;;  %v3051_v8 = vpop.permute.xlu1 %3050 }
 0x698   : >> { %v3053_v20 = vpop.permute.xlu1 %3052 }
 0x69c   : >> { %v6442_v30 = vpop.permute.xlu1 %3054 }
 0x69d   : >> { %v4707_v16 = vpop.eup %4706 }
 0x69e   : >> { %v4709_v54 = vpop.eup %4708 }
 0x69f   : >> { %v6444_v29 = vadd.f32 %v4709_v54, %v4707_v16 }
 0x6a0   : >> { %v6446_v39 = vpop.permute.xlu1 %3056 }
 0x6a4   : >> { %v2904_v59 = vpop.permute.xlu1 %2903 }
 0x6a5   : >> { %v2857_v9 = vpop.xlane.xlu0 %2856  ;;  %4412 = vmatpush3.bf16.msra.mxu1 %v2904_v59 }
 0x6a6   : >> { %v2865_v17 = vmax.f32 %v2857_v9, %v2863_v63  ;;  %4413 = vmatprep.subr.bf16.mxu1 %v4795_v10 }
 0x6a8   : >> { %v2868_v27 = vsub.f32 %v6388_v6, %v2865_v17  ;;  %v2869_v28 = vsub.f32 %v6390_v58, %v2865_v17  ;;  %v6451_v11 = vpop.permute.xlu1 %3074  ;;  %v2879_v31 = vsub.f32 %v6358_v62, %v2865_v17  ;;  %v2878_v6 = vsub.f32 %v6355_v5, %v2864_v26 }
 0x6a9   : >> { %v2968_v35 = vpop.permute.xlu0 %2967  ;;  %v3087_v62 = vsel %vm2272_vm3, %v3051_v8, 0 }
 0x6aa   : >> { %v2874_v21 = vmul.f32 1.442695, %v2868_v27  ;;  %v2876_v40 = vmul.f32 1.442695, %v2869_v28  ;;  %4215 = vmatpush3.bf16.msra.mxu0 %v2968_v35  ;;  %v2882_v33 = vmul.f32 1.442695, %v2879_v31 }
 0x6ab   : >> { %v2880_v27 = vmul.f32 1.442695, %v2878_v6  ;;  %v3090_v31 = vsel %vm2272_vm3, %v3053_v20, 0 }
 0x6ac   : >> { %4710 = vpow2.f32 %v2874_v21  ;;  %v6453_v22 = vpop.permute.xlu1 %3060  ;;  %v3084_v21 = vsel %vm2272_vm3, %v3049_v56, 0 }
 0x6ad   : >> { %4712 = vpow2.f32 %v2876_v40  ;;  %v3065_v36 = vpop.permute.xlu0 %3064 }
 0x6ae   : >> { %4483 = vmatprep.subr.msk.bf16.mxu0 %vm2272_vm3, %v3065_v36  ;;  %4714 = vpow2.f32 %v2882_v33  ;;  %v3102_v33 = vsel %vm2272_vm3, %v6453_v22, 0 }
 0x6af   : >> { %4716 = vpow2.f32 %v2880_v27 }
 0x6b0   : >> { %v3197_v45 = vpop.permute.xlu1 %3196 }
 0x6b1   : >> { %v3067_v63 = vpop.permute.xlu0 %3066 }
 0x6b4   : >> { %v3079_v25 = vpop.permute.xlu1 %3078 }
 0x6b5   : >> { %v3069_v58 = vpop.permute.xlu0 %3068 }
 0x6b6   : >> { %v4711_v0 = vpop.eup %4710 }
 0x6b7   : >> { %v4713_v59 = vpop.eup %4712  ;;  %v2898_v9 = vpack.c.bf16 %v4711_v0, %v4707_v16 }
 0x6b8   : >> { %v2899_v28 = vpack.c.bf16 %v4713_v59, %v4709_v54  ;;  %v6458_v35 = vadd.f32 %v4713_v59, %v4711_v0  ;;  %v3047_v36 = vpop.permute.xlu1 %3046  ;;  %v6464_v16 = vpop.eup %4714 }
 0x6b9   : >> { %v3071_v40 = vpop.permute.xlu0 %3070  ;;  %v6467_v56 = vpop.eup %4716 }
 0x6ba   : >> { %3033 = vmatprep.mubr.bf16.mxu0 %v2899_v28  ;;  %v2900_v17 = vpack.c.bf16 %v6464_v16, %v6467_v56 }
 0x6bb   : >> { %3034 = vmatmul.mubr.bf16.vlgmr.msra.gmra.mrb[8].mxu0 %v2898_v9 }
 0x6bc   : >> { %4223 = vmatpush3.bf16.xpose.msra.mxu0 %v3084_v21  ;;  %4238 = vmatprep.mubr.msk.bf16.mxu0 %vm2272_vm3, %v3047_v36 }
 0x6bd   : >> { %v3073_v5 = vpop.permute.xlu0 %3072  ;;  %4484 = vmatprep.subr.msk.bf16.mxu0 %vm2272_vm3, %v3067_v63  ;;  %v3201_v63 = vsel %vm2272_vm3, %v3197_v45, 0  ;;  %v3096_v45 = vsel %vm2272_vm3, %v6446_v39, 0 }
 0x6c1   : >> { %v3059_v26 = vpop.permute.xlu0 %3058 }
 0x6c4   : >> { %4225 = vmatpush3.bf16.xpose.msra.mxu0 %v3087_v62 }
 0x6c5   : >> { %v2906_v54 = vpop.permute.xlu0 %2905  ;;  %4485 = vmatprep.subr.msk.bf16.mxu0 %vm2272_vm3, %v3069_v58  ;;  %v3093_v58 = vsel %vm2272_vm3, %v6442_v30, 0  ;;  %v3099_v30 = vsel %vm2272_vm3, %v3059_v26, 0 }
 0x6c6   : >> { %4414 = vmatpush3.bf16.msra.mxu1 %v2906_v54 }
 0x6c7   : >> { %4419 = vmatprep.subr.bf16.mxu1 %v4795_v10 }
 0x6c9   : >> { %4416 = vmatmul.mubr.msk.bf16.vlgmr.msra.gmra.mrb[16].mxu1 %vm479_vm0, %v2900_v17  ;;  %v3077_v8 = vpop.permute.xlu0 %3076 }
 0x6ca   : >> { %4423 = vmatprep.mubr.msk.bf16.mxu1 %vm4796_vm2, %v4795_v10 }
 0x6cc   : >> { %4227 = vmatpush3.bf16.xpose.msra.mxu0 %v3090_v31 }
 0x6cd   : >> { %4486 = vmatprep.subr.msk.bf16.mxu0 %vm2272_vm3, %v3071_v40  ;;  %v3063_v6 = vpop.permute.xlu0 %3062 }
 0x6ce   : >> { %v3105_v39 = vsel %vm2272_vm3, %v3063_v6, 0 }
 0x6cf   : >> { %4420 = vmatpush3.bf16.xpose.msra.mxu1 %v3201_v63 }
 0x6d0   : >> { %4421 = vmatprep.subr.bf16.mxu1 %v4795_v10 }
 0x6d1   : >> { %v3199_v0 = vpop.permute.xlu0 %3198 }
 0x6d2   : >> { %v3204_v20 = vsel %vm2272_vm3, %v3199_v0, 0 }
 0x6d4   : >> { %4229 = vmatpush3.bf16.xpose.msra.mxu0 %v3093_v58 }
 0x6d5   : >> { %4487 = vmatprep.subr.msk.bf16.mxu0 %vm2272_vm3, %v3073_v5 }
 0x6d7   : >> { %4422 = vmatpush3.bf16.xpose.msra.mxu1 %v3204_v20  ;;  %v3176_v20 = vsub.s32 2, %v6183_v14 }
 0x6d8   : >> { %4427 = vmatprep.subr.bf16.mxu1 %v4795_v10 }
 0x6dc   : >> { %4231 = vmatpush3.bf16.xpose.msra.mxu0 %v3096_v45  ;;  %v3180_v45 = vsub.s32 6, %v6183_v14 }
 0x6dd   : >> { %4488 = vmatprep.subr.msk.bf16.mxu0 %vm2272_vm3, %v6451_v11  ;;  %v3297_v11 = vpop.permute.xlu1 %3296 }
 0x6de   : >> { %4424 = vmatmul.mubr.msk.bf16.vlgmr.msra.gmra.mrb[20].mxu1 %vm2272_vm3, %v3047_v36 }
 0x6df   : >> { %4431 = vmatprep.mubr.msk.bf16.mxu1 %vm4796_vm2, %v4795_v10  ;;  %4428 = vmatpush3.bf16.msra.mxu1 %v3297_v11 }
 0x6e0   : >> { %4429 = vmatprep.subr.bf16.mxu1 %v4795_v10 }
 0x6e4   : >> { %4233 = vmatpush3.bf16.xpose.msra.mxu0 %v3099_v30  ;;  %v3177_v30 = vrot.slane %v6013_v52, %v3176_v20 }
 0x6e5   : >> { %4489 = vmatprep.subr.msk.bf16.mxu0 %vm2272_vm3, %v3077_v8 }
 0x6ec   : >> { %4235 = vmatpush3.bf16.xpose.msra.mxu0 %v3102_v33  ;;  %v3181_v33 = vrot.slane %v6013_v52, %v3180_v45 }
 0x6ed   : >> { %4490 = vmatprep.subr.msk.bf16.mxu0 %vm2272_vm3, %v3079_v25 }
 0x6ee   : >> { %v3191_v11 = vrot.slane %v3181_v33, %v3176_v20 }
 0x6f4   : >> { %4237 = vmatpush3.bf16.xpose.msra.mxu0 %v3105_v39  ;;  %v3187_v39 = vrot.slane %v3177_v30, %v3176_v20 }
 0x6f5   : >> { %4435 = vmatprep.subr.bf16.mxu0 %v4795_v10 }
 0x6fb   : >> { %4239 = vmatmul.mubr.msk.bf16.vlgmr.msra.gmra.mrb[12].mxu0 %vm2272_vm3, %v3047_v36 }
 0x6fc   : >> { %4439 = vmatprep.mubr.msk.bf16.mxu0 %vm4796_vm2, %v4795_v10 }
 0x78e   : >> { %v4216_v59 = vpop.f32.mrb[8].mxu0 }
 0x78f   : >> { %v4217_v9 = vpop.f32.mrb[9].mxu0 }
 0x790   : >> { %v4218_v22 = vadd.f32 %v4217_v9, %v4216_v59  ;;  %v4219_v27 = vpop.f32.mrb[10].mxu0 }
 0x791   : >> { %v4220_v28 = vpop.f32.mrb[11].mxu0 }
 0x792   : >> { %v4221_v25 = vadd.f32 %v4220_v28, %v4219_v27 }
 0x79c   : >> { %v2946_v21 = vpop.f32.mrb[16].mxu1 }
 0x79d   : >> { %v6502_v40 = vadd.f32 %v4218_v22, %v2946_v21  ;;  %v4417_v5 = vpop.f32.mrb[17].mxu1 }
 0x79e   : >> { %v2949_v62 = vpop.f32.mrb[18].mxu1 }
 0x79f   : >> { %v6504_v26 = vadd.f32 %v4221_v25, %v2949_v62  ;;  %v4418_v36 = vpop.f32.mrb[19].mxu1 }
 0x7b1   : >> { %v3240_v54 = vpop.f32.mrb[20].mxu1 }
 0x7b2   : >> { %v6507_v17 = vadd.f32 %v6018_v24, %v3240_v54  ;;  %v4425_v31 = vpop.f32.mrb[21].mxu1 }
 0x7b3   : >> { %v3243_v8 = vpop.f32.mrb[22].mxu1 }
 0x7b4   : >> { %v6510_v63 = vadd.f32 %v6018_v24, %v3243_v8  ;;  %v3253_v6 = vsel %vm479_vm0, %v6507_v17, -inf  ;;  %v4426_v58 = vpop.f32.mrb[23].mxu1 }
 0x7b5   : >> { %3254 = vmax.xlane.f32.xlu0 %v3253_v6 }
 0x7b6   : >> { %v3256_v0 = vsel %vm479_vm0, %v6510_v63, -inf }
 0x7b9   : >> { %3257 = vmax.xlane.f32.xlu0 %v3256_v0 }
 0x7ce   : >> { %v3165_v59 = vpop.f32.mrb[12].mxu0 }
 0x7cf   : >> { %v6520_v9 = vmul.f32 %v3187_v39, %v3165_v59  ;;  %v3167_v22 = vpop.f32.mrb[13].mxu0 }
 0x7d0   : >> { %v6522_v27 = vmul.f32 %v3191_v11, %v3167_v22  ;;  %v3169_v28 = vpop.f32.mrb[14].mxu0 }
 0x7d1   : >> { %v6524_v25 = vmul.f32 %v3187_v39, %v3169_v28  ;;  %v3171_v21 = vpop.f32.mrb[15].mxu0 }
 0x7d2   : >> { %v6526_v5 = vmul.f32 %v3191_v11, %v3171_v21  ;;  %v3247_v62 = vmax.f32 %v6520_v9, %v6522_v27 }
 0x7d4   : >> { %3248 = vmax.xlane.f32.xlu0 %v3247_v62  ;;  %v3250_v36 = vmax.f32 %v6524_v25, %v6526_v5 }
 0x7d6   : >> { %3251 = vmax.xlane.f32.xlu1 %v3250_v36 }
 0x7e7   : >> { %3346 = vrot.lane.b32.xlu1 %v6092_v42, %s4801_s12  ;;  %v6565_v42 = vld [vmem:[%s6086_s27 + $0x40] sm:$0xff] }
 0x7ea   : >> { %3298 = vrot.lane.b32.xlu0 %v6207_v50, %s4800_s30  ;;  %v6595_v50 = vld [vmem:[%s6086_s27 + $0x58] sm:$0xff] }
 0x7eb   : >> { %3348 = vrot.lane.b32.xlu1 %v6106_v23, %s4801_s12  ;;  %v6575_v23 = vld [vmem:[%s6086_s27 + $0x48] sm:$0xff] }
 0x7ee   : >> { %3364 = vrot.lane.b32.xlu0 %v6095_v55, %s4801_s12  ;;  %v6570_v55 = vld [vmem:[%s6086_s27] sm:$0xff] }
 0x7ef   : >> { %3350 = vrot.lane.b32.xlu1 %v6116_v15, %s4801_s12  ;;  %v6585_v15 = vld [vmem:[%s6086_s27 + $0x50] sm:$0xff] }
 0x7f2   : >> { %3366 = vrot.lane.b32.xlu0 %v6111_v4, %s4801_s12  ;;  %v6580_v4 = vld [vmem:[%s6086_s27 + $0x8] sm:$0xff] }
 0x7f3   : >> { %3352 = vrot.lane.b32.xlu1 %v6126_v48, %s4801_s12 }
 0x7f6   : >> { %3368 = vrot.lane.b32.xlu0 %v6121_v41, %s4801_s12  ;;  %v6590_v41 = vld [vmem:[%s6086_s27 + $0x10] sm:$0xff] }
 0x7f7   : >> { %3354 = vrot.lane.b32.xlu1 %v6136_v57, %s4801_s12 }
 0x7fa   : >> { %3370 = vrot.lane.b32.xlu0 %v6131_v13, %s4801_s12 }
 0x7fb   : >> { %3356 = vrot.lane.b32.xlu1 %v6146_v1, %s4801_s12 }
 0x7fe   : >> { %3372 = vrot.lane.b32.xlu0 %v6141_v51, %s4801_s12 }
 0x7ff   : >> { %3358 = vrot.lane.b32.xlu1 %v6156_v32, %s4801_s12 }
 0x802   : >> { %3374 = vrot.lane.b32.xlu0 %v6151_v18, %s4801_s12 }
 0x803   : >> { %3360 = vrot.lane.b32.xlu1 %v6166_v3, %s4801_s12 }
 0x806   : >> { %3376 = vrot.lane.b32.xlu0 %v6161_v38, %s4801_s12 }
 0x807   : >> { %3457 = vrot.lane.b32.xlu1 %v6565_v42, %s4802_s13 }
 0x80a   : >> { %3441 = vrot.lane.b32.xlu0 %v6570_v55, %s4802_s13 }
 0x80b   : >> { %3459 = vrot.lane.b32.xlu1 %v6575_v23, %s4802_s13 }
 0x80e   : >> { %3443 = vrot.lane.b32.xlu0 %v6580_v4, %s4802_s13 }
 0x80f   : >> { %3461 = vrot.lane.b32.xlu1 %v6585_v15, %s4802_s13 }
 0x812   : >> { %3445 = vrot.lane.b32.xlu0 %v6590_v41, %s4802_s13 }
 0x813   : >> { %3463 = vrot.lane.b32.xlu1 %v6595_v50, %s4802_s13 }
 0x816   : >> { %3447 = vrot.lane.b32.xlu0 %v6126_v48, %s4802_s13  ;;  %v4765_v48 = vld [vmem:[%s6074_s24] sm:$0xff] }
 0x817   : >> { %3465 = vrot.lane.b32.xlu1 %v6131_v13, %s4802_s13  ;;  %v4766_v13 = vld [vmem:[%s6074_s24 + $0x10] sm:$0xff] }
 0x81a   : >> { %3449 = vrot.lane.b32.xlu0 %v6136_v57, %s4802_s13 }
 0x81b   : >> { %3467 = vrot.lane.b32.xlu1 %v6141_v51, %s4802_s13 }
 0x81e   : >> { %3451 = vrot.lane.b32.xlu0 %v6146_v1, %s4802_s13  ;;  %v3363_v1 = vpop.permute.xlu1 %3362 }
 0x81f   : >> { %3469 = vrot.lane.b32.xlu1 %v6151_v18, %s4802_s13 }
 0x822   : >> { %3453 = vrot.lane.b32.xlu0 %v6156_v32, %s4802_s13 }
 0x823   : >> { %3455 = vrot.lane.b32.xlu1 %v6166_v3, %s4802_s13 }
 0x826   : >> { %3589 = vrot.lane.b32.xlu0 %v4765_v48, %s4803_s14 }
 0x827   : >> { %3591 = vrot.lane.b32.xlu1 %v4766_v13, %s4803_s14 }
 0x82a   : >> { %3471 = vrot.lane.b32.xlu0 %v6161_v38, %s4802_s13 }
 0x82e   : >> { %3439 = vrot.lane.b32.xlu0 %v4765_v48, %s4802_s13 }
 0x842   : >> { %v3255_v57 = vpop.xlane.xlu0 %3254 }
 0x846   : >> { %v3258_v51 = vpop.xlane.xlu0 %3257 }
 0x861   : >> { %v3249_v18 = vpop.xlane.xlu0 %3248 }
 0x862   : >> { %v3259_v32 = vmax.f32 %v3249_v18, %v3255_v57 }
 0x863   : >> { %v3252_v54 = vpop.xlane.xlu1 %3251 }
 0x864   : >> { %v3261_v3 = vsub.f32 %v6520_v9, %v3259_v32  ;;  %v3262_v31 = vsub.f32 %v6522_v27, %v3259_v32  ;;  %v3273_v8 = vsub.f32 %v6507_v17, %v3259_v32  ;;  %v3260_v6 = vmax.f32 %v3252_v54, %v3258_v51 }
 0x865   : >> { %v3299_v58 = vpop.permute.xlu0 %3298 }
 0x866   : >> { %v3265_v0 = vmul.f32 1.442695, %v3261_v3  ;;  %v3267_v20 = vmul.f32 1.442695, %v3262_v31  ;;  %v3275_v45 = vmul.f32 1.442695, %v3273_v8  ;;  %v3263_v38 = vsub.f32 %v6524_v25, %v3260_v6  ;;  %4430 = vmatpush3.bf16.msra.mxu1 %v3299_v58 }
 0x867   : >> { %v3264_v30 = vsub.f32 %v6526_v5, %v3260_v6  ;;  %v3274_v33 = vsub.f32 %v6510_v63, %v3260_v6  ;;  %4246 = vmatprep.subr.bf16.mxu1 %v3363_v1  ;;  %v3347_v39 = vpop.permute.xlu1 %3346 }
 0x868   : >> { %4718 = vpow2.f32 %v3265_v0  ;;  %v3269_v11 = vmul.f32 1.442695, %v3263_v38 }
 0x869   : >> { %4720 = vpow2.f32 %v3267_v20  ;;  %v3271_v59 = vmul.f32 1.442695, %v3264_v30  ;;  %v3277_v9 = vmul.f32 1.442695, %v3274_v33  ;;  %v3365_v17 = vpop.permute.xlu0 %3364 }
 0x86a   : >> { %4722 = vpow2.f32 %v3275_v45 }
 0x86b   : >> { %4724 = vpow2.f32 %v3269_v11  ;;  %v3349_v22 = vpop.permute.xlu1 %3348 }
 0x86c   : >> { %4726 = vpow2.f32 %v3271_v59 }
 0x86d   : >> { %4728 = vpow2.f32 %v3277_v9  ;;  %v3367_v27 = vpop.permute.xlu0 %3366 }
 0x86f   : >> { %v3351_v28 = vpop.permute.xlu1 %3350 }
 0x871   : >> { %v3369_v25 = vpop.permute.xlu0 %3368 }
 0x872   : >> { %v4719_v21 = vpop.eup %4718 }
 0x873   : >> { %v4721_v5 = vpop.eup %4720  ;;  %v3353_v62 = vpop.permute.xlu1 %3352 }
 0x874   : >> { %v6628_v63 = vpop.eup %4722  ;;  %v6630_v36 = vadd.f32 %v4721_v5, %v4719_v21 }
 0x875   : >> { %v4725_v48 = vpop.eup %4724  ;;  %v3371_v13 = vpop.permute.xlu0 %3370 }
 0x876   : >> { %v4727_v57 = vpop.eup %4726 }
 0x877   : >> { %v6632_v51 = vpop.eup %4728  ;;  %v3294_v1 = vpack.c.bf16 %v4727_v57, %v4721_v5  ;;  %v3355_v18 = vpop.permute.xlu1 %3354  ;;  %v6634_v32 = vadd.f32 %v4727_v57, %v4725_v48 }
 0x878   : >> { %v3295_v54 = vpack.c.bf16 %v6632_v51, %v6628_v63 }
 0x879   : >> { %v3373_v3 = vpop.permute.xlu0 %3372 }
 0x87a   : >> { %4432 = vmatmul.mubr.msk.bf16.vlgmr.msra.gmra.mrb[24].mxu1 %vm479_vm0, %v3295_v54 }
 0x87b   : >> { %4247 = vmatpush3.bf16.msra.mxu1 %v3347_v39  ;;  %3426 = vmatprep.mubr.bf16.mxu1 %v3294_v1  ;;  %v3357_v31 = vpop.permute.xlu1 %3356 }
 0x87c   : >> { %4248 = vmatprep.subr.bf16.mxu1 %v3365_v17 }
 0x87d   : >> { %v3375_v8 = vpop.permute.xlu0 %3374 }
 0x87f   : >> { %4249 = vmatpush3.bf16.msra.mxu1 %v3349_v22  ;;  %v3359_v6 = vpop.permute.xlu1 %3358  ;;  %v3293_v22 = vpack.c.bf16 %v4725_v48, %v4719_v21 }
 0x880   : >> { %4250 = vmatprep.subr.bf16.mxu1 %v3367_v27 }
 0x881   : >> { %v3377_v58 = vpop.permute.xlu0 %3376 }
 0x883   : >> { %4251 = vmatpush3.bf16.msra.mxu1 %v3351_v28  ;;  %v3361_v0 = vpop.permute.xlu1 %3360 }
 0x884   : >> { %4252 = vmatprep.subr.bf16.mxu1 %v3369_v25 }
 0x885   : >> { %v3442_v20 = vpop.permute.xlu0 %3441 }
 0x886   : >> { %v3477_v25 = vsel %vm2272_vm3, %v3442_v20, 0 }
 0x887   : >> { %4253 = vmatpush3.bf16.msra.mxu1 %v3353_v62  ;;  %v3458_v45 = vpop.permute.xlu1 %3457 }
 0x888   : >> { %4254 = vmatprep.subr.bf16.mxu1 %v3371_v13 }
 0x889   : >> { %v3444_v38 = vpop.permute.xlu0 %3443 }
 0x88a   : >> { %v3480_v21 = vsel %vm2272_vm3, %v3444_v38, 0 }
 0x88b   : >> { %4255 = vmatpush3.bf16.msra.mxu1 %v3355_v18  ;;  %v3460_v30 = vpop.permute.xlu1 %3459 }
 0x88c   : >> { %4256 = vmatprep.subr.bf16.mxu1 %v3373_v3 }
 0x88d   : >> { %v3446_v33 = vpop.permute.xlu0 %3445 }
 0x88f   : >> { %4257 = vmatpush3.bf16.msra.mxu1 %v3357_v31  ;;  %v3462_v39 = vpop.permute.xlu1 %3461  ;;  %v3483_v31 = vsel %vm2272_vm3, %v3446_v33, 0 }
 0x890   : >> { %4258 = vmatprep.subr.bf16.mxu1 %v3375_v8 }
 0x891   : >> { %v3448_v11 = vpop.permute.xlu0 %3447 }
 0x892   : >> { %v3486_v8 = vsel %vm2272_vm3, %v3448_v11, 0 }
 0x893   : >> { %4259 = vmatpush3.bf16.msra.mxu1 %v3359_v6  ;;  %v3464_v59 = vpop.permute.xlu1 %3463 }
 0x894   : >> { %4260 = vmatprep.subr.bf16.mxu1 %v3377_v58 }
 0x895   : >> { %v3450_v9 = vpop.permute.xlu0 %3449 }
 0x896   : >> { %v3489_v6 = vsel %vm2272_vm3, %v3450_v9, 0 }
 0x897   : >> { %4261 = vmatpush3.bf16.msra.mxu1 %v3361_v0  ;;  %v3466_v17 = vpop.permute.xlu1 %3465 }
 0x898   : >> { %4491 = vmatprep.subr.msk.bf16.mxu1 %vm2272_vm3, %v3458_v45 }
 0x899   : >> { %v3452_v27 = vpop.permute.xlu0 %3451 }
 0x89a   : >> { %3427 = vmatmul.mubr.bf16.vlgmr.msra.gmra.mrb[28].mxu1 %v3293_v22  ;;  %v3492_v58 = vsel %vm2272_vm3, %v3452_v27, 0 }
 0x89b   : >> { %v3468_v28 = vpop.permute.xlu1 %3467 }
 0x89d   : >> { %v3454_v5 = vpop.permute.xlu0 %3453 }
 0x89e   : >> { %v3495_v0 = vsel %vm2272_vm3, %v3454_v5, 0 }
 0x89f   : >> { %v3470_v62 = vpop.permute.xlu1 %3469 }
 0x8a0   : >> { %4269 = vmatpush3.bf16.xpose.msra.mxu1 %v3477_v25 }
 0x8a1   : >> { %4492 = vmatprep.subr.msk.bf16.mxu1 %vm2272_vm3, %v3460_v30  ;;  %v3590_v13 = vpop.permute.xlu0 %3589 }
 0x8a2   : >> { %v3594_v57 = vsel %vm2272_vm3, %v3590_v13, 0 }
 0x8a3   : >> { %4436 = vmatpush3.bf16.xpose.msra.mxu0 %v3594_v57  ;;  %v3456_v1 = vpop.permute.xlu1 %3455 }
 0x8a4   : >> { %4437 = vmatprep.subr.bf16.mxu0 %v4795_v10  ;;  %v3498_v20 = vsel %vm2272_vm3, %v3456_v1, 0 }
 0x8a5   : >> { %v3472_v48 = vpop.permute.xlu0 %3471 }
 0x8a7   : >> { %v3592_v18 = vpop.permute.xlu1 %3591 }
 0x8a8   : >> { %4271 = vmatpush3.bf16.xpose.msra.mxu1 %v3480_v21  ;;  %v3597_v54 = vsel %vm2272_vm3, %v3592_v18, 0  ;;  %v3569_v18 = vsub.s32 3, %v6183_v14 }
 0x8a9   : >> { %4493 = vmatprep.subr.msk.bf16.mxu1 %vm2272_vm3, %v3462_v39  ;;  %v3440_v3 = vpop.permute.xlu0 %3439 }
 0x8aa   : >> { %4284 = vmatprep.mubr.msk.bf16.mxu1 %vm2272_vm3, %v3440_v3 }
 0x8ab   : >> { %4438 = vmatpush3.bf16.xpose.msra.mxu0 %v3597_v54  ;;  %v3573_v54 = vsub.s32 7, %v6183_v14 }
 0x8ac   : >> { %4443 = vmatprep.subr.bf16.mxu0 %v4795_v10 }
 0x8b0   : >> { %4273 = vmatpush3.bf16.xpose.msra.mxu1 %v3483_v31  ;;  %v3574_v31 = vrot.slane %v6013_v52, %v3573_v54 }
 0x8b1   : >> { %4494 = vmatprep.subr.msk.bf16.mxu1 %vm2272_vm3, %v3464_v59 }
 0x8b2   : >> { %4440 = vmatmul.mubr.msk.bf16.vlgmr.msra.gmra.mrb[16].mxu0 %vm2272_vm3, %v3440_v3 }
 0x8b3   : >> { %4447 = vmatprep.mubr.msk.bf16.mxu0 %vm4796_vm2, %v4795_v10 }
 0x8b8   : >> { %4275 = vmatpush3.bf16.xpose.msra.mxu1 %v3486_v8 }
 0x8b9   : >> { %4495 = vmatprep.subr.msk.bf16.mxu1 %vm2272_vm3, %v3466_v17 }
 0x8c0   : >> { %4277 = vmatpush3.bf16.xpose.msra.mxu1 %v3489_v6  ;;  %v3584_v6 = vrot.slane %v3574_v31, %v3569_v18 }
 0x8c1   : >> { %4496 = vmatprep.subr.msk.bf16.mxu1 %vm2272_vm3, %v3468_v28 }
 0x8c8   : >> { %4279 = vmatpush3.bf16.xpose.msra.mxu1 %v3492_v58 }
 0x8c9   : >> { %4497 = vmatprep.subr.msk.bf16.mxu1 %vm2272_vm3, %v3470_v62 }
 0x8d0   : >> { %4281 = vmatpush3.bf16.xpose.msra.mxu1 %v3495_v0 }
 0x8d1   : >> { %4498 = vmatprep.subr.msk.bf16.mxu1 %vm2272_vm3, %v3472_v48 }
 0x8d8   : >> { %4283 = vmatpush3.bf16.xpose.msra.mxu1 %v3498_v20 }
 0x8df   : >> { %4285 = vmatmul.mubr.msk.bf16.vlgmr.msra.gmra.mrb[32].mxu1 %vm2272_vm3, %v3440_v3  ;;  %v3570_v3 = vrot.slane %v6013_v52, %v3569_v18 }
 0x8e1   : >> { %v3580_v8 = vrot.slane %v3570_v3, %v3569_v18 }
 0x94d   : >> { %v3339_v45 = vpop.f32.mrb[24].mxu1 }
 0x94e   : >> { %v4433_v38 = vpop.f32.mrb[25].mxu1 }
 0x94f   : >> { %v3342_v30 = vpop.f32.mrb[26].mxu1 }
 0x950   : >> { %v4434_v33 = vpop.f32.mrb[27].mxu1 }
 0x96d   : >> { %v4262_v39 = vpop.f32.mrb[28].mxu1 }
 0x96e   : >> { %v4263_v11 = vpop.f32.mrb[29].mxu1 }
 0x96f   : >> { %v4264_v59 = vadd.f32 %v4263_v11, %v4262_v39  ;;  %v4265_v9 = vpop.f32.mrb[30].mxu1 }
 0x970   : >> { %v4266_v17 = vpop.f32.mrb[31].mxu1 }
 0x971   : >> { %v6664_v22 = vadd.f32 %v4264_v59, %v3339_v45  ;;  %v4267_v27 = vadd.f32 %v4266_v17, %v4265_v9  ;;  %v4767_v59 = vld [vmem:[%s6074_s24 + $0x18] sm:$0xff]  ;;  %v4768_v9 = vld [vmem:[%s6074_s24 + $0x8] sm:$0xff]  ;;  %v4776_v17 = vld [vmem:[%s6086_s27 + $0x30] sm:$0xff] }
 0x973   : >> { %v6666_v28 = vadd.f32 %v4267_v27, %v3342_v30  ;;  %v4777_v27 = vld [vmem:[%s6086_s27 + $0x38] sm:$0xff] }
 0x985   : >> { %v3633_v25 = vpop.f32.mrb[16].mxu0 }
 0x986   : >> { %v6669_v5 = vadd.f32 %v6018_v24, %v3633_v25  ;;  %v4441_v62 = vpop.f32.mrb[17].mxu0  ;;  %v2893_v25 = vsel %vm479_vm0, %v6464_v16, 0.0 }
 0x987   : >> { %v3636_v13 = vpop.f32.mrb[18].mxu0  ;;  %v2890_v62 = vsel %vm479_vm0, %v6467_v56, 0.0 }
 0x988   : >> { %v6672_v57 = vadd.f32 %v6018_v24, %v3636_v13  ;;  %v4442_v1 = vpop.f32.mrb[19].mxu0  ;;  %v3646_v21 = vsel %vm479_vm0, %v6669_v5, -inf  ;;  %v3288_v13 = vsel %vm479_vm0, %v6632_v51, 0.0 }
 0x989   : >> { %3647 = vmax.xlane.f32.xlu0 %v3646_v21 }
 0x98a   : >> { %v3649_v48 = vsel %vm479_vm0, %v6672_v57, -inf }
 0x98b   : >> { %3650 = vmax.xlane.f32.xlu1 %v3649_v48 }
 0x9b2   : >> { %v3558_v58 = vpop.f32.mrb[32].mxu1 }
 0x9b3   : >> { %v3585_v0 = vmul.f32 %v3580_v8, %v3558_v58  ;;  %v3560_v20 = vpop.f32.mrb[33].mxu1 }
 0x9b4   : >> { %v3586_v45 = vmul.f32 %v3584_v6, %v3560_v20  ;;  %v3562_v38 = vpop.f32.mrb[34].mxu1 }
 0x9b5   : >> { %v6682_v30 = vmul.f32 %v3580_v8, %v3562_v38  ;;  %v3564_v33 = vpop.f32.mrb[35].mxu1 }
 0x9b6   : >> { %v3640_v39 = vmax.f32 %v3585_v0, %v3586_v45  ;;  %v6684_v11 = vmul.f32 %v3584_v6, %v3564_v33 }
 0x9b8   : >> { %v3643_v14 = vmax.f32 %v6682_v30, %v6684_v11  ;;  %3641 = vmax.xlane.f32.xlu1 %v3640_v39 }
 0x9ba   : >> { %3644 = vmax.xlane.f32.xlu0 %v3643_v14 }
 0x9c9   : >> { %3691 = vrot.lane.b32.xlu1 %v4767_v59, %s4802_s13 }
 0x9cd   : >> { %3755 = vrot.lane.b32.xlu1 %v6565_v42, %s4803_s14  ;;  %v4769_v42 = vld [vmem:[%s6086_s27 + $0x60] sm:$0xff] }
 0x9d0   : >> { %3689 = vrot.lane.b32.xlu0 %v4768_v9, %s4802_s13 }
 0x9d1   : >> { %3757 = vrot.lane.b32.xlu1 %v6575_v23, %s4803_s14  ;;  %v4770_v23 = vld [vmem:[%s6086_s27 + $0x18] sm:$0xff] }
 0x9d4   : >> { %3739 = vrot.lane.b32.xlu0 %v6570_v55, %s4803_s14  ;;  %v4771_v55 = vld [vmem:[%s6086_s27 + $0x68] sm:$0xff] }
 0x9d5   : >> { %3759 = vrot.lane.b32.xlu1 %v6585_v15, %s4803_s14  ;;  %v4772_v15 = vld [vmem:[%s6086_s27 + $0x20] sm:$0xff] }
 0x9d8   : >> { %3741 = vrot.lane.b32.xlu0 %v6580_v4, %s4803_s14  ;;  %v4773_v4 = vld [vmem:[%s6086_s27 + $0x70] sm:$0xff] }
 0x9d9   : >> { %3761 = vrot.lane.b32.xlu1 %v6595_v50, %s4803_s14  ;;  %v4774_v50 = vld [vmem:[%s6086_s27 + $0x28] sm:$0xff] }
 0x9dc   : >> { %3743 = vrot.lane.b32.xlu0 %v6590_v41, %s4803_s14  ;;  %v4775_v41 = vld [vmem:[%s6086_s27 + $0x78] sm:$0xff] }
 0x9dd   : >> { %3763 = vrot.lane.b32.xlu1 %v4769_v42, %s4803_s14 }
 0x9e0   : >> { %3745 = vrot.lane.b32.xlu0 %v4770_v23, %s4803_s14 }
 0x9e1   : >> { %3765 = vrot.lane.b32.xlu1 %v4771_v55, %s4803_s14 }
 0x9e4   : >> { %3747 = vrot.lane.b32.xlu0 %v4772_v15, %s4803_s14 }
 0x9e5   : >> { %3767 = vrot.lane.b32.xlu1 %v4773_v4, %s4803_s14 }
 0x9e8   : >> { %3749 = vrot.lane.b32.xlu0 %v4774_v50, %s4803_s14 }
 0x9e9   : >> { %3769 = vrot.lane.b32.xlu1 %v4775_v41, %s4803_s14 }
 0x9ec   : >> { %3751 = vrot.lane.b32.xlu0 %v4776_v17, %s4803_s14 }
 0x9f0   : >> { %3753 = vrot.lane.b32.xlu0 %v4777_v27, %s4803_s14 }
 0xa0d   : >> { %2885 = vadd.xlane.f32.xlu1 %v6444_v29  ;;  %v3285_v29 = vsel %vm479_vm0, %v6628_v63, 0.0 }
 0xa0f   : >> { %2888 = vadd.xlane.f32.xlu0 %v6458_v35 }
 0xa11   : >> { %2894 = vadd.xlane.f32.xlu1 %v2893_v25 }
 0xa13   : >> { %2891 = vadd.xlane.f32.xlu0 %v2890_v62 }
 0xa15   : >> { %3283 = vadd.xlane.f32.xlu1 %v6634_v32 }
 0xa16   : >> { %v3648_v1 = vpop.xlane.xlu0 %3647 }
 0xa17   : >> { %3280 = vadd.xlane.f32.xlu0 %v6630_v36 }
 0xa18   : >> { %v3651_v35 = vpop.xlane.xlu1 %3650 }
 0xa19   : >> { %3289 = vadd.xlane.f32.xlu1 %v3288_v13  ;;  %v2487_v13 = vsel %vm479_vm0, %v6316_v12, 0.0 }
 0xa1b   : >> { %3286 = vadd.xlane.f32.xlu0 %v3285_v29 }
 0xa45   : >> { %v3642_v16 = vpop.xlane.xlu1 %3641 }
 0xa46   : >> { %v3652_v21 = vmax.f32 %v3642_v16, %v3648_v1 }
 0xa47   : >> { %v3645_v48 = vpop.xlane.xlu0 %3644 }
 0xa48   : >> { %v3654_v18 = vsub.f32 %v3585_v0, %v3652_v21  ;;  %v3655_v56 = vsub.f32 %v3586_v45, %v3652_v21  ;;  %v3666_v54 = vsub.f32 %v6669_v5, %v3652_v21  ;;  %v3653_v32 = vmax.f32 %v3645_v48, %v3651_v35 }
 0xa49   : >> { %v3692_v3 = vpop.permute.xlu1 %3691  ;;  %v2490_v35 = vsel %vm479_vm0, %v6318_v61, 0.0 }
 0xa4a   : >> { %v3658_v36 = vmul.f32 1.442695, %v3654_v18  ;;  %v3660_v31 = vmul.f32 1.442695, %v3655_v56  ;;  %v3668_v8 = vmul.f32 1.442695, %v3666_v54  ;;  %v3656_v51 = vsub.f32 %v6682_v30, %v3653_v32 }
 0xa4b   : >> { %v3657_v6 = vsub.f32 %v6684_v11, %v3653_v32  ;;  %v3667_v63 = vsub.f32 %v6672_v57, %v3653_v32  ;;  %v3690_v58 = vpop.permute.xlu0 %3689 }
 0xa4c   : >> { %4730 = vpow2.f32 %v3658_v36  ;;  %v3662_v20 = vmul.f32 1.442695, %v3656_v51  ;;  %4444 = vmatpush3.bf16.msra.mxu0 %v3690_v58 }
 0xa4d   : >> { %4732 = vpow2.f32 %v3660_v31  ;;  %v3664_v0 = vmul.f32 1.442695, %v3657_v6  ;;  %v3670_v45 = vmul.f32 1.442695, %v3667_v63  ;;  %4445 = vmatprep.subr.bf16.mxu0 %v4795_v10  ;;  %v3756_v5 = vpop.permute.xlu1 %3755 }
 0xa4e   : >> { %4734 = vpow2.f32 %v3668_v8 }
 0xa4f   : >> { %4736 = vpow2.f32 %v3662_v20  ;;  %v3740_v38 = vpop.permute.xlu0 %3739 }
 0xa50   : >> { %4738 = vpow2.f32 %v3664_v0  ;;  %4446 = vmatpush3.bf16.msra.mxu0 %v3692_v3 }
 0xa51   : >> { %4740 = vpow2.f32 %v3670_v45  ;;  %4292 = vmatprep.subr.bf16.mxu0 %v3756_v5  ;;  %v3758_v30 = vpop.permute.xlu1 %3757 }
 0xa53   : >> { %v3742_v33 = vpop.permute.xlu0 %3741 }
 0xa55   : >> { %v3760_v11 = vpop.permute.xlu1 %3759 }
 0xa56   : >> { %v4731_v57 = vpop.eup %4730 }
 0xa57   : >> { %v4733_v39 = vpop.eup %4732  ;;  %v3744_v23 = vpop.permute.xlu0 %3743 }
 0xa58   : >> { %v4735_v14 = vpop.eup %4734  ;;  %v3672_v59 = vadd.f32 %v4733_v39, %v4731_v57 }
 0xa59   : >> { %v4737_v9 = vpop.eup %4736  ;;  %v3678_v41 = vsel %vm479_vm0, %v4735_v14, 0.0  ;;  %v3762_v17 = vpop.permute.xlu1 %3761 }
 0xa5a   : >> { %v4739_v42 = vpop.eup %4738  ;;  %3673 = vadd.xlane.f32.xlu0 %v3672_v59  ;;  %v3686_v48 = vpack.c.bf16 %v4737_v9, %v4731_v57 }
 0xa5b   : >> { %v4741_v55 = vpop.eup %4740  ;;  %v3675_v15 = vadd.f32 %v4739_v42, %v4737_v9  ;;  %v3687_v4 = vpack.c.bf16 %v4739_v42, %v4733_v39  ;;  %v3746_v25 = vpop.permute.xlu0 %3745 }
 0xa5c   : >> { %v3688_v50 = vpack.c.bf16 %v4741_v55, %v4735_v14  ;;  %v3681_v27 = vsel %vm479_vm0, %v4741_v55, 0.0 }
 0xa5d   : >> { %3676 = vadd.xlane.f32.xlu1 %v3675_v15  ;;  %v3764_v62 = vpop.permute.xlu1 %3763 }
 0xa5e   : >> { %4448 = vmatmul.mubr.msk.bf16.vlgmr.msra.gmra.mrb[20].mxu0 %vm479_vm0, %v3688_v50  ;;  %3679 = vadd.xlane.f32.xlu0 %v3678_v41  ;;  %v4091_v50 = vcombine.low %v6053_v47, %v6058_v2 }
 0xa5f   : >> { %4293 = vmatpush3.bf16.msra.mxu0 %v3740_v38  ;;  %3819 = vmatprep.mubr.bf16.mxu0 %v3687_v4  ;;  %v3748_v29 = vpop.permute.xlu0 %3747 }
 0xa60   : >> { %4294 = vmatprep.subr.bf16.mxu0 %v3758_v30 }
 0xa61   : >> { %3682 = vadd.xlane.f32.xlu1 %v3681_v27  ;;  %v3766_v1 = vpop.permute.xlu1 %3765 }
 0xa62   : >> { %2482 = vadd.xlane.f32.xlu0 %v6314_v19 }
 0xa63   : >> { %4295 = vmatpush3.bf16.msra.mxu0 %v3742_v33  ;;  %v3750_v19 = vpop.permute.xlu0 %3749 }
 0xa64   : >> { %4296 = vmatprep.subr.bf16.mxu0 %v3760_v11  ;;  %v4088_v11 = vcombine.low %v6023_v34, %v6028_v37 }
 0xa65   : >> { %2485 = vadd.xlane.f32.xlu1 %v6320_v43  ;;  %v3768_v16 = vpop.permute.xlu1 %3767 }
 0xa66   : >> { %2488 = vadd.xlane.f32.xlu0 %v2487_v13 }
 0xa67   : >> { %4297 = vmatpush3.bf16.msra.mxu0 %v3744_v23  ;;  %v3752_v21 = vpop.permute.xlu0 %3751 }
 0xa68   : >> { %4298 = vmatprep.subr.bf16.mxu0 %v3762_v17 }
 0xa69   : >> { %2491 = vadd.xlane.f32.xlu1 %v2490_v35  ;;  %v3770_v43 = vpop.permute.xlu1 %3769 }
 0xa6b   : >> { %4299 = vmatpush3.bf16.msra.mxu0 %v3746_v25  ;;  %v3754_v12 = vpop.permute.xlu0 %3753 }
 0xa6c   : >> { %4300 = vmatprep.subr.bf16.mxu0 %v3764_v62 }
 0xa6f   : >> { %4301 = vmatpush3.bf16.msra.mxu0 %v3748_v29 }
 0xa70   : >> { %4302 = vmatprep.subr.bf16.mxu0 %v3766_v1 }
 0xa73   : >> { %4303 = vmatpush3.bf16.msra.mxu0 %v3750_v19 }
 0xa74   : >> { %4304 = vmatprep.subr.bf16.mxu0 %v3768_v16 }
 0xa77   : >> { %4305 = vmatpush3.bf16.msra.mxu0 %v3752_v21 }
 0xa78   : >> { %4306 = vmatprep.subr.bf16.mxu0 %v3770_v43 }
 0xa7b   : >> { %4307 = vmatpush3.bf16.msra.mxu0 %v3754_v12 }
 0xa7c   : >> { %4451 = vmatprep.subr.bf16.mxu0 %v4795_v10 }
 0xa7e   : >> { %3820 = vmatmul.mubr.bf16.vlgmr.msra.gmra.mrb[24].mxu0 %v3686_v48 }
 0xa7f   : >> { %4459 = vmatprep.mubr.msk.bf16.mxu0 %vm4796_vm2, %v4795_v10  ;;  %4452 = vmatpush3.bf16.msra.mxu0 %v4088_v11 }
 0xa80   : >> { %4453 = vmatprep.subr.bf16.mxu0 %v4795_v10 }
 0xa9a   : >> { %v2886_v61 = vpop.xlane.xlu1 %2885 }
 0xa9c   : >> { %v2889_v18 = vpop.xlane.xlu0 %2888 }
 0xa9e   : >> { %v2895_v56 = vpop.xlane.xlu1 %2894 }
 0xa9f   : >> { %v2897_v54 = vadd.f32 %v2895_v56, %v2889_v18 }
 0xaa0   : >> { %v2892_v32 = vpop.xlane.xlu0 %2891 }
 0xaa1   : >> { %4742 = vrcp.f32 %v2897_v54  ;;  %v2896_v3 = vadd.f32 %v2892_v32, %v2886_v61 }
 0xaa2   : >> { %v3284_v36 = vpop.xlane.xlu1 %3283 }
 0xaa3   : >> { %4744 = vrcp.f32 %v2896_v3 }
 0xaa4   : >> { %v3281_v31 = vpop.xlane.xlu0 %3280 }
 0xaa6   : >> { %v3290_v8 = vpop.xlane.xlu1 %3289 }
 0xaa7   : >> { %v3292_v51 = vadd.f32 %v3290_v8, %v3284_v36 }
 0xaa8   : >> { %v3287_v6 = vpop.xlane.xlu0 %3286 }
 0xaa9   : >> { %4746 = vrcp.f32 %v3292_v51  ;;  %v3291_v63 = vadd.f32 %v3287_v6, %v3281_v31 }
 0xaab   : >> { %v4743_v58 = vpop.eup %4742  ;;  %4748 = vrcp.f32 %v3291_v63 }
 0xaac   : >> { %v3045_v45 = vmul.f32 %v4743_v58, %v6504_v26  ;;  %v4090_v26 = vcombine.low %v6043_v49, %v6048_v53 }
 0xaad   : >> { %v4745_v20 = vpop.eup %4744 }
 0xaae   : >> { %v3044_v0 = vmul.f32 %v4745_v20, %v6502_v40  ;;  %v4089_v40 = vcombine.low %v6033_v44, %v6038_v46 }
 0xab0   : >> { %v4679_v5 = vpack.i.bf16 %v3045_v45, %v3044_v0  ;;  %4454 = vmatpush3.bf16.msra.mxu0 %v4089_v40 }
 0xab1   : >> { %4455 = vmatprep.subr.bf16.mxu0 %v4795_v10 }
 0xab2   : >> { %4680 = vrot.lane.b32.xlu0 %v4679_v5, %s4803_s14 }
 0xab3   : >> { %v4747_v38 = vpop.eup %4746 }
 0xab4   : >> { %v3438_v57 = vmul.f32 %v4747_v38, %v6666_v28  ;;  %4456 = vmatpush3.bf16.msra.mxu0 %v4090_v26 }
 0xab5   : >> { %v4749_v30 = vpop.eup %4748  ;;  %4457 = vmatprep.subr.bf16.mxu0 %v4795_v10 }
 0xab6   : >> { %v3437_v33 = vmul.f32 %v4749_v30, %v6664_v22 }
 0xab8   : >> { %v4684_v39 = vpack.i.bf16 %v3438_v57, %v3437_v33  ;;  %4458 = vmatpush3.bf16.msra.mxu0 %v4091_v50 }
 0xaba   : >> { %4685 = vrot.lane.b32.xlu1 %v4684_v39, %s4801_s12 }
 0xae7   : >> { %v3674_v9 = vpop.xlane.xlu0 %3673 }
 0xaea   : >> { %v3677_v42 = vpop.xlane.xlu1 %3676 }
 0xaeb   : >> { %v3680_v23 = vpop.xlane.xlu0 %3679 }
 0xaec   : >> { %v3684_v15 = vadd.f32 %v3680_v23, %v3674_v9 }
 0xaee   : >> { %v3683_v55 = vpop.xlane.xlu1 %3682  ;;  %4750 = vrcp.f32 %v3684_v15 }
 0xaef   : >> { %v3685_v4 = vadd.f32 %v3683_v55, %v3677_v42  ;;  %v2483_v43 = vpop.xlane.xlu0 %2482 }
 0xaf1   : >> { %4752 = vrcp.f32 %v3685_v4 }
 0xaf2   : >> { %v2486_v12 = vpop.xlane.xlu1 %2485 }
 0xaf3   : >> { %v2489_v48 = vpop.xlane.xlu0 %2488 }
 0xaf4   : >> { %v2493_v18 = vadd.f32 %v2489_v48, %v2483_v43 }
 0xaf6   : >> { %v2492_v61 = vpop.xlane.xlu1 %2491  ;;  %4754 = vrcp.f32 %v2493_v18 }
 0xaf7   : >> { %v2494_v56 = vadd.f32 %v2492_v61, %v2486_v12 }
 0xaf8   : >> { %v4751_v29 = vpop.eup %4750 }
 0xaf9   : >> { %4756 = vrcp.f32 %v2494_v56 }
 0xafb   : >> { %v4753_v1 = vpop.eup %4752 }
 0xb00   : >> { %v4755_v32 = vpop.eup %4754 }
 0xb01   : >> { %v2649_v63 = vmul.f32 %v4755_v32, %v6350_v60 }
 0xb03   : >> { %v4757_v36 = vpop.eup %4756 }
 0xb04   : >> { %v2650_v58 = vmul.f32 %v4757_v36, %v6352_v7 }
 0xb24   : >> { %v4681_v54 = vpop.permute.xlu0 %4680 }
 0xb25   : >> { %v4683_v31 = vunpack.i.h.bf16 %v4681_v54  ;;  %v4682_v8 = vunpack.i.l.bf16 %v4681_v54 }
 0xb27   : >> { %v3856_v0 = vsel %vm2272_vm3, %v2649_v63, %v4682_v8  ;;  %v3857_v45 = vsel %vm2272_vm3, %v2650_v58, %v4683_v31 }
 0xb2c   : >> { %v4686_v3 = vpop.permute.xlu1 %4685 }
 0xb2d   : >> { %v4688_v51 = vunpack.i.h.bf16 %v4686_v3  ;;  %v4687_v6 = vunpack.i.l.bf16 %v4686_v3 }
 0xb2f   : >> { %v3859_v30 = vsel %vm479_vm0, %v3857_v45, %v4688_v51  ;;  %v3858_v33 = vsel %vm479_vm0, %v3856_v0, %v4687_v6 }
 0xb31   : >> { %v3732_v22 = vpop.f32.mrb[20].mxu0 }
 0xb32   : >> { %v4449_v28 = vpop.f32.mrb[21].mxu0 }
 0xb33   : >> { %v3735_v14 = vpop.f32.mrb[22].mxu0 }
 0xb34   : >> { %v4450_v59 = vpop.f32.mrb[23].mxu0 }
 0xb51   : >> { %v4308_v41 = vpop.f32.mrb[24].mxu0 }
 0xb52   : >> { %v4309_v17 = vpop.f32.mrb[25].mxu0 }
 0xb53   : >> { %v4310_v27 = vadd.f32 %v4309_v17, %v4308_v41  ;;  %v4311_v10 = vpop.f32.mrb[26].mxu0 }
 0xb54   : >> { %v4312_v25 = vpop.f32.mrb[27].mxu0 }
 0xb55   : >> { %v3822_v62 = vadd.f32 %v4310_v27, %v3732_v22  ;;  %v4313_v13 = vadd.f32 %v4312_v25, %v4311_v10 }
 0xb57   : >> { %v3825_v35 = vadd.f32 %v4313_v13, %v3735_v14  ;;  %v3830_v19 = vmul.f32 %v4751_v29, %v3822_v62 }
 0xb59   : >> { %v3831_v16 = vmul.f32 %v4753_v1, %v3825_v35 }
 0xb5b   : >> { %v4689_v21 = vpack.i.bf16 %v3831_v16, %v3830_v19 }
 0xb5d   : >> { %4690 = vrot.lane.b32.xlu1 %v4689_v21, %s4799_s29 }
 0xbcf   : >> { %v4691_v20 = vpop.permute.xlu1 %4690 }
 0xbd0   : >> { %v4693_v5 = vunpack.i.h.bf16 %v4691_v20  ;;  %v4692_v38 = vunpack.i.l.bf16 %v4691_v20 }
 0xbd2   : >> { %v3862_v57 = vsel %vm3860_vm4, %v3859_v30, %v4693_v5  ;;  %v3861_v39 = vsel %vm3860_vm4, %v3858_v33, %v4692_v38 }
 0xbd3   : >> { %v3863_v11 = vpack.c.bf16 %v3862_v57, %v3861_v39 }
 0xbd5   : >> { %4460 = vmatmul.mubr.msk.bf16.vlgmr.msra.gmra.mrb[28].mxu0 %vm2216_vm1, %v3863_v11 }
 0xca5   : > { %2238 = sbr.rel (!%p2236_p6) target bundleno = 697 (0x2b9), region = 107 }
 0xca8   : >> { %v3925_v60 = vpop.f32.mrb[28].mxu0 }
 0xca9   : >> { %3933 = vst.msk [vmem:[%s3932_s16] sm:$0xff] %vm479_vm0, %v3925_v60  ;;  %v4461_v7 = vpop.f32.mrb[29].mxu0 }
 0xcaa   : >> { %v3928_v40 = vpop.f32.mrb[30].mxu0 }
 0xcab   : >> { %3934 = vst.msk [vmem:[%s3932_s16 + $0x8] sm:$0xff] %vm479_vm0, %v3928_v40  ;;  %v4462_v26 = vpop.f32.mrb[31].mxu0 }
 0xcac PF: > { %s21_s17 = sadd.s32 1, %s4788_s17  }
 0xcad   : > { %p18_p7 = scmp.ge.s32.totalorder %s21_s17, 4  }
 0xcaf   :  { %20 = sbr.rel (!%p18_p7) target bundleno = 1 (0x1), region = 118 }

</bundles_post_ra>
